<compile_context>
chip_gen: v7x
topology: tpu7x:2x2x1
jax: 0.10.0
libtpu: 0.0.40
codegen_flags: <defaults>
</compile_context>

<pallas_src>
import functools

import jax
import jax.numpy as jnp
import numpy as np
from jax.experimental import pallas as pl
from jax.experimental.pallas import tpu as pltpu

NEG_SLOPE = 0.2
BN_EPS = 1e-5
KW = 4     # conv kernel size (kw=4 in the torch module)
OCP = 128  # lane-padded output-channel width


# ------------------------------ Pallas kernels ------------------------------

def _conv_bias_act_kernel(p_ref, w_ref, b_ref, o_ref, *, apply_lrelu):
    # (M, K) @ (K, OCP) + bias, optional LeakyReLU(0.2).  Whole layer in VMEM.
    y = jnp.dot(p_ref[...], w_ref[...], preferred_element_type=jnp.float32)
    y = y + b_ref[...]
    if apply_lrelu:
        y = jnp.where(y >= 0.0, y, NEG_SLOPE * y)
    o_ref[...] = y


def _conv_bn_lrelu_kernel(p_ref, w_ref, gamma_ref, beta_ref, o_ref, *, inv_m):
    # Fused conv-matmul + BatchNorm (training batch stats) + LeakyReLU(0.2).
    # No bias term: BN conv layers are bias=False in the torch module, so the
    # batch statistics below are exact (no padded-row / bias contamination).
    y = jnp.dot(p_ref[...], w_ref[...], preferred_element_type=jnp.float32)
    mean = jnp.sum(y, axis=0, keepdims=True) * inv_m           # (1, OCP)
    d = y - mean
    var = jnp.sum(d * d, axis=0, keepdims=True) * inv_m        # biased, two-pass
    scale = jax.lax.rsqrt(var + BN_EPS) * gamma_ref[...]       # fold BN affine
    shift = beta_ref[...] - mean * scale
    h = y * scale + shift                                      # single FMA per elem
    o_ref[...] = jnp.where(h >= 0.0, h, NEG_SLOPE * h)


# ------------------------------ Pallas wrapper -------------------------------

def pallas_conv_layer(patches, p):
    """patches: (M, K) f32 -> (M, OCP) f32 output (padded channels are zero)."""
    M, K = patches.shape
    if p["has_bn"]:
        kernel = functools.partial(_conv_bn_lrelu_kernel, inv_m=1.0 / M)
        operands = (patches, p["w2p"], p["gamma_p"], p["beta_p"])
    else:
        kernel = functools.partial(_conv_bias_act_kernel, apply_lrelu=p["lrelu"])
        operands = (patches, p["w2p"], p["b_p"])

    small_specs = [pl.BlockSpec((1, OCP), lambda i: (0, 0))] * (len(operands) - 2)
    return pl.pallas_call(
        kernel,
        out_shape=jax.ShapeDtypeStruct((M, OCP), jnp.float32),
        grid=(1,),  # whole layer fits in VMEM; single fused invocation
        in_specs=[pl.BlockSpec((M, K), lambda i: (0, 0)),
                  pl.BlockSpec((K, OCP), lambda i: (0, 0))] + small_specs,
        out_specs=pl.BlockSpec((M, OCP), lambda i: (0, 0)),
        compiler_params=pltpu.CompilerParams(
            dimension_semantics=("arbitrary",)),
    )(*operands)


# ------------------------------ glue (JAX) -----------------------------------

def extract_patches(x, kh, kw, stride, pad):
    """x: (N, H, W, C) -> patches (N*OH*OW, kh*kw*C), column order (kh, kw, Cin)."""
    # TODO(synk): im2col stays in XLA (strided gather has no clean rectangular
    # BlockSpec form); with the fused grid=(1,) kernel there is no extra M-pad copy.
    xp = jnp.pad(x, ((0, 0), (pad, pad), (pad, pad), (0, 0)))
    N, H, W, C = xp.shape
    OH = (H - kh) // stride + 1
    OW = (W - kw) // stride + 1
    cols = []
    for i in range(kh):
        for j in range(kw):
            cols.append(xp[:, i:i + stride * OH:stride, j:j + stride * OW:stride, :])
    patches = jnp.concatenate(cols, axis=-1)
    return patches.reshape(N * OH * OW, kh * kw * C), (N, OH, OW)


def init_params(key, input_nc=3, ndf=8, n_layers=3):
    """Deterministic parameter init mirroring the torch __init__ + weights_init."""
    # (cin, cout, stride, has_bn, lrelu)
    cfg = [(input_nc, ndf, 2, False, True)]
    nf_mult = 1
    for n in range(1, n_layers):
        nf_prev, nf_mult = nf_mult, min(2 ** n, 8)
        cfg.append((ndf * nf_prev, ndf * nf_mult, 2, True, True))
    nf_prev, nf_mult = nf_mult, min(2 ** n_layers, 8)
    cfg.append((ndf * nf_prev, ndf * nf_mult, 1, True, True))
    cfg.append((ndf * nf_mult, 1, 1, False, False))

    params = []
    for (cin, cout, stride, has_bn, lrelu) in cfg:
        key, k1, k2, k3 = jax.random.split(key, 4)
        # Conv weight ~ N(0, 0.02), torch OIHW layout -> matmul layout (KH*KW*Cin, OC)
        w = 0.02 * jax.random.normal(k1, (cout, cin, KW, KW), jnp.float32)
        w2 = jnp.transpose(w, (2, 3, 1, 0)).reshape(KW * KW * cin, cout)
        p = dict(w2=w2, w2p=jnp.pad(w2, ((0, 0), (0, OCP - cout))),
                 stride=stride, lrelu=lrelu, has_bn=has_bn, cin=cin, cout=cout)
        if has_bn:
            # torch: Conv2d(..., bias=False) when followed by BatchNorm2d.
            gamma = 1.0 + 0.02 * jax.random.normal(k2, (cout,), jnp.float32)
            beta = jnp.zeros((cout,), jnp.float32)
            p["gamma"] = gamma
            p["beta"] = beta
            p["gamma_p"] = jnp.pad(gamma, (0, OCP - cout)).reshape(1, OCP)
            p["beta_p"] = jnp.pad(beta, (0, OCP - cout)).reshape(1, OCP)
            p["b"] = jnp.zeros((cout,), jnp.float32)  # only for the XLA reference
        else:
            b = 0.02 * jax.random.normal(k3, (cout,), jnp.float32)
            p["b"] = b
            p["b_p"] = jnp.pad(b, (0, OCP - cout)).reshape(1, OCP)
        params.append(p)
    return params


def discriminator_forward(params, x_5d):
    """Matches NLayerDiscriminator_LIP.forward: to_2d -> get_lower_half -> main."""
    B, C, T, H, W = x_5d.shape
    # to_2d: torch.cat([x[:, :, i] for i in range(T)], dim=0)
    x = jnp.transpose(x_5d, (2, 0, 1, 3, 4)).reshape(T * B, C, H, W)
    # get_lower_half: x[:, :, H//2:]
    x = x[:, :, H // 2:, :]
    # NCHW -> NHWC for the conv kernels
    x = jnp.transpose(x, (0, 2, 3, 1)).astype(jnp.float32)

    for p in params:
        patches, (N, OH, OW) = extract_patches(x, KW, KW, p["stride"], 1)
        y = pallas_conv_layer(patches, p)           # (M, 128), lane-dense
        x = y[:, :p["cout"]].reshape(N, OH, OW, p["cout"])

    # back to NCHW like the torch module output
    return jnp.transpose(x, (0, 3, 1, 2))


def reference_forward(params, x_5d):
    """Pure-JAX (XLA) reference for correctness checking."""
    B, C, T, H, W = x_5d.shape
    x = jnp.transpose(x_5d, (2, 0, 1, 3, 4)).reshape(T * B, C, H, W)
    x = x[:, :, H // 2:, :].astype(jnp.float32)
    for p in params:
        w = p["w2"].reshape(KW, KW, p["cin"], p["cout"])  # HWIO
        y = jax.lax.conv_general_dilated(
            x, w, window_strides=(p["stride"], p["stride"]),
            padding=((1, 1), (1, 1)),
            dimension_numbers=("NCHW", "HWIO", "NCHW"),
            precision=jax.lax.Precision.HIGHEST)
        y = y + p["b"][None, :, None, None]
        if p["has_bn"]:
            mean = jnp.mean(y, axis=(0, 2, 3), keepdims=True)
            var = jnp.var(y, axis=(0, 2, 3), keepdims=True)
            y = (y - mean) / jnp.sqrt(var + BN_EPS)
            y = y * p["gamma"][None, :, None, None] + p["beta"][None, :, None, None]
        if p["lrelu"]:
            y = jnp.where(y >= 0, y, NEG_SLOPE * y)
        x = y
    return x


if __name__ == "__main__":
    key = jax.random.PRNGKey(0)
    kx, kp = jax.random.split(key)

    # Input: (B, C, T, H, W) face sequence, small but large enough for 5 convs
    # after the lower-half crop (H -> H//2).
    x = jax.random.normal(kx, (1, 3, 2, 64, 64), jnp.float32)
    params = init_params(kp, input_nc=3, ndf=8, n_layers=3)

    fwd = jax.jit(lambda inp: discriminator_forward(params, inp))
    out = jax.block_until_ready(fwd(x))

    ref = reference_forward(params, x)
    assert out.shape == ref.shape == (2, 1, 2, 6), (out.shape, ref.shape)
    np.testing.assert_allclose(np.asarray(out), np.asarray(ref), rtol=1e-3, atol=1e-4)

    print("KERNEL_OK")
</pallas_src>

<mosaic_0001>
module attributes {stable_mosaic.version = 11 : i64} {
  func.func @_conv_bias_act_kernel(%arg0: i32, %arg1: memref<1024x48xf32, #tpu.memory_space<vmem>>, %arg2: memref<48x128xf32, #tpu.memory_space<vmem>>, %arg3: memref<1x128xf32, #tpu.memory_space<vmem>>, %arg4: memref<1024x128xf32, #tpu.memory_space<vmem>>) attributes {dimension_semantics = [#tpu.dimension_semantics<arbitrary>], iteration_bounds = array<i64: 1>, scalar_prefetch = 0 : i64, scratch_operands = 0 : i64, tpu.core_type = #tpu.core_type<tc>, window_params = [{pipeline_mode = #tpu.pipeline_mode<synchronous>, transform_indices = @transform_0, window_bounds = array<i64: 1024, 48>}, {pipeline_mode = #tpu.pipeline_mode<synchronous>, transform_indices = @transform_1, window_bounds = array<i64: 48, 128>}, {pipeline_mode = #tpu.pipeline_mode<synchronous>, transform_indices = @transform_2, window_bounds = array<i64: 1, 128>}, {pipeline_mode = #tpu.pipeline_mode<synchronous>, transform_indices = @transform_3, window_bounds = array<i64: 1024, 128>}]} {
    %c0 = arith.constant 0 : index
    %c0_0 = arith.constant 0 : index
    %0 = vector.load %arg1[%c0, %c0_0] : memref<1024x48xf32, #tpu.memory_space<vmem>>, vector<1024x48xf32>
    %c0_1 = arith.constant 0 : index
    %c0_2 = arith.constant 0 : index
    %1 = vector.load %arg2[%c0_1, %c0_2] : memref<48x128xf32, #tpu.memory_space<vmem>>, vector<48x128xf32>
    %cst = arith.constant dense<0.000000e+00> : vector<1024x128xf32>
    %2 = tpu.matmul %0, %1, %cst {dimension_numbers = #tpu.dot_dimension_numbers<[1], [0], [0], [1], [0, 0, 1, 1], [], []>} : vector<1024x48xf32>, vector<48x128xf32>, vector<1024x128xf32> -> vector<1024x128xf32>
    %c0_3 = arith.constant 0 : index
    %c0_4 = arith.constant 0 : index
    %3 = vector.load %arg3[%c0_3, %c0_4] : memref<1x128xf32, #tpu.memory_space<vmem>>, vector<1x128xf32>
    %4 = vector.broadcast %3 : vector<1x128xf32> to vector<1024x128xf32>
    %5 = arith.addf %2, %4 : vector<1024x128xf32>
    %cst_5 = arith.constant 0.000000e+00 : f32
    %6 = vector.broadcast %cst_5 : f32 to vector<1024x128xf32>
    %7 = arith.cmpf oge, %5, %6 : vector<1024x128xf32>
    %cst_6 = arith.constant 2.000000e-01 : f32
    %8 = vector.broadcast %cst_6 : f32 to vector<1024x128xf32>
    %9 = arith.mulf %8, %5 : vector<1024x128xf32>
    %10 = arith.select %7, %5, %9 : vector<1024x128xi1>, vector<1024x128xf32>
    %c0_7 = arith.constant 0 : index
    %c0_8 = arith.constant 0 : index
    %11 = vector.load %arg4[%c0_7, %c0_8] : memref<1024x128xf32, #tpu.memory_space<vmem>>, vector<1024x128xf32>
    tpu.vector_store %arg4[%c0_7, %c0_8], %10 {strides = array<i32>} : memref<1024x128xf32, #tpu.memory_space<vmem>>, vector<1024x128xf32>,
    return
  }
  func.func @transform_0(%arg0: i32) -> (i32, i32) {
    %c0_i32 = arith.constant 0 : i32
    %c0_i32_0 = arith.constant 0 : i32
    %c0_i32_1 = arith.constant 0 : i32
    return %c0_i32, %c0_i32_0 : i32, i32
  }
  func.func @transform_1(%arg0: i32) -> (i32, i32) {
    %c0_i32 = arith.constant 0 : i32
    %c0_i32_0 = arith.constant 0 : i32
    %c0_i32_1 = arith.constant 0 : i32
    return %c0_i32, %c0_i32_0 : i32, i32
  }
  func.func @transform_2(%arg0: i32) -> (i32, i32) {
    %c0_i32 = arith.constant 0 : i32
    %c0_i32_0 = arith.constant 0 : i32
    %c0_i32_1 = arith.constant 0 : i32
    return %c0_i32, %c0_i32_0 : i32, i32
  }
  func.func @transform_3(%arg0: i32) -> (i32, i32) {
    %c0_i32 = arith.constant 0 : i32
    %c0_i32_0 = arith.constant 0 : i32
    %c0_i32_1 = arith.constant 0 : i32
    return %c0_i32, %c0_i32_0 : i32, i32
  }
}

module attributes {stable_mosaic.version = 11 : i64} {
  func.func @_conv_bn_lrelu_kernel(%arg0: i32, %arg1: memref<256x128xf32, #tpu.memory_space<vmem>>, %arg2: memref<128x128xf32, #tpu.memory_space<vmem>>, %arg3: memref<1x128xf32, #tpu.memory_space<vmem>>, %arg4: memref<1x128xf32, #tpu.memory_space<vmem>>, %arg5: memref<256x128xf32, #tpu.memory_space<vmem>>) attributes {dimension_semantics = [#tpu.dimension_semantics<arbitrary>], iteration_bounds = array<i64: 1>, scalar_prefetch = 0 : i64, scratch_operands = 0 : i64, tpu.core_type = #tpu.core_type<tc>, window_params = [{pipeline_mode = #tpu.pipeline_mode<synchronous>, transform_indices = @transform_0, window_bounds = array<i64: 256, 128>}, {pipeline_mode = #tpu.pipeline_mode<synchronous>, transform_indices = @transform_1, window_bounds = array<i64: 128, 128>}, {pipeline_mode = #tpu.pipeline_mode<synchronous>, transform_indices = @transform_2, window_bounds = array<i64: 1, 128>}, {pipeline_mode = #tpu.pipeline_mode<synchronous>, transform_indices = @transform_3, window_bounds = array<i64: 1, 128>}, {pipeline_mode = #tpu.pipeline_mode<synchronous>, transform_indices = @transform_4, window_bounds = array<i64: 256, 128>}]} {
    %c0 = arith.constant 0 : index
    %c0_0 = arith.constant 0 : index
    %0 = vector.load %arg1[%c0, %c0_0] : memref<256x128xf32, #tpu.memory_space<vmem>>, vector<256x128xf32>
    %c0_1 = arith.constant 0 : index
    %c0_2 = arith.constant 0 : index
    %1 = vector.load %arg2[%c0_1, %c0_2] : memref<128x128xf32, #tpu.memory_space<vmem>>, vector<128x128xf32>
    %cst = arith.constant dense<0.000000e+00> : vector<256x128xf32>
    %2 = tpu.matmul %0, %1, %cst {dimension_numbers = #tpu.dot_dimension_numbers<[1], [0], [0], [1], [0, 0, 1, 1], [], []>} : vector<256x128xf32>, vector<128x128xf32>, vector<256x128xf32> -> vector<256x128xf32>
    %cst_3 = arith.constant dense<0.000000e+00> : vector<128xf32>
    %3 = vector.multi_reduction <add>, %2, %cst_3 [0] : vector<256x128xf32> to vector<128xf32>
    %4 = vector.shape_cast %3 : vector<128xf32> to vector<1x128xf32>
    %cst_4 = arith.constant 3.906250e-03 : f32
    %5 = vector.broadcast %cst_4 : f32 to vector<1x128xf32>
    %6 = arith.mulf %4, %5 : vector<1x128xf32>
    %7 = vector.broadcast %6 : vector<1x128xf32> to vector<256x128xf32>
    %8 = arith.subf %2, %7 : vector<256x128xf32>
    %9 = arith.mulf %8, %8 : vector<256x128xf32>
    %cst_5 = arith.constant dense<0.000000e+00> : vector<128xf32>
    %10 = vector.multi_reduction <add>, %9, %cst_5 [0] : vector<256x128xf32> to vector<128xf32>
    %11 = vector.shape_cast %10 : vector<128xf32> to vector<1x128xf32>
    %cst_6 = arith.constant 3.906250e-03 : f32
    %12 = vector.broadcast %cst_6 : f32 to vector<1x128xf32>
    %13 = arith.mulf %11, %12 : vector<1x128xf32>
    %cst_7 = arith.constant 9.99999974E-6 : f32
    %14 = vector.broadcast %cst_7 : f32 to vector<1x128xf32>
    %15 = arith.addf %13, %14 : vector<1x128xf32>
    %16 = math.rsqrt %15 : vector<1x128xf32>
    %c0_8 = arith.constant 0 : index
    %c0_9 = arith.constant 0 : index
    %17 = vector.load %arg3[%c0_8, %c0_9] : memref<1x128xf32, #tpu.memory_space<vmem>>, vector<1x128xf32>
    %18 = arith.mulf %16, %17 : vector<1x128xf32>
    %c0_10 = arith.constant 0 : index
    %c0_11 = arith.constant 0 : index
    %19 = vector.load %arg4[%c0_10, %c0_11] : memref<1x128xf32, #tpu.memory_space<vmem>>, vector<1x128xf32>
    %20 = arith.mulf %6, %18 : vector<1x128xf32>
    %21 = arith.subf %19, %20 : vector<1x128xf32>
    %22 = vector.broadcast %18 : vector<1x128xf32> to vector<256x128xf32>
    %23 = arith.mulf %2, %22 : vector<256x128xf32>
    %24 = vector.broadcast %21 : vector<1x128xf32> to vector<256x128xf32>
    %25 = arith.addf %23, %24 : vector<256x128xf32>
    %cst_12 = arith.constant 0.000000e+00 : f32
    %26 = vector.broadcast %cst_12 : f32 to vector<256x128xf32>
    %27 = arith.cmpf oge, %25, %26 : vector<256x128xf32>
    %cst_13 = arith.constant 2.000000e-01 : f32
    %28 = vector.broadcast %cst_13 : f32 to vector<256x128xf32>
    %29 = arith.mulf %28, %25 : vector<256x128xf32>
    %30 = arith.select %27, %25, %29 : vector<256x128xi1>, vector<256x128xf32>
    %c0_14 = arith.constant 0 : index
    %c0_15 = arith.constant 0 : index
    %31 = vector.load %arg5[%c0_14, %c0_15] : memref<256x128xf32, #tpu.memory_space<vmem>>, vector<256x128xf32>
    tpu.vector_store %arg5[%c0_14, %c0_15], %30 {strides = array<i32>} : memref<256x128xf32, #tpu.memory_space<vmem>>, vector<256x128xf32>,
    return
  }
  func.func @transform_0(%arg0: i32) -> (i32, i32) {
    %c0_i32 = arith.constant 0 : i32
    %c0_i32_0 = arith.constant 0 : i32
    %c0_i32_1 = arith.constant 0 : i32
    return %c0_i32, %c0_i32_0 : i32, i32
  }
  func.func @transform_1(%arg0: i32) -> (i32, i32) {
    %c0_i32 = arith.constant 0 : i32
    %c0_i32_0 = arith.constant 0 : i32
    %c0_i32_1 = arith.constant 0 : i32
    return %c0_i32, %c0_i32_0 : i32, i32
  }
  func.func @transform_2(%arg0: i32) -> (i32, i32) {
    %c0_i32 = arith.constant 0 : i32
    %c0_i32_0 = arith.constant 0 : i32
    %c0_i32_1 = arith.constant 0 : i32
    return %c0_i32, %c0_i32_0 : i32, i32
  }
  func.func @transform_3(%arg0: i32) -> (i32, i32) {
    %c0_i32 = arith.constant 0 : i32
    %c0_i32_0 = arith.constant 0 : i32
    %c0_i32_1 = arith.constant 0 : i32
    return %c0_i32, %c0_i32_0 : i32, i32
  }
  func.func @transform_4(%arg0: i32) -> (i32, i32) {
    %c0_i32 = arith.constant 0 : i32
    %c0_i32_0 = arith.constant 0 : i32
    %c0_i32_1 = arith.constant 0 : i32
    return %c0_i32, %c0_i32_0 : i32, i32
  }
}

module attributes {stable_mosaic.version = 11 : i64} {
  func.func @_conv_bn_lrelu_kernel(%arg0: i32, %arg1: memref<64x256xf32, #tpu.memory_space<vmem>>, %arg2: memref<256x128xf32, #tpu.memory_space<vmem>>, %arg3: memref<1x128xf32, #tpu.memory_space<vmem>>, %arg4: memref<1x128xf32, #tpu.memory_space<vmem>>, %arg5: memref<64x128xf32, #tpu.memory_space<vmem>>) attributes {dimension_semantics = [#tpu.dimension_semantics<arbitrary>], iteration_bounds = array<i64: 1>, scalar_prefetch = 0 : i64, scratch_operands = 0 : i64, tpu.core_type = #tpu.core_type<tc>, window_params = [{pipeline_mode = #tpu.pipeline_mode<synchronous>, transform_indices = @transform_0, window_bounds = array<i64: 64, 256>}, {pipeline_mode = #tpu.pipeline_mode<synchronous>, transform_indices = @transform_1, window_bounds = array<i64: 256, 128>}, {pipeline_mode = #tpu.pipeline_mode<synchronous>, transform_indices = @transform_2, window_bounds = array<i64: 1, 128>}, {pipeline_mode = #tpu.pipeline_mode<synchronous>, transform_indices = @transform_3, window_bounds = array<i64: 1, 128>}, {pipeline_mode = #tpu.pipeline_mode<synchronous>, transform_indices = @transform_4, window_bounds = array<i64: 64, 128>}]} {
    %c0 = arith.constant 0 : index
    %c0_0 = arith.constant 0 : index
    %0 = vector.load %arg1[%c0, %c0_0] : memref<64x256xf32, #tpu.memory_space<vmem>>, vector<64x256xf32>
    %c0_1 = arith.constant 0 : index
    %c0_2 = arith.constant 0 : index
    %1 = vector.load %arg2[%c0_1, %c0_2] : memref<256x128xf32, #tpu.memory_space<vmem>>, vector<256x128xf32>
    %cst = arith.constant dense<0.000000e+00> : vector<64x128xf32>
    %2 = tpu.matmul %0, %1, %cst {dimension_numbers = #tpu.dot_dimension_numbers<[1], [0], [0], [1], [0, 0, 1, 1], [], []>} : vector<64x256xf32>, vector<256x128xf32>, vector<64x128xf32> -> vector<64x128xf32>
    %cst_3 = arith.constant dense<0.000000e+00> : vector<128xf32>
    %3 = vector.multi_reduction <add>, %2, %cst_3 [0] : vector<64x128xf32> to vector<128xf32>
    %4 = vector.shape_cast %3 : vector<128xf32> to vector<1x128xf32>
    %cst_4 = arith.constant 1.562500e-02 : f32
    %5 = vector.broadcast %cst_4 : f32 to vector<1x128xf32>
    %6 = arith.mulf %4, %5 : vector<1x128xf32>
    %7 = vector.broadcast %6 : vector<1x128xf32> to vector<64x128xf32>
    %8 = arith.subf %2, %7 : vector<64x128xf32>
    %9 = arith.mulf %8, %8 : vector<64x128xf32>
    %cst_5 = arith.constant dense<0.000000e+00> : vector<128xf32>
    %10 = vector.multi_reduction <add>, %9, %cst_5 [0] : vector<64x128xf32> to vector<128xf32>
    %11 = vector.shape_cast %10 : vector<128xf32> to vector<1x128xf32>
    %cst_6 = arith.constant 1.562500e-02 : f32
    %12 = vector.broadcast %cst_6 : f32 to vector<1x128xf32>
    %13 = arith.mulf %11, %12 : vector<1x128xf32>
    %cst_7 = arith.constant 9.99999974E-6 : f32
    %14 = vector.broadcast %cst_7 : f32 to vector<1x128xf32>
    %15 = arith.addf %13, %14 : vector<1x128xf32>
    %16 = math.rsqrt %15 : vector<1x128xf32>
    %c0_8 = arith.constant 0 : index
    %c0_9 = arith.constant 0 : index
    %17 = vector.load %arg3[%c0_8, %c0_9] : memref<1x128xf32, #tpu.memory_space<vmem>>, vector<1x128xf32>
    %18 = arith.mulf %16, %17 : vector<1x128xf32>
    %c0_10 = arith.constant 0 : index
    %c0_11 = arith.constant 0 : index
    %19 = vector.load %arg4[%c0_10, %c0_11] : memref<1x128xf32, #tpu.memory_space<vmem>>, vector<1x128xf32>
    %20 = arith.mulf %6, %18 : vector<1x128xf32>
    %21 = arith.subf %19, %20 : vector<1x128xf32>
    %22 = vector.broadcast %18 : vector<1x128xf32> to vector<64x128xf32>
    %23 = arith.mulf %2, %22 : vector<64x128xf32>
    %24 = vector.broadcast %21 : vector<1x128xf32> to vector<64x128xf32>
    %25 = arith.addf %23, %24 : vector<64x128xf32>
    %cst_12 = arith.constant 0.000000e+00 : f32
    %26 = vector.broadcast %cst_12 : f32 to vector<64x128xf32>
    %27 = arith.cmpf oge, %25, %26 : vector<64x128xf32>
    %cst_13 = arith.constant 2.000000e-01 : f32
    %28 = vector.broadcast %cst_13 : f32 to vector<64x128xf32>
    %29 = arith.mulf %28, %25 : vector<64x128xf32>
    %30 = arith.select %27, %25, %29 : vector<64x128xi1>, vector<64x128xf32>
    %c0_14 = arith.constant 0 : index
    %c0_15 = arith.constant 0 : index
    %31 = vector.load %arg5[%c0_14, %c0_15] : memref<64x128xf32, #tpu.memory_space<vmem>>, vector<64x128xf32>
    tpu.vector_store %arg5[%c0_14, %c0_15], %30 {strides = array<i32>} : memref<64x128xf32, #tpu.memory_space<vmem>>, vector<64x128xf32>,
    return
  }
  func.func @transform_0(%arg0: i32) -> (i32, i32) {
    %c0_i32 = arith.constant 0 : i32
    %c0_i32_0 = arith.constant 0 : i32
    %c0_i32_1 = arith.constant 0 : i32
    return %c0_i32, %c0_i32_0 : i32, i32
  }
  func.func @transform_1(%arg0: i32) -> (i32, i32) {
    %c0_i32 = arith.constant 0 : i32
    %c0_i32_0 = arith.constant 0 : i32
    %c0_i32_1 = arith.constant 0 : i32
    return %c0_i32, %c0_i32_0 : i32, i32
  }
  func.func @transform_2(%arg0: i32) -> (i32, i32) {
    %c0_i32 = arith.constant 0 : i32
    %c0_i32_0 = arith.constant 0 : i32
    %c0_i32_1 = arith.constant 0 : i32
    return %c0_i32, %c0_i32_0 : i32, i32
  }
  func.func @transform_3(%arg0: i32) -> (i32, i32) {
    %c0_i32 = arith.constant 0 : i32
    %c0_i32_0 = arith.constant 0 : i32
    %c0_i32_1 = arith.constant 0 : i32
    return %c0_i32, %c0_i32_0 : i32, i32
  }
  func.func @transform_4(%arg0: i32) -> (i32, i32) {
    %c0_i32 = arith.constant 0 : i32
    %c0_i32_0 = arith.constant 0 : i32
    %c0_i32_1 = arith.constant 0 : i32
    return %c0_i32, %c0_i32_0 : i32, i32
  }
}

module attributes {stable_mosaic.version = 11 : i64} {
  func.func @_conv_bn_lrelu_kernel(%arg0: i32, %arg1: memref<42x512xf32, #tpu.memory_space<vmem>>, %arg2: memref<512x128xf32, #tpu.memory_space<vmem>>, %arg3: memref<1x128xf32, #tpu.memory_space<vmem>>, %arg4: memref<1x128xf32, #tpu.memory_space<vmem>>, %arg5: memref<42x128xf32, #tpu.memory_space<vmem>>) attributes {dimension_semantics = [#tpu.dimension_semantics<arbitrary>], iteration_bounds = array<i64: 1>, scalar_prefetch = 0 : i64, scratch_operands = 0 : i64, tpu.core_type = #tpu.core_type<tc>, window_params = [{pipeline_mode = #tpu.pipeline_mode<synchronous>, transform_indices = @transform_0, window_bounds = array<i64: 42, 512>}, {pipeline_mode = #tpu.pipeline_mode<synchronous>, transform_indices = @transform_1, window_bounds = array<i64: 512, 128>}, {pipeline_mode = #tpu.pipeline_mode<synchronous>, transform_indices = @transform_2, window_bounds = array<i64: 1, 128>}, {pipeline_mode = #tpu.pipeline_mode<synchronous>, transform_indices = @transform_3, window_bounds = array<i64: 1, 128>}, {pipeline_mode = #tpu.pipeline_mode<synchronous>, transform_indices = @transform_4, window_bounds = array<i64: 42, 128>}]} {
    %c0 = arith.constant 0 : index
    %c0_0 = arith.constant 0 : index
    %0 = vector.load %arg1[%c0, %c0_0] : memref<42x512xf32, #tpu.memory_space<vmem>>, vector<42x512xf32>
    %c0_1 = arith.constant 0 : index
    %c0_2 = arith.constant 0 : index
    %1 = vector.load %arg2[%c0_1, %c0_2] : memref<512x128xf32, #tpu.memory_space<vmem>>, vector<512x128xf32>
    %cst = arith.constant dense<0.000000e+00> : vector<42x128xf32>
    %2 = tpu.matmul %0, %1, %cst {dimension_numbers = #tpu.dot_dimension_numbers<[1], [0], [0], [1], [0, 0, 1, 1], [], []>} : vector<42x512xf32>, vector<512x128xf32>, vector<42x128xf32> -> vector<42x128xf32>
    %cst_3 = arith.constant dense<0.000000e+00> : vector<128xf32>
    %3 = vector.multi_reduction <add>, %2, %cst_3 [0] : vector<42x128xf32> to vector<128xf32>
    %4 = vector.shape_cast %3 : vector<128xf32> to vector<1x128xf32>
    %cst_4 = arith.constant 0.0238095243 : f32
    %5 = vector.broadcast %cst_4 : f32 to vector<1x128xf32>
    %6 = arith.mulf %4, %5 : vector<1x128xf32>
    %7 = vector.broadcast %6 : vector<1x128xf32> to vector<42x128xf32>
    %8 = arith.subf %2, %7 : vector<42x128xf32>
    %9 = arith.mulf %8, %8 : vector<42x128xf32>
    %cst_5 = arith.constant dense<0.000000e+00> : vector<128xf32>
    %10 = vector.multi_reduction <add>, %9, %cst_5 [0] : vector<42x128xf32> to vector<128xf32>
    %11 = vector.shape_cast %10 : vector<128xf32> to vector<1x128xf32>
    %cst_6 = arith.constant 0.0238095243 : f32
    %12 = vector.broadcast %cst_6 : f32 to vector<1x128xf32>
    %13 = arith.mulf %11, %12 : vector<1x128xf32>
    %cst_7 = arith.constant 9.99999974E-6 : f32
    %14 = vector.broadcast %cst_7 : f32 to vector<1x128xf32>
    %15 = arith.addf %13, %14 : vector<1x128xf32>
    %16 = math.rsqrt %15 : vector<1x128xf32>
    %c0_8 = arith.constant 0 : index
    %c0_9 = arith.constant 0 : index
    %17 = vector.load %arg3[%c0_8, %c0_9] : memref<1x128xf32, #tpu.memory_space<vmem>>, vector<1x128xf32>
    %18 = arith.mulf %16, %17 : vector<1x128xf32>
    %c0_10 = arith.constant 0 : index
    %c0_11 = arith.constant 0 : index
    %19 = vector.load %arg4[%c0_10, %c0_11] : memref<1x128xf32, #tpu.memory_space<vmem>>, vector<1x128xf32>
    %20 = arith.mulf %6, %18 : vector<1x128xf32>
    %21 = arith.subf %19, %20 : vector<1x128xf32>
    %22 = vector.broadcast %18 : vector<1x128xf32> to vector<42x128xf32>
    %23 = arith.mulf %2, %22 : vector<42x128xf32>
    %24 = vector.broadcast %21 : vector<1x128xf32> to vector<42x128xf32>
    %25 = arith.addf %23, %24 : vector<42x128xf32>
    %cst_12 = arith.constant 0.000000e+00 : f32
    %26 = vector.broadcast %cst_12 : f32 to vector<42x128xf32>
    %27 = arith.cmpf oge, %25, %26 : vector<42x128xf32>
    %cst_13 = arith.constant 2.000000e-01 : f32
    %28 = vector.broadcast %cst_13 : f32 to vector<42x128xf32>
    %29 = arith.mulf %28, %25 : vector<42x128xf32>
    %30 = arith.select %27, %25, %29 : vector<42x128xi1>, vector<42x128xf32>
    %c0_14 = arith.constant 0 : index
    %c0_15 = arith.constant 0 : index
    %31 = vector.load %arg5[%c0_14, %c0_15] : memref<42x128xf32, #tpu.memory_space<vmem>>, vector<42x128xf32>
    tpu.vector_store %arg5[%c0_14, %c0_15], %30 {strides = array<i32>} : memref<42x128xf32, #tpu.memory_space<vmem>>, vector<42x128xf32>,
    return
  }
  func.func @transform_0(%arg0: i32) -> (i32, i32) {
    %c0_i32 = arith.constant 0 : i32
    %c0_i32_0 = arith.constant 0 : i32
    %c0_i32_1 = arith.constant 0 : i32
    return %c0_i32, %c0_i32_0 : i32, i32
  }
  func.func @transform_1(%arg0: i32) -> (i32, i32) {
    %c0_i32 = arith.constant 0 : i32
    %c0_i32_0 = arith.constant 0 : i32
    %c0_i32_1 = arith.constant 0 : i32
    return %c0_i32, %c0_i32_0 : i32, i32
  }
  func.func @transform_2(%arg0: i32) -> (i32, i32) {
    %c0_i32 = arith.constant 0 : i32
    %c0_i32_0 = arith.constant 0 : i32
    %c0_i32_1 = arith.constant 0 : i32
    return %c0_i32, %c0_i32_0 : i32, i32
  }
  func.func @transform_3(%arg0: i32) -> (i32, i32) {
    %c0_i32 = arith.constant 0 : i32
    %c0_i32_0 = arith.constant 0 : i32
    %c0_i32_1 = arith.constant 0 : i32
    return %c0_i32, %c0_i32_0 : i32, i32
  }
  func.func @transform_4(%arg0: i32) -> (i32, i32) {
    %c0_i32 = arith.constant 0 : i32
    %c0_i32_0 = arith.constant 0 : i32
    %c0_i32_1 = arith.constant 0 : i32
    return %c0_i32, %c0_i32_0 : i32, i32
  }
}

module attributes {stable_mosaic.version = 11 : i64} {
  func.func @_conv_bias_act_kernel(%arg0: i32, %arg1: memref<24x1024xf32, #tpu.memory_space<vmem>>, %arg2: memref<1024x128xf32, #tpu.memory_space<vmem>>, %arg3: memref<1x128xf32, #tpu.memory_space<vmem>>, %arg4: memref<24x128xf32, #tpu.memory_space<vmem>>) attributes {dimension_semantics = [#tpu.dimension_semantics<arbitrary>], iteration_bounds = array<i64: 1>, scalar_prefetch = 0 : i64, scratch_operands = 0 : i64, tpu.core_type = #tpu.core_type<tc>, window_params = [{pipeline_mode = #tpu.pipeline_mode<synchronous>, transform_indices = @transform_0, window_bounds = array<i64: 24, 1024>}, {pipeline_mode = #tpu.pipeline_mode<synchronous>, transform_indices = @transform_1, window_bounds = array<i64: 1024, 128>}, {pipeline_mode = #tpu.pipeline_mode<synchronous>, transform_indices = @transform_2, window_bounds = array<i64: 1, 128>}, {pipeline_mode = #tpu.pipeline_mode<synchronous>, transform_indices = @transform_3, window_bounds = array<i64: 24, 128>}]} {
    %c0 = arith.constant 0 : index
    %c0_0 = arith.constant 0 : index
    %0 = vector.load %arg1[%c0, %c0_0] : memref<24x1024xf32, #tpu.memory_space<vmem>>, vector<24x1024xf32>
    %c0_1 = arith.constant 0 : index
    %c0_2 = arith.constant 0 : index
    %1 = vector.load %arg2[%c0_1, %c0_2] : memref<1024x128xf32, #tpu.memory_space<vmem>>, vector<1024x128xf32>
    %cst = arith.constant dense<0.000000e+00> : vector<24x128xf32>
    %2 = tpu.matmul %0, %1, %cst {dimension_numbers = #tpu.dot_dimension_numbers<[1], [0], [0], [1], [0, 0, 1, 1], [], []>} : vector<24x1024xf32>, vector<1024x128xf32>, vector<24x128xf32> -> vector<24x128xf32>
    %c0_3 = arith.constant 0 : index
    %c0_4 = arith.constant 0 : index
    %3 = vector.load %arg3[%c0_3, %c0_4] : memref<1x128xf32, #tpu.memory_space<vmem>>, vector<1x128xf32>
    %4 = vector.broadcast %3 : vector<1x128xf32> to vector<24x128xf32>
    %5 = arith.addf %2, %4 : vector<24x128xf32>
    %c0_5 = arith.constant 0 : index
    %c0_6 = arith.constant 0 : index
    %6 = vector.load %arg4[%c0_5, %c0_6] : memref<24x128xf32, #tpu.memory_space<vmem>>, vector<24x128xf32>
    tpu.vector_store %arg4[%c0_5, %c0_6], %5 {strides = array<i32>} : memref<24x128xf32, #tpu.memory_space<vmem>>, vector<24x128xf32>,
    return
  }
  func.func @transform_0(%arg0: i32) -> (i32, i32) {
    %c0_i32 = arith.constant 0 : i32
    %c0_i32_0 = arith.constant 0 : i32
    %c0_i32_1 = arith.constant 0 : i32
    return %c0_i32, %c0_i32_0 : i32, i32
  }
  func.func @transform_1(%arg0: i32) -> (i32, i32) {
    %c0_i32 = arith.constant 0 : i32
    %c0_i32_0 = arith.constant 0 : i32
    %c0_i32_1 = arith.constant 0 : i32
    return %c0_i32, %c0_i32_0 : i32, i32
  }
  func.func @transform_2(%arg0: i32) -> (i32, i32) {
    %c0_i32 = arith.constant 0 : i32
    %c0_i32_0 = arith.constant 0 : i32
    %c0_i32_1 = arith.constant 0 : i32
    return %c0_i32, %c0_i32_0 : i32, i32
  }
  func.func @transform_3(%arg0: i32) -> (i32, i32) {
    %c0_i32 = arith.constant 0 : i32
    %c0_i32_0 = arith.constant 0 : i32
    %c0_i32_1 = arith.constant 0 : i32
    return %c0_i32, %c0_i32_0 : i32, i32
  }
}

</mosaic_0001>

<bundles_post_ra>
// kernel: _lambda_.5
= control target key start
LH: loop header
LB: loop body
LE: loop exit
PB: predicated region body
PF: predicated region fallthrough
CT: control target
= control target key end

     0   :  { %vm155_vm0 = vcmask 392192   ;;  %s3319_s1 = inlined_call_operand.vmem [shape: f32[48,128], index: 1, kind: input, shape index: {}]   ;;  %s3320_s0 = inlined_call_operand.vmem [shape: f32[1024,48], index: 0, kind: input, shape index: {}]   ;;  %s3321_s2 = inlined_call_operand.vmem [shape: f32[1,128], index: 2, kind: input, shape index: {}]   ;;  %s3322_s3 = inlined_call_operand.vmem [shape: f32[1024,128], index: 3, kind: output, shape index: {}]  }
   0x1   :  { %v142_v0 = vld [vmem:[%s3319_s1] sm:$0xff]  ;;  %v143_v1 = vld [vmem:[%s3319_s1 + $0x8] sm:$0xff]  ;;  %v144_v2 = vld [vmem:[%s3319_s1 + $0x10] sm:$0xff] }
   0x2   :  { %v2228_v3 = vpack.c.bf16 %v143_v1, %v142_v0  ;;  %v145_v4 = vld [vmem:[%s3319_s1 + $0x18] sm:$0xff]  ;;  %v146_v6 = vld [vmem:[%s3319_s1 + $0x20] sm:$0xff]  ;;  %v147_v7 = vld [vmem:[%s3319_s1 + $0x28] sm:$0xff] }
   0x3   :  { %v2232_v5 = vpack.c.bf16 %v145_v4, %v144_v2  ;;  %v14_v8 = vld [vmem:[%s3320_s0] sm:$0xff]  ;;  %v2236_v10 = vpack.c.bf16 %v147_v7, %v146_v6  ;;  %v15_v11 = vld [vmem:[%s3320_s0 + $0x8] sm:$0xff]  ;;  %v16_v13 = vld [vmem:[%s3320_s0 + $0x10] sm:$0xff] }
   0x4   :  { %2229 = vmatprep.subr.bf16.mxu0 %v2228_v3  ;;  %2240 = vmatprep.subr.bf16.mxu1 %v2228_v3  ;;  %v78_v9 = vld [vmem:[%s3320_s0 + $0x200] sm:$0xff]  ;;  %v79_v12 = vld [vmem:[%s3320_s0 + $0x208] sm:$0xff]  ;;  %v80_v14 = vld [vmem:[%s3320_s0 + $0x210] sm:$0xff] }
   0x5   :  { %2231 = vmatpush3.bf16.msra.mxu0 %v2228_v3  ;;  %2243 = vmatpush3.bf16.msra.mxu1 %v2228_v3  ;;  %v17_v15 = vld [vmem:[%s3320_s0 + $0x18] sm:$0xff]  ;;  %v18_v17 = vld [vmem:[%s3320_s0 + $0x20] sm:$0xff]  ;;  %v19_v19 = vld [vmem:[%s3320_s0 + $0x28] sm:$0xff] }
   0x6   :  { %2233 = vmatprep.subr.bf16.mxu0 %v2232_v5  ;;  %2241 = vmatprep.subr.bf16.mxu1 %v2232_v5  ;;  %v81_v16 = vld [vmem:[%s3320_s0 + $0x218] sm:$0xff]  ;;  %v82_v18 = vld [vmem:[%s3320_s0 + $0x220] sm:$0xff]  ;;  %v83_v20 = vld [vmem:[%s3320_s0 + $0x228] sm:$0xff] }
   0x7   :  { %2036 = vmatprep.mubr.msk.f32.mxu0 %vm155_vm0, %v14_v8  ;;  %2132 = vmatprep.mubr.msk.f32.mxu1 %vm155_vm0, %v78_v9  ;;  %v20_v21 = vld [vmem:[%s3320_s0 + $0x30] sm:$0xff]  ;;  %v21_v23 = vld [vmem:[%s3320_s0 + $0x38] sm:$0xff]  ;;  %v22_v25 = vld [vmem:[%s3320_s0 + $0x40] sm:$0xff] }
   0x8   :  { %v84_v22 = vld [vmem:[%s3320_s0 + $0x230] sm:$0xff]  ;;  %v85_v24 = vld [vmem:[%s3320_s0 + $0x238] sm:$0xff]  ;;  %v86_v26 = vld [vmem:[%s3320_s0 + $0x240] sm:$0xff] }
   0x9   :  { %2235 = vmatpush3.bf16.msra.mxu0 %v2232_v5  ;;  %2244 = vmatpush3.bf16.msra.mxu1 %v2232_v5  ;;  %v23_v27 = vld [vmem:[%s3320_s0 + $0x48] sm:$0xff]  ;;  %v24_v29 = vld [vmem:[%s3320_s0 + $0x50] sm:$0xff]  ;;  %v25_v31 = vld [vmem:[%s3320_s0 + $0x58] sm:$0xff] }
   0xa   :  { %2237 = vmatprep.subr.bf16.mxu0 %v2236_v10  ;;  %2242 = vmatprep.subr.bf16.mxu1 %v2236_v10  ;;  %v87_v28 = vld [vmem:[%s3320_s0 + $0x248] sm:$0xff]  ;;  %v88_v30 = vld [vmem:[%s3320_s0 + $0x250] sm:$0xff]  ;;  %v89_v32 = vld [vmem:[%s3320_s0 + $0x258] sm:$0xff] }
   0xb   :  { %v26_v33 = vld [vmem:[%s3320_s0 + $0x60] sm:$0xff]  ;;  %v27_v35 = vld [vmem:[%s3320_s0 + $0x68] sm:$0xff]  ;;  %v28_v37 = vld [vmem:[%s3320_s0 + $0x70] sm:$0xff] }
   0xc   :  { %v90_v34 = vld [vmem:[%s3320_s0 + $0x260] sm:$0xff]  ;;  %v91_v36 = vld [vmem:[%s3320_s0 + $0x268] sm:$0xff]  ;;  %v92_v38 = vld [vmem:[%s3320_s0 + $0x270] sm:$0xff] }
   0xd   :  { %2239 = vmatpush3.bf16.msra.mxu0 %v2236_v10  ;;  %2245 = vmatpush3.bf16.msra.mxu1 %v2236_v10  ;;  %v29_v39 = vld [vmem:[%s3320_s0 + $0x78] sm:$0xff]  ;;  %v30_v41 = vld [vmem:[%s3320_s0 + $0x80] sm:$0xff]  ;;  %v31_v43 = vld [vmem:[%s3320_s0 + $0x88] sm:$0xff] }
   0xe   :  { %v93_v40 = vld [vmem:[%s3320_s0 + $0x278] sm:$0xff]  ;;  %v94_v42 = vld [vmem:[%s3320_s0 + $0x280] sm:$0xff]  ;;  %v95_v44 = vld [vmem:[%s3320_s0 + $0x288] sm:$0xff] }
   0xf   :  { %v32_v45 = vld [vmem:[%s3320_s0 + $0x90] sm:$0xff]  ;;  %v33_v47 = vld [vmem:[%s3320_s0 + $0x98] sm:$0xff]  ;;  %v34_v49 = vld [vmem:[%s3320_s0 + $0xa0] sm:$0xff] }
  0x10   :  { %2037 = vmatmul.mubr.msk.f32.vlgmr.msra.gmra.mrb[0].mxu0 %vm155_vm0, %v15_v11  ;;  %2133 = vmatmul.mubr.msk.f32.vlgmr.msra.gmra.mrb[0].mxu1 %vm155_vm0, %v79_v12  ;;  %v96_v46 = vld [vmem:[%s3320_s0 + $0x290] sm:$0xff]  ;;  %v97_v48 = vld [vmem:[%s3320_s0 + $0x298] sm:$0xff]  ;;  %v98_v50 = vld [vmem:[%s3320_s0 + $0x2a0] sm:$0xff] }
  0x11   :  { %2039 = vmatprep.mubr.msk.f32.mxu0 %vm155_vm0, %v16_v13  ;;  %2135 = vmatprep.mubr.msk.f32.mxu1 %vm155_vm0, %v80_v14  ;;  %v35_v51 = vld [vmem:[%s3320_s0 + $0xa8] sm:$0xff]  ;;  %v36_v53 = vld [vmem:[%s3320_s0 + $0xb0] sm:$0xff]  ;;  %v37_v55 = vld [vmem:[%s3320_s0 + $0xb8] sm:$0xff] }
  0x12   :  { %v99_v52 = vld [vmem:[%s3320_s0 + $0x2a8] sm:$0xff]  ;;  %v100_v54 = vld [vmem:[%s3320_s0 + $0x2b0] sm:$0xff]  ;;  %v101_v56 = vld [vmem:[%s3320_s0 + $0x2b8] sm:$0xff] }
  0x13   :  { %v38_v57 = vld [vmem:[%s3320_s0 + $0xc0] sm:$0xff]  ;;  %v39_v59 = vld [vmem:[%s3320_s0 + $0xc8] sm:$0xff]  ;;  %v40_v61 = vld [vmem:[%s3320_s0 + $0xd0] sm:$0xff] }
  0x14   :  { %2040 = vmatmul.mubr.msk.f32.gmra.mrb[2].mxu0 %vm155_vm0, %v17_v15  ;;  %2136 = vmatmul.mubr.msk.f32.gmra.mrb[2].mxu1 %vm155_vm0, %v81_v16  ;;  %v102_v58 = vld [vmem:[%s3320_s0 + $0x2c0] sm:$0xff]  ;;  %v103_v60 = vld [vmem:[%s3320_s0 + $0x2c8] sm:$0xff]  ;;  %v104_v62 = vld [vmem:[%s3320_s0 + $0x2d0] sm:$0xff] }
  0x15   :  { %2042 = vmatprep.mubr.msk.f32.mxu0 %vm155_vm0, %v18_v17  ;;  %2138 = vmatprep.mubr.msk.f32.mxu1 %vm155_vm0, %v82_v18  ;;  %v41_v63 = vld [vmem:[%s3320_s0 + $0xd8] sm:$0xff]  ;;  %v42_v1 = vld [vmem:[%s3320_s0 + $0xe0] sm:$0xff]  ;;  %v43_v3 = vld [vmem:[%s3320_s0 + $0xe8] sm:$0xff] }
  0x16   :  { %v105_v0 = vld [vmem:[%s3320_s0 + $0x2d8] sm:$0xff]  ;;  %v106_v2 = vld [vmem:[%s3320_s0 + $0x2e0] sm:$0xff]  ;;  %v107_v4 = vld [vmem:[%s3320_s0 + $0x2e8] sm:$0xff] }
  0x17   :  { %v44_v5 = vld [vmem:[%s3320_s0 + $0xf0] sm:$0xff]  ;;  %v45_v7 = vld [vmem:[%s3320_s0 + $0xf8] sm:$0xff]  ;;  %v46_v9 = vld [vmem:[%s3320_s0 + $0x100] sm:$0xff] }
  0x18   :  { %2043 = vmatmul.mubr.msk.f32.gmra.mrb[4].mxu0 %vm155_vm0, %v19_v19  ;;  %2139 = vmatmul.mubr.msk.f32.gmra.mrb[4].mxu1 %vm155_vm0, %v83_v20  ;;  %v108_v6 = vld [vmem:[%s3320_s0 + $0x2f0] sm:$0xff]  ;;  %v109_v8 = vld [vmem:[%s3320_s0 + $0x2f8] sm:$0xff]  ;;  %v110_v10 = vld [vmem:[%s3320_s0 + $0x300] sm:$0xff] }
  0x19   :  { %2045 = vmatprep.mubr.msk.f32.mxu0 %vm155_vm0, %v20_v21  ;;  %2141 = vmatprep.mubr.msk.f32.mxu1 %vm155_vm0, %v84_v22  ;;  %v47_v11 = vld [vmem:[%s3320_s0 + $0x108] sm:$0xff]  ;;  %v48_v13 = vld [vmem:[%s3320_s0 + $0x110] sm:$0xff]  ;;  %v49_v15 = vld [vmem:[%s3320_s0 + $0x118] sm:$0xff] }
  0x1a   :  { %v111_v12 = vld [vmem:[%s3320_s0 + $0x308] sm:$0xff]  ;;  %v112_v14 = vld [vmem:[%s3320_s0 + $0x310] sm:$0xff]  ;;  %v113_v16 = vld [vmem:[%s3320_s0 + $0x318] sm:$0xff] }
  0x1b   :  { %v50_v17 = vld [vmem:[%s3320_s0 + $0x120] sm:$0xff]  ;;  %v51_v19 = vld [vmem:[%s3320_s0 + $0x128] sm:$0xff]  ;;  %v52_v21 = vld [vmem:[%s3320_s0 + $0x130] sm:$0xff] }
  0x1c   :  { %2046 = vmatmul.mubr.msk.f32.gmra.mrb[6].mxu0 %vm155_vm0, %v21_v23  ;;  %2142 = vmatmul.mubr.msk.f32.gmra.mrb[6].mxu1 %vm155_vm0, %v85_v24  ;;  %v114_v18 = vld [vmem:[%s3320_s0 + $0x320] sm:$0xff]  ;;  %v115_v20 = vld [vmem:[%s3320_s0 + $0x328] sm:$0xff]  ;;  %v116_v22 = vld [vmem:[%s3320_s0 + $0x330] sm:$0xff] }
  0x1d   :  { %2048 = vmatprep.mubr.msk.f32.mxu0 %vm155_vm0, %v22_v25  ;;  %2144 = vmatprep.mubr.msk.f32.mxu1 %vm155_vm0, %v86_v26  ;;  %v53_v23 = vld [vmem:[%s3320_s0 + $0x138] sm:$0xff]  ;;  %v54_v25 = vld [vmem:[%s3320_s0 + $0x140] sm:$0xff] }
  0x1e   :  { %v117_v24 = vld [vmem:[%s3320_s0 + $0x338] sm:$0xff]  ;;  %v118_v26 = vld [vmem:[%s3320_s0 + $0x340] sm:$0xff] }
  0x20   :  { %2049 = vmatmul.mubr.msk.f32.gmra.mrb[8].mxu0 %vm155_vm0, %v23_v27  ;;  %2145 = vmatmul.mubr.msk.f32.gmra.mrb[8].mxu1 %vm155_vm0, %v87_v28  ;;  %v55_v27 = vld [vmem:[%s3320_s0 + $0x148] sm:$0xff] }
  0x21   :  { %2051 = vmatprep.mubr.msk.f32.mxu0 %vm155_vm0, %v24_v29  ;;  %2147 = vmatprep.mubr.msk.f32.mxu1 %vm155_vm0, %v88_v30  ;;  %v119_v28 = vld [vmem:[%s3320_s0 + $0x348] sm:$0xff]  ;;  %v56_v29 = vld [vmem:[%s3320_s0 + $0x150] sm:$0xff] }
  0x22   :  { %v120_v30 = vld [vmem:[%s3320_s0 + $0x350] sm:$0xff] }
  0x24   :  { %2052 = vmatmul.mubr.msk.f32.gmra.mrb[10].mxu0 %vm155_vm0, %v25_v31  ;;  %2148 = vmatmul.mubr.msk.f32.gmra.mrb[10].mxu1 %vm155_vm0, %v89_v32  ;;  %v57_v31 = vld [vmem:[%s3320_s0 + $0x158] sm:$0xff] }
  0x25   :  { %2054 = vmatprep.mubr.msk.f32.mxu0 %vm155_vm0, %v26_v33  ;;  %2150 = vmatprep.mubr.msk.f32.mxu1 %vm155_vm0, %v90_v34  ;;  %v121_v32 = vld [vmem:[%s3320_s0 + $0x358] sm:$0xff]  ;;  %v58_v33 = vld [vmem:[%s3320_s0 + $0x160] sm:$0xff] }
  0x26   :  { %v122_v34 = vld [vmem:[%s3320_s0 + $0x360] sm:$0xff] }
  0x28   :  { %2055 = vmatmul.mubr.msk.f32.gmra.mrb[12].mxu0 %vm155_vm0, %v27_v35  ;;  %2151 = vmatmul.mubr.msk.f32.gmra.mrb[12].mxu1 %vm155_vm0, %v91_v36  ;;  %v59_v35 = vld [vmem:[%s3320_s0 + $0x168] sm:$0xff] }
  0x29   :  { %2057 = vmatprep.mubr.msk.f32.mxu0 %vm155_vm0, %v28_v37  ;;  %2153 = vmatprep.mubr.msk.f32.mxu1 %vm155_vm0, %v92_v38  ;;  %v123_v36 = vld [vmem:[%s3320_s0 + $0x368] sm:$0xff]  ;;  %v60_v37 = vld [vmem:[%s3320_s0 + $0x170] sm:$0xff] }
  0x2a   :  { %v124_v38 = vld [vmem:[%s3320_s0 + $0x370] sm:$0xff] }
  0x2c   :  { %2058 = vmatmul.mubr.msk.f32.gmra.mrb[14].mxu0 %vm155_vm0, %v29_v39  ;;  %2154 = vmatmul.mubr.msk.f32.gmra.mrb[14].mxu1 %vm155_vm0, %v93_v40  ;;  %v61_v39 = vld [vmem:[%s3320_s0 + $0x178] sm:$0xff] }
  0x2d   :  { %2060 = vmatprep.mubr.msk.f32.mxu0 %vm155_vm0, %v30_v41  ;;  %2156 = vmatprep.mubr.msk.f32.mxu1 %vm155_vm0, %v94_v42  ;;  %v125_v40 = vld [vmem:[%s3320_s0 + $0x378] sm:$0xff]  ;;  %v62_v41 = vld [vmem:[%s3320_s0 + $0x180] sm:$0xff] }
  0x2e   :  { %v126_v42 = vld [vmem:[%s3320_s0 + $0x380] sm:$0xff] }
  0x30   :  { %2061 = vmatmul.mubr.msk.f32.gmra.mrb[16].mxu0 %vm155_vm0, %v31_v43  ;;  %2157 = vmatmul.mubr.msk.f32.gmra.mrb[16].mxu1 %vm155_vm0, %v95_v44  ;;  %v63_v43 = vld [vmem:[%s3320_s0 + $0x188] sm:$0xff] }
  0x31   :  { %2063 = vmatprep.mubr.msk.f32.mxu0 %vm155_vm0, %v32_v45  ;;  %2159 = vmatprep.mubr.msk.f32.mxu1 %vm155_vm0, %v96_v46  ;;  %v127_v44 = vld [vmem:[%s3320_s0 + $0x388] sm:$0xff]  ;;  %v64_v45 = vld [vmem:[%s3320_s0 + $0x190] sm:$0xff] }
  0x32   :  { %v128_v46 = vld [vmem:[%s3320_s0 + $0x390] sm:$0xff] }
  0x34   :  { %2064 = vmatmul.mubr.msk.f32.gmra.mrb[18].mxu0 %vm155_vm0, %v33_v47  ;;  %2160 = vmatmul.mubr.msk.f32.gmra.mrb[18].mxu1 %vm155_vm0, %v97_v48  ;;  %v65_v47 = vld [vmem:[%s3320_s0 + $0x198] sm:$0xff] }
  0x35   :  { %2066 = vmatprep.mubr.msk.f32.mxu0 %vm155_vm0, %v34_v49  ;;  %2162 = vmatprep.mubr.msk.f32.mxu1 %vm155_vm0, %v98_v50  ;;  %v129_v48 = vld [vmem:[%s3320_s0 + $0x398] sm:$0xff]  ;;  %v66_v49 = vld [vmem:[%s3320_s0 + $0x1a0] sm:$0xff] }
  0x36   :  { %v130_v50 = vld [vmem:[%s3320_s0 + $0x3a0] sm:$0xff] }
  0x38   :  { %2067 = vmatmul.mubr.msk.f32.gmra.mrb[20].mxu0 %vm155_vm0, %v35_v51  ;;  %2163 = vmatmul.mubr.msk.f32.gmra.mrb[20].mxu1 %vm155_vm0, %v99_v52  ;;  %v67_v51 = vld [vmem:[%s3320_s0 + $0x1a8] sm:$0xff] }
  0x39   :  { %2069 = vmatprep.mubr.msk.f32.mxu0 %vm155_vm0, %v36_v53  ;;  %2165 = vmatprep.mubr.msk.f32.mxu1 %vm155_vm0, %v100_v54  ;;  %v131_v52 = vld [vmem:[%s3320_s0 + $0x3a8] sm:$0xff]  ;;  %v68_v53 = vld [vmem:[%s3320_s0 + $0x1b0] sm:$0xff] }
  0x3a   :  { %v132_v54 = vld [vmem:[%s3320_s0 + $0x3b0] sm:$0xff] }
  0x3c   :  { %2070 = vmatmul.mubr.msk.f32.gmra.mrb[22].mxu0 %vm155_vm0, %v37_v55  ;;  %2166 = vmatmul.mubr.msk.f32.gmra.mrb[22].mxu1 %vm155_vm0, %v101_v56  ;;  %v69_v55 = vld [vmem:[%s3320_s0 + $0x1b8] sm:$0xff] }
  0x3d   :  { %2072 = vmatprep.mubr.msk.f32.mxu0 %vm155_vm0, %v38_v57  ;;  %2168 = vmatprep.mubr.msk.f32.mxu1 %vm155_vm0, %v102_v58  ;;  %v133_v56 = vld [vmem:[%s3320_s0 + $0x3b8] sm:$0xff]  ;;  %v70_v57 = vld [vmem:[%s3320_s0 + $0x1c0] sm:$0xff] }
  0x3e   :  { %v134_v58 = vld [vmem:[%s3320_s0 + $0x3c0] sm:$0xff] }
  0x40   :  { %2073 = vmatmul.mubr.msk.f32.gmra.mrb[24].mxu0 %vm155_vm0, %v39_v59  ;;  %2169 = vmatmul.mubr.msk.f32.gmra.mrb[24].mxu1 %vm155_vm0, %v103_v60  ;;  %v71_v59 = vld [vmem:[%s3320_s0 + $0x1c8] sm:$0xff] }
  0x41   :  { %2075 = vmatprep.mubr.msk.f32.mxu0 %vm155_vm0, %v40_v61  ;;  %2171 = vmatprep.mubr.msk.f32.mxu1 %vm155_vm0, %v104_v62  ;;  %v135_v60 = vld [vmem:[%s3320_s0 + $0x3c8] sm:$0xff]  ;;  %v72_v61 = vld [vmem:[%s3320_s0 + $0x1d0] sm:$0xff] }
  0x42   :  { %v136_v62 = vld [vmem:[%s3320_s0 + $0x3d0] sm:$0xff] }
  0x44   :  { %2076 = vmatmul.mubr.msk.f32.gmra.mrb[26].mxu0 %vm155_vm0, %v41_v63  ;;  %2172 = vmatmul.mubr.msk.f32.gmra.mrb[26].mxu1 %vm155_vm0, %v105_v0  ;;  %v73_v63 = vld [vmem:[%s3320_s0 + $0x1d8] sm:$0xff] }
  0x45   :  { %2078 = vmatprep.mubr.msk.f32.mxu0 %vm155_vm0, %v42_v1  ;;  %2174 = vmatprep.mubr.msk.f32.mxu1 %vm155_vm0, %v106_v2  ;;  %v137_v0 = vld [vmem:[%s3320_s0 + $0x3d8] sm:$0xff]  ;;  %v74_v1 = vld [vmem:[%s3320_s0 + $0x1e0] sm:$0xff] }
  0x46   :  { %v138_v2 = vld [vmem:[%s3320_s0 + $0x3e0] sm:$0xff] }
  0x48   :  { %2079 = vmatmul.mubr.msk.f32.gmra.mrb[28].mxu0 %vm155_vm0, %v43_v3  ;;  %2175 = vmatmul.mubr.msk.f32.gmra.mrb[28].mxu1 %vm155_vm0, %v107_v4  ;;  %v75_v3 = vld [vmem:[%s3320_s0 + $0x1e8] sm:$0xff] }
  0x49   :  { %2081 = vmatprep.mubr.msk.f32.mxu0 %vm155_vm0, %v44_v5  ;;  %2177 = vmatprep.mubr.msk.f32.mxu1 %vm155_vm0, %v108_v6  ;;  %v139_v4 = vld [vmem:[%s3320_s0 + $0x3e8] sm:$0xff]  ;;  %v76_v5 = vld [vmem:[%s3320_s0 + $0x1f0] sm:$0xff] }
  0x4a   :  { %v140_v6 = vld [vmem:[%s3320_s0 + $0x3f0] sm:$0xff] }
  0x4c   :  { %2082 = vmatmul.mubr.msk.f32.gmra.mrb[30].mxu0 %vm155_vm0, %v45_v7  ;;  %2178 = vmatmul.mubr.msk.f32.gmra.mrb[30].mxu1 %vm155_vm0, %v109_v8  ;;  %v77_v7 = vld [vmem:[%s3320_s0 + $0x1f8] sm:$0xff] }
  0x4d   :  { %2084 = vmatprep.mubr.msk.f32.mxu0 %vm155_vm0, %v46_v9  ;;  %2180 = vmatprep.mubr.msk.f32.mxu1 %vm155_vm0, %v110_v10  ;;  %v141_v8 = vld [vmem:[%s3320_s0 + $0x3f8] sm:$0xff]  ;;  %v2800_v9 = vld [vmem:[%s3321_s2] ss:$0 sm:$0xff] }
  0x50   :  { %2085 = vmatmul.mubr.msk.f32.gmra.mrb[32].mxu0 %vm155_vm0, %v47_v11  ;;  %2181 = vmatmul.mubr.msk.f32.gmra.mrb[32].mxu1 %vm155_vm0, %v111_v12 }
  0x51   :  { %2087 = vmatprep.mubr.msk.f32.mxu0 %vm155_vm0, %v48_v13  ;;  %2183 = vmatprep.mubr.msk.f32.mxu1 %vm155_vm0, %v112_v14 }
  0x54   :  { %2088 = vmatmul.mubr.msk.f32.gmra.mrb[34].mxu0 %vm155_vm0, %v49_v15  ;;  %2184 = vmatmul.mubr.msk.f32.gmra.mrb[34].mxu1 %vm155_vm0, %v113_v16 }
  0x55   :  { %2090 = vmatprep.mubr.msk.f32.mxu0 %vm155_vm0, %v50_v17  ;;  %2186 = vmatprep.mubr.msk.f32.mxu1 %vm155_vm0, %v114_v18 }
  0x58   :  { %2091 = vmatmul.mubr.msk.f32.gmra.mrb[36].mxu0 %vm155_vm0, %v51_v19  ;;  %2187 = vmatmul.mubr.msk.f32.gmra.mrb[36].mxu1 %vm155_vm0, %v115_v20 }
  0x59   :  { %2093 = vmatprep.mubr.msk.f32.mxu0 %vm155_vm0, %v52_v21  ;;  %2189 = vmatprep.mubr.msk.f32.mxu1 %vm155_vm0, %v116_v22 }
  0x5c   :  { %2094 = vmatmul.mubr.msk.f32.gmra.mrb[38].mxu0 %vm155_vm0, %v53_v23  ;;  %2190 = vmatmul.mubr.msk.f32.gmra.mrb[38].mxu1 %vm155_vm0, %v117_v24 }
  0x5d   :  { %2096 = vmatprep.mubr.msk.f32.mxu0 %vm155_vm0, %v54_v25  ;;  %2192 = vmatprep.mubr.msk.f32.mxu1 %vm155_vm0, %v118_v26 }
  0x60   :  { %2097 = vmatmul.mubr.msk.f32.gmra.mrb[40].mxu0 %vm155_vm0, %v55_v27  ;;  %2193 = vmatmul.mubr.msk.f32.gmra.mrb[40].mxu1 %vm155_vm0, %v119_v28 }
  0x61   :  { %2099 = vmatprep.mubr.msk.f32.mxu0 %vm155_vm0, %v56_v29  ;;  %2195 = vmatprep.mubr.msk.f32.mxu1 %vm155_vm0, %v120_v30 }
  0x64   :  { %2100 = vmatmul.mubr.msk.f32.gmra.mrb[42].mxu0 %vm155_vm0, %v57_v31  ;;  %2196 = vmatmul.mubr.msk.f32.gmra.mrb[42].mxu1 %vm155_vm0, %v121_v32 }
  0x65   :  { %2102 = vmatprep.mubr.msk.f32.mxu0 %vm155_vm0, %v58_v33  ;;  %2198 = vmatprep.mubr.msk.f32.mxu1 %vm155_vm0, %v122_v34 }
  0x68   :  { %2103 = vmatmul.mubr.msk.f32.gmra.mrb[44].mxu0 %vm155_vm0, %v59_v35  ;;  %2199 = vmatmul.mubr.msk.f32.gmra.mrb[44].mxu1 %vm155_vm0, %v123_v36 }
  0x69   :  { %2105 = vmatprep.mubr.msk.f32.mxu0 %vm155_vm0, %v60_v37  ;;  %2201 = vmatprep.mubr.msk.f32.mxu1 %vm155_vm0, %v124_v38 }
  0x6c   :  { %2106 = vmatmul.mubr.msk.f32.gmra.mrb[46].mxu0 %vm155_vm0, %v61_v39  ;;  %2202 = vmatmul.mubr.msk.f32.gmra.mrb[46].mxu1 %vm155_vm0, %v125_v40 }
  0x6d   :  { %2108 = vmatprep.mubr.msk.f32.mxu0 %vm155_vm0, %v62_v41  ;;  %2204 = vmatprep.mubr.msk.f32.mxu1 %vm155_vm0, %v126_v42 }
  0x70   :  { %2109 = vmatmul.mubr.msk.f32.gmra.mrb[48].mxu0 %vm155_vm0, %v63_v43  ;;  %2205 = vmatmul.mubr.msk.f32.gmra.mrb[48].mxu1 %vm155_vm0, %v127_v44 }
  0x71   :  { %2111 = vmatprep.mubr.msk.f32.mxu0 %vm155_vm0, %v64_v45  ;;  %2207 = vmatprep.mubr.msk.f32.mxu1 %vm155_vm0, %v128_v46 }
  0x74   :  { %2112 = vmatmul.mubr.msk.f32.gmra.mrb[50].mxu0 %vm155_vm0, %v65_v47  ;;  %2208 = vmatmul.mubr.msk.f32.gmra.mrb[50].mxu1 %vm155_vm0, %v129_v48 }
  0x75   :  { %2114 = vmatprep.mubr.msk.f32.mxu0 %vm155_vm0, %v66_v49  ;;  %2210 = vmatprep.mubr.msk.f32.mxu1 %vm155_vm0, %v130_v50 }
  0x78   :  { %2115 = vmatmul.mubr.msk.f32.gmra.mrb[52].mxu0 %vm155_vm0, %v67_v51  ;;  %2211 = vmatmul.mubr.msk.f32.gmra.mrb[52].mxu1 %vm155_vm0, %v131_v52 }
  0x79   :  { %2117 = vmatprep.mubr.msk.f32.mxu0 %vm155_vm0, %v68_v53  ;;  %2213 = vmatprep.mubr.msk.f32.mxu1 %vm155_vm0, %v132_v54 }
  0x7c   :  { %2118 = vmatmul.mubr.msk.f32.gmra.mrb[54].mxu0 %vm155_vm0, %v69_v55  ;;  %2214 = vmatmul.mubr.msk.f32.gmra.mrb[54].mxu1 %vm155_vm0, %v133_v56 }
  0x7d   :  { %2120 = vmatprep.mubr.msk.f32.mxu0 %vm155_vm0, %v70_v57  ;;  %2216 = vmatprep.mubr.msk.f32.mxu1 %vm155_vm0, %v134_v58 }
  0x80   :  { %2121 = vmatmul.mubr.msk.f32.gmra.mrb[56].mxu0 %vm155_vm0, %v71_v59  ;;  %2217 = vmatmul.mubr.msk.f32.gmra.mrb[56].mxu1 %vm155_vm0, %v135_v60 }
  0x81   :  { %2123 = vmatprep.mubr.msk.f32.mxu0 %vm155_vm0, %v72_v61  ;;  %2219 = vmatprep.mubr.msk.f32.mxu1 %vm155_vm0, %v136_v62 }
  0x84   :  { %2124 = vmatmul.mubr.msk.f32.gmra.mrb[58].mxu0 %vm155_vm0, %v73_v63  ;;  %2220 = vmatmul.mubr.msk.f32.gmra.mrb[58].mxu1 %vm155_vm0, %v137_v0 }
  0x85   :  { %2126 = vmatprep.mubr.msk.f32.mxu0 %vm155_vm0, %v74_v1  ;;  %2222 = vmatprep.mubr.msk.f32.mxu1 %vm155_vm0, %v138_v2 }
  0x88   :  { %2127 = vmatmul.mubr.msk.f32.gmra.mrb[60].mxu0 %vm155_vm0, %v75_v3  ;;  %2223 = vmatmul.mubr.msk.f32.gmra.mrb[60].mxu1 %vm155_vm0, %v139_v4 }
  0x89   :  { %2129 = vmatprep.mubr.msk.f32.mxu0 %vm155_vm0, %v76_v5  ;;  %2225 = vmatprep.mubr.msk.f32.mxu1 %vm155_vm0, %v140_v6 }
  0x8c   :  { %2130 = vmatmul.mubr.msk.f32.gmra.mrb[62].mxu0 %vm155_vm0, %v77_v7  ;;  %2226 = vmatmul.mubr.msk.f32.gmra.mrb[62].mxu1 %vm155_vm0, %v141_v8 }
  0xe3   :  { %v2038_v10 = vpop.f32.mrb[0].mxu0  ;;  %v2134_v11 = vpop.f32.mrb[0].mxu1 }
  0xe4   :  { %v612_v12 = vadd.f32 %v2038_v10, %v2800_v9  ;;  %v932_v13 = vadd.f32 %v2134_v11, %v2800_v9  ;;  %v606_v14 = vpop.f32.mrb[1].mxu0  ;;  %v926_v15 = vpop.f32.mrb[1].mxu1 }
  0xe5   :  { %v607_v16 = vadd.f32 %v2800_v9, %v606_v14  ;;  %v927_v17 = vadd.f32 %v2800_v9, %v926_v15 }
  0xe6   :  { %vm1246_vm1 = vcmp.ge.f32.partialorder %v612_v12, 0.0  ;;  %v1374_v18 = vmul.f32 0.2, %v612_v12  ;;  %vm1310_vm2 = vcmp.ge.f32.partialorder %v932_v13, 0.0  ;;  %v1438_v19 = vmul.f32 0.2, %v932_v13 }
  0xe7   :  { %vm1245_vm3 = vcmp.ge.f32.partialorder %v607_v16, 0.0  ;;  %v1373_v20 = vmul.f32 0.2, %v607_v16  ;;  %vm1309_vm4 = vcmp.ge.f32.partialorder %v927_v17, 0.0  ;;  %v1437_v21 = vmul.f32 0.2, %v927_v17 }
  0xe8   :  { %v1502_v22 = vsel %vm1246_vm1, %v612_v12, %v1374_v18  ;;  %v1566_v23 = vsel %vm1310_vm2, %v932_v13, %v1438_v19  ;;  %v2041_v24 = vpop.f32.mrb[2].mxu0  ;;  %v2137_v25 = vpop.f32.mrb[2].mxu1 }
  0xe9   :  { %1630 = vst [vmem:[%s3322_s3 + $0x8] sm:$0xff] %v1502_v22  ;;  %1694 = vst [vmem:[%s3322_s3 + $0x208] sm:$0xff] %v1566_v23  ;;  %v1501_v26 = vsel %vm1245_vm3, %v607_v16, %v1373_v20  ;;  %v1565_v27 = vsel %vm1309_vm4, %v927_v17, %v1437_v21  ;;  %v622_v28 = vadd.f32 %v2041_v24, %v2800_v9  ;;  %v616_v30 = vpop.f32.mrb[3].mxu0  ;;  %v936_v31 = vpop.f32.mrb[3].mxu1 }
  0xea   :  { %v942_v29 = vadd.f32 %v2137_v25, %v2800_v9  ;;  %1629 = vst [vmem:[%s3322_s3] sm:$0xff] %v1501_v26  ;;  %1693 = vst [vmem:[%s3322_s3 + $0x200] sm:$0xff] %v1565_v27  ;;  %v617_v32 = vadd.f32 %v2800_v9, %v616_v30  ;;  %v937_v33 = vadd.f32 %v2800_v9, %v936_v31 }
  0xeb   :  { %vm1248_vm5 = vcmp.ge.f32.partialorder %v622_v28, 0.0  ;;  %v1376_v34 = vmul.f32 0.2, %v622_v28  ;;  %v2044_v40 = vpop.f32.mrb[4].mxu0  ;;  %v2140_v41 = vpop.f32.mrb[4].mxu1 }
  0xec   :  { %vm1312_vm6 = vcmp.ge.f32.partialorder %v942_v29, 0.0  ;;  %v1440_v35 = vmul.f32 0.2, %v942_v29  ;;  %vm1247_vm7 = vcmp.ge.f32.partialorder %v617_v32, 0.0  ;;  %v1375_v36 = vmul.f32 0.2, %v617_v32 }
  0xed   :  { %vm1311_vm8 = vcmp.ge.f32.partialorder %v937_v33, 0.0  ;;  %v1439_v37 = vmul.f32 0.2, %v937_v33  ;;  %v1504_v38 = vsel %vm1248_vm5, %v622_v28, %v1376_v34  ;;  %v632_v44 = vadd.f32 %v2044_v40, %v2800_v9  ;;  %v626_v46 = vpop.f32.mrb[5].mxu0  ;;  %v946_v47 = vpop.f32.mrb[5].mxu1 }
  0xee   :  { %v1568_v39 = vsel %vm1312_vm6, %v942_v29, %v1440_v35  ;;  %1632 = vst [vmem:[%s3322_s3 + $0x18] sm:$0xff] %v1504_v38  ;;  %v1503_v42 = vsel %vm1247_vm7, %v617_v32, %v1375_v36  ;;  %v952_v45 = vadd.f32 %v2140_v41, %v2800_v9  ;;  %v627_v48 = vadd.f32 %v2800_v9, %v626_v46 }
  0xef   :  { %1696 = vst [vmem:[%s3322_s3 + $0x218] sm:$0xff] %v1568_v39  ;;  %v1567_v43 = vsel %vm1311_vm8, %v937_v33, %v1439_v37  ;;  %1631 = vst [vmem:[%s3322_s3 + $0x10] sm:$0xff] %v1503_v42  ;;  %v947_v49 = vadd.f32 %v2800_v9, %v946_v47  ;;  %v2047_v50 = vpop.f32.mrb[6].mxu0  ;;  %v2143_v51 = vpop.f32.mrb[6].mxu1  ;;  %vm1250_vm9 = vcmp.ge.f32.partialorder %v632_v44, 0.0 }
  0xf0   :  { %1695 = vst [vmem:[%s3322_s3 + $0x210] sm:$0xff] %v1567_v43  ;;  %v1378_v52 = vmul.f32 0.2, %v632_v44  ;;  %vm1314_vm10 = vcmp.ge.f32.partialorder %v952_v45, 0.0  ;;  %v1442_v53 = vmul.f32 0.2, %v952_v45  ;;  %v642_v58 = vadd.f32 %v2047_v50, %v2800_v9 }
  0xf1   :  { %vm1249_vm11 = vcmp.ge.f32.partialorder %v627_v48, 0.0  ;;  %v1377_v54 = vmul.f32 0.2, %v627_v48  ;;  %vm1313_vm12 = vcmp.ge.f32.partialorder %v947_v49, 0.0  ;;  %v1441_v55 = vmul.f32 0.2, %v947_v49 }
  0xf2   :  { %v1506_v56 = vsel %vm1250_vm9, %v632_v44, %v1378_v52  ;;  %v1570_v57 = vsel %vm1314_vm10, %v952_v45, %v1442_v53  ;;  %v962_v59 = vadd.f32 %v2143_v51, %v2800_v9  ;;  %v636_v60 = vpop.f32.mrb[7].mxu0  ;;  %v956_v61 = vpop.f32.mrb[7].mxu1  ;;  %vm1252_vm13 = vcmp.ge.f32.partialorder %v642_v58, 0.0 }
  0xf3   :  { %1634 = vst [vmem:[%s3322_s3 + $0x28] sm:$0xff] %v1506_v56  ;;  %1698 = vst [vmem:[%s3322_s3 + $0x228] sm:$0xff] %v1570_v57  ;;  %v1505_v62 = vsel %vm1249_vm11, %v627_v48, %v1377_v54  ;;  %v1569_v63 = vsel %vm1313_vm12, %v947_v49, %v1441_v55  ;;  %v637_v0 = vadd.f32 %v2800_v9, %v636_v60  ;;  %v2050_v2 = vpop.f32.mrb[8].mxu0  ;;  %v2146_v3 = vpop.f32.mrb[8].mxu1  ;;  %v1380_v4 = vmul.f32 0.2, %v642_v58 }
  0xf4   :  { %v957_v1 = vadd.f32 %v2800_v9, %v956_v61  ;;  %1633 = vst [vmem:[%s3322_s3 + $0x20] sm:$0xff] %v1505_v62  ;;  %1697 = vst [vmem:[%s3322_s3 + $0x220] sm:$0xff] %v1569_v63  ;;  %vm1316_vm14 = vcmp.ge.f32.partialorder %v962_v59, 0.0  ;;  %v1444_v5 = vmul.f32 0.2, %v962_v59  ;;  %v652_v11 = vadd.f32 %v2050_v2, %v2800_v9  ;;  %v646_v13 = vpop.f32.mrb[9].mxu0 }
  0xf5   :  { %vm1251_vm15 = vcmp.ge.f32.partialorder %v637_v0, 0.0  ;;  %v1379_v6 = vmul.f32 0.2, %v637_v0  ;;  %v1508_v8 = vsel %vm1252_vm13, %v642_v58, %v1380_v4  ;;  %v972_v12 = vadd.f32 %v2146_v3, %v2800_v9  ;;  %v966_v14 = vpop.f32.mrb[9].mxu1 }
  0xf6   :  { %vm1315_vm0 = vcmp.ge.f32.partialorder %v957_v1, 0.0  ;;  %v1443_v7 = vmul.f32 0.2, %v957_v1  ;;  %v1572_v10 = vsel %vm1316_vm14, %v962_v59, %v1444_v5  ;;  %1636 = vst [vmem:[%s3322_s3 + $0x38] sm:$0xff] %v1508_v8  ;;  %v647_v17 = vadd.f32 %v2800_v9, %v646_v13 }
  0xf7   :  { %1700 = vst [vmem:[%s3322_s3 + $0x238] sm:$0xff] %v1572_v10  ;;  %v1507_v15 = vsel %vm1251_vm15, %v637_v0, %v1379_v6  ;;  %v967_v18 = vadd.f32 %v2800_v9, %v966_v14  ;;  %v2053_v19 = vpop.f32.mrb[10].mxu0  ;;  %v2149_v20 = vpop.f32.mrb[10].mxu1  ;;  %vm1254_vm1 = vcmp.ge.f32.partialorder %v652_v11, 0.0  ;;  %v1382_v21 = vmul.f32 0.2, %v652_v11 }
  0xf8   :  { %v1571_v16 = vsel %vm1315_vm0, %v957_v1, %v1443_v7  ;;  %1635 = vst [vmem:[%s3322_s3 + $0x30] sm:$0xff] %v1507_v15  ;;  %vm1318_vm2 = vcmp.ge.f32.partialorder %v972_v12, 0.0  ;;  %v1446_v22 = vmul.f32 0.2, %v972_v12  ;;  %vm1253_vm3 = vcmp.ge.f32.partialorder %v647_v17, 0.0  ;;  %v656_v29 = vpop.f32.mrb[11].mxu0 }
  0xf9   :  { %1699 = vst [vmem:[%s3322_s3 + $0x230] sm:$0xff] %v1571_v16  ;;  %v1381_v23 = vmul.f32 0.2, %v647_v17  ;;  %vm1317_vm4 = vcmp.ge.f32.partialorder %v967_v18, 0.0  ;;  %v1445_v24 = vmul.f32 0.2, %v967_v18  ;;  %v1510_v25 = vsel %vm1254_vm1, %v652_v11, %v1382_v21 }
  0xfa   :  { %v1574_v26 = vsel %vm1318_vm2, %v972_v12, %v1446_v22  ;;  %v662_v27 = vadd.f32 %v2053_v19, %v2800_v9  ;;  %v982_v28 = vadd.f32 %v2149_v20, %v2800_v9  ;;  %v976_v30 = vpop.f32.mrb[11].mxu1  ;;  %1638 = vst [vmem:[%s3322_s3 + $0x48] sm:$0xff] %v1510_v25  ;;  %v657_v33 = vadd.f32 %v2800_v9, %v656_v29 }
  0xfb   :  { %1702 = vst [vmem:[%s3322_s3 + $0x248] sm:$0xff] %v1574_v26  ;;  %v1509_v31 = vsel %vm1253_vm3, %v647_v17, %v1381_v23  ;;  %v1573_v32 = vsel %vm1317_vm4, %v967_v18, %v1445_v24  ;;  %v977_v34 = vadd.f32 %v2800_v9, %v976_v30  ;;  %v2056_v35 = vpop.f32.mrb[12].mxu0  ;;  %v2152_v36 = vpop.f32.mrb[12].mxu1 }
  0xfc   :  { %1637 = vst [vmem:[%s3322_s3 + $0x40] sm:$0xff] %v1509_v31  ;;  %1701 = vst [vmem:[%s3322_s3 + $0x240] sm:$0xff] %v1573_v32  ;;  %vm1256_vm5 = vcmp.ge.f32.partialorder %v662_v27, 0.0  ;;  %v1384_v37 = vmul.f32 0.2, %v662_v27  ;;  %vm1320_vm6 = vcmp.ge.f32.partialorder %v982_v28, 0.0  ;;  %v672_v43 = vadd.f32 %v2056_v35, %v2800_v9 }
  0xfd   :  { %v1448_v38 = vmul.f32 0.2, %v982_v28  ;;  %vm1255_vm7 = vcmp.ge.f32.partialorder %v657_v33, 0.0  ;;  %v1383_v39 = vmul.f32 0.2, %v657_v33  ;;  %vm1319_vm8 = vcmp.ge.f32.partialorder %v977_v34, 0.0 }
  0xfe   :  { %v1447_v40 = vmul.f32 0.2, %v977_v34  ;;  %v1512_v41 = vsel %vm1256_vm5, %v662_v27, %v1384_v37  ;;  %v992_v44 = vadd.f32 %v2152_v36, %v2800_v9  ;;  %v666_v45 = vpop.f32.mrb[13].mxu0  ;;  %v986_v46 = vpop.f32.mrb[13].mxu1  ;;  %vm1258_vm9 = vcmp.ge.f32.partialorder %v672_v43, 0.0 }
  0xff   :  { %v1576_v42 = vsel %vm1320_vm6, %v982_v28, %v1448_v38  ;;  %1640 = vst [vmem:[%s3322_s3 + $0x58] sm:$0xff] %v1512_v41  ;;  %v1511_v47 = vsel %vm1255_vm7, %v657_v33, %v1383_v39  ;;  %v667_v49 = vadd.f32 %v2800_v9, %v666_v45  ;;  %v987_v50 = vadd.f32 %v2800_v9, %v986_v46  ;;  %v2059_v51 = vpop.f32.mrb[14].mxu0  ;;  %v2155_v52 = vpop.f32.mrb[14].mxu1 }
 0x100   :  { %1704 = vst [vmem:[%s3322_s3 + $0x258] sm:$0xff] %v1576_v42  ;;  %v1575_v48 = vsel %vm1319_vm8, %v977_v34, %v1447_v40  ;;  %1639 = vst [vmem:[%s3322_s3 + $0x50] sm:$0xff] %v1511_v47  ;;  %v1386_v53 = vmul.f32 0.2, %v672_v43  ;;  %vm1322_vm10 = vcmp.ge.f32.partialorder %v992_v44, 0.0  ;;  %v682_v59 = vadd.f32 %v2059_v51, %v2800_v9  ;;  %v676_v61 = vpop.f32.mrb[15].mxu0 }
 0x101   :  { %1703 = vst [vmem:[%s3322_s3 + $0x250] sm:$0xff] %v1575_v48  ;;  %v1450_v54 = vmul.f32 0.2, %v992_v44  ;;  %vm1257_vm11 = vcmp.ge.f32.partialorder %v667_v49, 0.0  ;;  %v1385_v55 = vmul.f32 0.2, %v667_v49  ;;  %v1002_v60 = vadd.f32 %v2155_v52, %v2800_v9 }
 0x102   :  { %vm1321_vm12 = vcmp.ge.f32.partialorder %v987_v50, 0.0  ;;  %v1449_v56 = vmul.f32 0.2, %v987_v50  ;;  %v1514_v57 = vsel %vm1258_vm9, %v672_v43, %v1386_v53  ;;  %v996_v62 = vpop.f32.mrb[15].mxu1  ;;  %v677_v1 = vadd.f32 %v2800_v9, %v676_v61 }
 0x103   :  { %v1578_v58 = vsel %vm1322_vm10, %v992_v44, %v1450_v54  ;;  %1642 = vst [vmem:[%s3322_s3 + $0x68] sm:$0xff] %v1514_v57  ;;  %v1513_v63 = vsel %vm1257_vm11, %v667_v49, %v1385_v55  ;;  %v997_v2 = vadd.f32 %v2800_v9, %v996_v62  ;;  %v2062_v3 = vpop.f32.mrb[16].mxu0  ;;  %v2158_v4 = vpop.f32.mrb[16].mxu1  ;;  %vm1260_vm13 = vcmp.ge.f32.partialorder %v682_v59, 0.0 }
 0x104   :  { %1706 = vst [vmem:[%s3322_s3 + $0x268] sm:$0xff] %v1578_v58  ;;  %v1577_v0 = vsel %vm1321_vm12, %v987_v50, %v1449_v56  ;;  %1641 = vst [vmem:[%s3322_s3 + $0x60] sm:$0xff] %v1513_v63  ;;  %v1388_v5 = vmul.f32 0.2, %v682_v59  ;;  %vm1324_vm14 = vcmp.ge.f32.partialorder %v1002_v60, 0.0  ;;  %vm1259_vm15 = vcmp.ge.f32.partialorder %v677_v1, 0.0 }
 0x105   :  { %1705 = vst [vmem:[%s3322_s3 + $0x260] sm:$0xff] %v1577_v0  ;;  %v1452_v6 = vmul.f32 0.2, %v1002_v60  ;;  %v1387_v7 = vmul.f32 0.2, %v677_v1  ;;  %vm1323_vm0 = vcmp.ge.f32.partialorder %v997_v2, 0.0  ;;  %v692_v12 = vadd.f32 %v2062_v3, %v2800_v9 }
 0x106   :  { %v1451_v8 = vmul.f32 0.2, %v997_v2  ;;  %v1516_v10 = vsel %vm1260_vm13, %v682_v59, %v1388_v5  ;;  %v1012_v13 = vadd.f32 %v2158_v4, %v2800_v9  ;;  %v686_v14 = vpop.f32.mrb[17].mxu0  ;;  %v1006_v15 = vpop.f32.mrb[17].mxu1 }
 0x107   :  { %v1580_v11 = vsel %vm1324_vm14, %v1002_v60, %v1452_v6  ;;  %1644 = vst [vmem:[%s3322_s3 + $0x78] sm:$0xff] %v1516_v10  ;;  %v1515_v16 = vsel %vm1259_vm15, %v677_v1, %v1387_v7  ;;  %v687_v18 = vadd.f32 %v2800_v9, %v686_v14  ;;  %v1007_v19 = vadd.f32 %v2800_v9, %v1006_v15  ;;  %v2065_v20 = vpop.f32.mrb[18].mxu0  ;;  %v2161_v21 = vpop.f32.mrb[18].mxu1 }
 0x108   :  { %1708 = vst [vmem:[%s3322_s3 + $0x278] sm:$0xff] %v1580_v11  ;;  %v1579_v17 = vsel %vm1323_vm0, %v997_v2, %v1451_v8  ;;  %1643 = vst [vmem:[%s3322_s3 + $0x70] sm:$0xff] %v1515_v16  ;;  %vm1262_vm1 = vcmp.ge.f32.partialorder %v692_v12, 0.0  ;;  %v1390_v22 = vmul.f32 0.2, %v692_v12  ;;  %vm1326_vm2 = vcmp.ge.f32.partialorder %v1012_v13, 0.0 }
 0x109   :  { %1707 = vst [vmem:[%s3322_s3 + $0x270] sm:$0xff] %v1579_v17  ;;  %v1454_v23 = vmul.f32 0.2, %v1012_v13  ;;  %vm1261_vm3 = vcmp.ge.f32.partialorder %v687_v18, 0.0  ;;  %v1389_v24 = vmul.f32 0.2, %v687_v18  ;;  %v702_v28 = vadd.f32 %v2065_v20, %v2800_v9 }
 0x10a   :  { %vm1325_vm4 = vcmp.ge.f32.partialorder %v1007_v19, 0.0  ;;  %v1453_v25 = vmul.f32 0.2, %v1007_v19  ;;  %v1518_v26 = vsel %vm1262_vm1, %v692_v12, %v1390_v22  ;;  %v1022_v29 = vadd.f32 %v2161_v21, %v2800_v9  ;;  %v696_v30 = vpop.f32.mrb[19].mxu0  ;;  %v1016_v31 = vpop.f32.mrb[19].mxu1 }
 0x10b   :  { %v1582_v27 = vsel %vm1326_vm2, %v1012_v13, %v1454_v23  ;;  %1646 = vst [vmem:[%s3322_s3 + $0x88] sm:$0xff] %v1518_v26  ;;  %v1517_v32 = vsel %vm1261_vm3, %v687_v18, %v1389_v24  ;;  %v697_v34 = vadd.f32 %v2800_v9, %v696_v30  ;;  %v1017_v35 = vadd.f32 %v2800_v9, %v1016_v31  ;;  %v2068_v36 = vpop.f32.mrb[20].mxu0  ;;  %v2164_v37 = vpop.f32.mrb[20].mxu1 }
 0x10c   :  { %1710 = vst [vmem:[%s3322_s3 + $0x288] sm:$0xff] %v1582_v27  ;;  %v1581_v33 = vsel %vm1325_vm4, %v1007_v19, %v1453_v25  ;;  %1645 = vst [vmem:[%s3322_s3 + $0x80] sm:$0xff] %v1517_v32  ;;  %vm1264_vm5 = vcmp.ge.f32.partialorder %v702_v28, 0.0  ;;  %v1392_v38 = vmul.f32 0.2, %v702_v28  ;;  %vm1328_vm6 = vcmp.ge.f32.partialorder %v1022_v29, 0.0 }
 0x10d   :  { %1709 = vst [vmem:[%s3322_s3 + $0x280] sm:$0xff] %v1581_v33  ;;  %v1456_v39 = vmul.f32 0.2, %v1022_v29  ;;  %vm1263_vm7 = vcmp.ge.f32.partialorder %v697_v34, 0.0  ;;  %v1391_v40 = vmul.f32 0.2, %v697_v34  ;;  %v712_v44 = vadd.f32 %v2068_v36, %v2800_v9 }
 0x10e   :  { %vm1327_vm8 = vcmp.ge.f32.partialorder %v1017_v35, 0.0  ;;  %v1455_v41 = vmul.f32 0.2, %v1017_v35  ;;  %v1520_v42 = vsel %vm1264_vm5, %v702_v28, %v1392_v38  ;;  %v1032_v45 = vadd.f32 %v2164_v37, %v2800_v9  ;;  %v706_v46 = vpop.f32.mrb[21].mxu0  ;;  %v1026_v47 = vpop.f32.mrb[21].mxu1 }
 0x10f   :  { %v1584_v43 = vsel %vm1328_vm6, %v1022_v29, %v1456_v39  ;;  %1648 = vst [vmem:[%s3322_s3 + $0x98] sm:$0xff] %v1520_v42  ;;  %v1519_v48 = vsel %vm1263_vm7, %v697_v34, %v1391_v40  ;;  %v707_v50 = vadd.f32 %v2800_v9, %v706_v46  ;;  %v1027_v51 = vadd.f32 %v2800_v9, %v1026_v47  ;;  %v2071_v52 = vpop.f32.mrb[22].mxu0  ;;  %v2167_v53 = vpop.f32.mrb[22].mxu1 }
 0x110   :  { %1712 = vst [vmem:[%s3322_s3 + $0x298] sm:$0xff] %v1584_v43  ;;  %v1583_v49 = vsel %vm1327_vm8, %v1017_v35, %v1455_v41  ;;  %1647 = vst [vmem:[%s3322_s3 + $0x90] sm:$0xff] %v1519_v48  ;;  %vm1266_vm9 = vcmp.ge.f32.partialorder %v712_v44, 0.0  ;;  %v1394_v54 = vmul.f32 0.2, %v712_v44  ;;  %vm1330_vm10 = vcmp.ge.f32.partialorder %v1032_v45, 0.0 }
 0x111   :  { %1711 = vst [vmem:[%s3322_s3 + $0x290] sm:$0xff] %v1583_v49  ;;  %v1458_v55 = vmul.f32 0.2, %v1032_v45  ;;  %vm1265_vm11 = vcmp.ge.f32.partialorder %v707_v50, 0.0  ;;  %v1393_v56 = vmul.f32 0.2, %v707_v50  ;;  %v722_v60 = vadd.f32 %v2071_v52, %v2800_v9 }
 0x112   :  { %vm1329_vm12 = vcmp.ge.f32.partialorder %v1027_v51, 0.0  ;;  %v1457_v57 = vmul.f32 0.2, %v1027_v51  ;;  %v1522_v58 = vsel %vm1266_vm9, %v712_v44, %v1394_v54  ;;  %v1042_v61 = vadd.f32 %v2167_v53, %v2800_v9  ;;  %v716_v62 = vpop.f32.mrb[23].mxu0  ;;  %v1036_v63 = vpop.f32.mrb[23].mxu1 }
 0x113   :  { %v1586_v59 = vsel %vm1330_vm10, %v1032_v45, %v1458_v55  ;;  %1650 = vst [vmem:[%s3322_s3 + $0xa8] sm:$0xff] %v1522_v58  ;;  %v1521_v0 = vsel %vm1265_vm11, %v707_v50, %v1393_v56  ;;  %v717_v2 = vadd.f32 %v2800_v9, %v716_v62  ;;  %v1037_v3 = vadd.f32 %v2800_v9, %v1036_v63  ;;  %v2074_v4 = vpop.f32.mrb[24].mxu0  ;;  %v2170_v5 = vpop.f32.mrb[24].mxu1 }
 0x114   :  { %1714 = vst [vmem:[%s3322_s3 + $0x2a8] sm:$0xff] %v1586_v59  ;;  %v1585_v1 = vsel %vm1329_vm12, %v1027_v51, %v1457_v57  ;;  %1649 = vst [vmem:[%s3322_s3 + $0xa0] sm:$0xff] %v1521_v0  ;;  %vm1268_vm13 = vcmp.ge.f32.partialorder %v722_v60, 0.0  ;;  %v1396_v6 = vmul.f32 0.2, %v722_v60  ;;  %vm1332_vm14 = vcmp.ge.f32.partialorder %v1042_v61, 0.0 }
 0x115   :  { %1713 = vst [vmem:[%s3322_s3 + $0x2a0] sm:$0xff] %v1585_v1  ;;  %v1460_v7 = vmul.f32 0.2, %v1042_v61  ;;  %vm1267_vm15 = vcmp.ge.f32.partialorder %v717_v2, 0.0  ;;  %v1395_v8 = vmul.f32 0.2, %v717_v2  ;;  %v732_v13 = vadd.f32 %v2074_v4, %v2800_v9 }
 0x116   :  { %vm1331_vm0 = vcmp.ge.f32.partialorder %v1037_v3, 0.0  ;;  %v1459_v10 = vmul.f32 0.2, %v1037_v3  ;;  %v1524_v11 = vsel %vm1268_vm13, %v722_v60, %v1396_v6  ;;  %v1052_v14 = vadd.f32 %v2170_v5, %v2800_v9  ;;  %v726_v15 = vpop.f32.mrb[25].mxu0  ;;  %v1046_v16 = vpop.f32.mrb[25].mxu1 }
 0x117   :  { %v1588_v12 = vsel %vm1332_vm14, %v1042_v61, %v1460_v7  ;;  %1652 = vst [vmem:[%s3322_s3 + $0xb8] sm:$0xff] %v1524_v11  ;;  %v1523_v17 = vsel %vm1267_vm15, %v717_v2, %v1395_v8  ;;  %v727_v19 = vadd.f32 %v2800_v9, %v726_v15  ;;  %v1047_v20 = vadd.f32 %v2800_v9, %v1046_v16  ;;  %v2077_v21 = vpop.f32.mrb[26].mxu0  ;;  %v2173_v22 = vpop.f32.mrb[26].mxu1 }
 0x118   :  { %1716 = vst [vmem:[%s3322_s3 + $0x2b8] sm:$0xff] %v1588_v12  ;;  %v1587_v18 = vsel %vm1331_vm0, %v1037_v3, %v1459_v10  ;;  %1651 = vst [vmem:[%s3322_s3 + $0xb0] sm:$0xff] %v1523_v17  ;;  %vm1270_vm1 = vcmp.ge.f32.partialorder %v732_v13, 0.0  ;;  %v1398_v23 = vmul.f32 0.2, %v732_v13  ;;  %vm1334_vm2 = vcmp.ge.f32.partialorder %v1052_v14, 0.0 }
 0x119   :  { %1715 = vst [vmem:[%s3322_s3 + $0x2b0] sm:$0xff] %v1587_v18  ;;  %v1462_v24 = vmul.f32 0.2, %v1052_v14  ;;  %vm1269_vm3 = vcmp.ge.f32.partialorder %v727_v19, 0.0  ;;  %v1397_v25 = vmul.f32 0.2, %v727_v19  ;;  %v742_v29 = vadd.f32 %v2077_v21, %v2800_v9 }
 0x11a   :  { %vm1333_vm4 = vcmp.ge.f32.partialorder %v1047_v20, 0.0  ;;  %v1461_v26 = vmul.f32 0.2, %v1047_v20  ;;  %v1526_v27 = vsel %vm1270_vm1, %v732_v13, %v1398_v23  ;;  %v1062_v30 = vadd.f32 %v2173_v22, %v2800_v9  ;;  %v736_v31 = vpop.f32.mrb[27].mxu0  ;;  %v1056_v32 = vpop.f32.mrb[27].mxu1 }
 0x11b   :  { %v1590_v28 = vsel %vm1334_vm2, %v1052_v14, %v1462_v24  ;;  %1654 = vst [vmem:[%s3322_s3 + $0xc8] sm:$0xff] %v1526_v27  ;;  %v1525_v33 = vsel %vm1269_vm3, %v727_v19, %v1397_v25  ;;  %v737_v35 = vadd.f32 %v2800_v9, %v736_v31  ;;  %v1057_v36 = vadd.f32 %v2800_v9, %v1056_v32  ;;  %v2080_v37 = vpop.f32.mrb[28].mxu0  ;;  %v2176_v38 = vpop.f32.mrb[28].mxu1 }
 0x11c   :  { %1718 = vst [vmem:[%s3322_s3 + $0x2c8] sm:$0xff] %v1590_v28  ;;  %v1589_v34 = vsel %vm1333_vm4, %v1047_v20, %v1461_v26  ;;  %1653 = vst [vmem:[%s3322_s3 + $0xc0] sm:$0xff] %v1525_v33  ;;  %vm1272_vm5 = vcmp.ge.f32.partialorder %v742_v29, 0.0  ;;  %v1400_v39 = vmul.f32 0.2, %v742_v29  ;;  %vm1336_vm6 = vcmp.ge.f32.partialorder %v1062_v30, 0.0 }
 0x11d   :  { %1717 = vst [vmem:[%s3322_s3 + $0x2c0] sm:$0xff] %v1589_v34  ;;  %v1464_v40 = vmul.f32 0.2, %v1062_v30  ;;  %vm1271_vm7 = vcmp.ge.f32.partialorder %v737_v35, 0.0  ;;  %v1399_v41 = vmul.f32 0.2, %v737_v35  ;;  %v752_v45 = vadd.f32 %v2080_v37, %v2800_v9 }
 0x11e   :  { %vm1335_vm8 = vcmp.ge.f32.partialorder %v1057_v36, 0.0  ;;  %v1463_v42 = vmul.f32 0.2, %v1057_v36  ;;  %v1528_v43 = vsel %vm1272_vm5, %v742_v29, %v1400_v39  ;;  %v1072_v46 = vadd.f32 %v2176_v38, %v2800_v9  ;;  %v746_v47 = vpop.f32.mrb[29].mxu0  ;;  %v1066_v48 = vpop.f32.mrb[29].mxu1 }
 0x11f   :  { %v1592_v44 = vsel %vm1336_vm6, %v1062_v30, %v1464_v40  ;;  %1656 = vst [vmem:[%s3322_s3 + $0xd8] sm:$0xff] %v1528_v43  ;;  %v1527_v49 = vsel %vm1271_vm7, %v737_v35, %v1399_v41  ;;  %v747_v51 = vadd.f32 %v2800_v9, %v746_v47  ;;  %v1067_v52 = vadd.f32 %v2800_v9, %v1066_v48  ;;  %v2083_v53 = vpop.f32.mrb[30].mxu0  ;;  %v2179_v54 = vpop.f32.mrb[30].mxu1 }
 0x120   :  { %1720 = vst [vmem:[%s3322_s3 + $0x2d8] sm:$0xff] %v1592_v44  ;;  %v1591_v50 = vsel %vm1335_vm8, %v1057_v36, %v1463_v42  ;;  %1655 = vst [vmem:[%s3322_s3 + $0xd0] sm:$0xff] %v1527_v49  ;;  %vm1274_vm9 = vcmp.ge.f32.partialorder %v752_v45, 0.0  ;;  %v1402_v55 = vmul.f32 0.2, %v752_v45  ;;  %vm1338_vm10 = vcmp.ge.f32.partialorder %v1072_v46, 0.0 }
 0x121   :  { %1719 = vst [vmem:[%s3322_s3 + $0x2d0] sm:$0xff] %v1591_v50  ;;  %v1466_v56 = vmul.f32 0.2, %v1072_v46  ;;  %vm1273_vm11 = vcmp.ge.f32.partialorder %v747_v51, 0.0  ;;  %v1401_v57 = vmul.f32 0.2, %v747_v51  ;;  %v762_v61 = vadd.f32 %v2083_v53, %v2800_v9 }
 0x122   :  { %vm1337_vm12 = vcmp.ge.f32.partialorder %v1067_v52, 0.0  ;;  %v1465_v58 = vmul.f32 0.2, %v1067_v52  ;;  %v1530_v59 = vsel %vm1274_vm9, %v752_v45, %v1402_v55  ;;  %v1082_v62 = vadd.f32 %v2179_v54, %v2800_v9  ;;  %v756_v63 = vpop.f32.mrb[31].mxu0  ;;  %v1076_v0 = vpop.f32.mrb[31].mxu1 }
 0x123   :  { %v1594_v60 = vsel %vm1338_vm10, %v1072_v46, %v1466_v56  ;;  %1658 = vst [vmem:[%s3322_s3 + $0xe8] sm:$0xff] %v1530_v59  ;;  %v1529_v1 = vsel %vm1273_vm11, %v747_v51, %v1401_v57  ;;  %v757_v3 = vadd.f32 %v2800_v9, %v756_v63  ;;  %v1077_v4 = vadd.f32 %v2800_v9, %v1076_v0  ;;  %v2086_v5 = vpop.f32.mrb[32].mxu0  ;;  %v2182_v6 = vpop.f32.mrb[32].mxu1 }
 0x124   :  { %1722 = vst [vmem:[%s3322_s3 + $0x2e8] sm:$0xff] %v1594_v60  ;;  %v1593_v2 = vsel %vm1337_vm12, %v1067_v52, %v1465_v58  ;;  %1657 = vst [vmem:[%s3322_s3 + $0xe0] sm:$0xff] %v1529_v1  ;;  %vm1276_vm13 = vcmp.ge.f32.partialorder %v762_v61, 0.0  ;;  %v1404_v7 = vmul.f32 0.2, %v762_v61  ;;  %vm1340_vm14 = vcmp.ge.f32.partialorder %v1082_v62, 0.0 }
 0x125   :  { %1721 = vst [vmem:[%s3322_s3 + $0x2e0] sm:$0xff] %v1593_v2  ;;  %v1468_v8 = vmul.f32 0.2, %v1082_v62  ;;  %vm1275_vm15 = vcmp.ge.f32.partialorder %v757_v3, 0.0  ;;  %v1403_v10 = vmul.f32 0.2, %v757_v3  ;;  %v772_v14 = vadd.f32 %v2086_v5, %v2800_v9 }
 0x126   :  { %vm1339_vm0 = vcmp.ge.f32.partialorder %v1077_v4, 0.0  ;;  %v1467_v11 = vmul.f32 0.2, %v1077_v4  ;;  %v1532_v12 = vsel %vm1276_vm13, %v762_v61, %v1404_v7  ;;  %v1092_v15 = vadd.f32 %v2182_v6, %v2800_v9  ;;  %v766_v16 = vpop.f32.mrb[33].mxu0  ;;  %v1086_v17 = vpop.f32.mrb[33].mxu1 }
 0x127   :  { %v1596_v13 = vsel %vm1340_vm14, %v1082_v62, %v1468_v8  ;;  %1660 = vst [vmem:[%s3322_s3 + $0xf8] sm:$0xff] %v1532_v12  ;;  %v1531_v18 = vsel %vm1275_vm15, %v757_v3, %v1403_v10  ;;  %v767_v20 = vadd.f32 %v2800_v9, %v766_v16  ;;  %v1087_v21 = vadd.f32 %v2800_v9, %v1086_v17  ;;  %v2089_v22 = vpop.f32.mrb[34].mxu0  ;;  %v2185_v23 = vpop.f32.mrb[34].mxu1 }
 0x128   :  { %1724 = vst [vmem:[%s3322_s3 + $0x2f8] sm:$0xff] %v1596_v13  ;;  %v1595_v19 = vsel %vm1339_vm0, %v1077_v4, %v1467_v11  ;;  %1659 = vst [vmem:[%s3322_s3 + $0xf0] sm:$0xff] %v1531_v18  ;;  %vm1278_vm1 = vcmp.ge.f32.partialorder %v772_v14, 0.0  ;;  %v1406_v24 = vmul.f32 0.2, %v772_v14  ;;  %vm1342_vm2 = vcmp.ge.f32.partialorder %v1092_v15, 0.0 }
 0x129   :  { %1723 = vst [vmem:[%s3322_s3 + $0x2f0] sm:$0xff] %v1595_v19  ;;  %v1470_v25 = vmul.f32 0.2, %v1092_v15  ;;  %vm1277_vm3 = vcmp.ge.f32.partialorder %v767_v20, 0.0  ;;  %v1405_v26 = vmul.f32 0.2, %v767_v20  ;;  %v782_v30 = vadd.f32 %v2089_v22, %v2800_v9 }
 0x12a   :  { %vm1341_vm4 = vcmp.ge.f32.partialorder %v1087_v21, 0.0  ;;  %v1469_v27 = vmul.f32 0.2, %v1087_v21  ;;  %v1534_v28 = vsel %vm1278_vm1, %v772_v14, %v1406_v24  ;;  %v1102_v31 = vadd.f32 %v2185_v23, %v2800_v9  ;;  %v776_v32 = vpop.f32.mrb[35].mxu0  ;;  %v1096_v33 = vpop.f32.mrb[35].mxu1 }
 0x12b   :  { %v1598_v29 = vsel %vm1342_vm2, %v1092_v15, %v1470_v25  ;;  %1662 = vst [vmem:[%s3322_s3 + $0x108] sm:$0xff] %v1534_v28  ;;  %v1533_v34 = vsel %vm1277_vm3, %v767_v20, %v1405_v26  ;;  %v777_v36 = vadd.f32 %v2800_v9, %v776_v32  ;;  %v1097_v37 = vadd.f32 %v2800_v9, %v1096_v33  ;;  %v2092_v38 = vpop.f32.mrb[36].mxu0  ;;  %v2188_v39 = vpop.f32.mrb[36].mxu1 }
 0x12c   :  { %1726 = vst [vmem:[%s3322_s3 + $0x308] sm:$0xff] %v1598_v29  ;;  %v1597_v35 = vsel %vm1341_vm4, %v1087_v21, %v1469_v27  ;;  %1661 = vst [vmem:[%s3322_s3 + $0x100] sm:$0xff] %v1533_v34  ;;  %vm1280_vm5 = vcmp.ge.f32.partialorder %v782_v30, 0.0  ;;  %v1408_v40 = vmul.f32 0.2, %v782_v30  ;;  %vm1344_vm6 = vcmp.ge.f32.partialorder %v1102_v31, 0.0 }
 0x12d   :  { %1725 = vst [vmem:[%s3322_s3 + $0x300] sm:$0xff] %v1597_v35  ;;  %v1472_v41 = vmul.f32 0.2, %v1102_v31  ;;  %vm1279_vm7 = vcmp.ge.f32.partialorder %v777_v36, 0.0  ;;  %v1407_v42 = vmul.f32 0.2, %v777_v36  ;;  %v792_v46 = vadd.f32 %v2092_v38, %v2800_v9 }
 0x12e   :  { %vm1343_vm8 = vcmp.ge.f32.partialorder %v1097_v37, 0.0  ;;  %v1471_v43 = vmul.f32 0.2, %v1097_v37  ;;  %v1536_v44 = vsel %vm1280_vm5, %v782_v30, %v1408_v40  ;;  %v1112_v47 = vadd.f32 %v2188_v39, %v2800_v9  ;;  %v786_v48 = vpop.f32.mrb[37].mxu0  ;;  %v1106_v49 = vpop.f32.mrb[37].mxu1 }
 0x12f   :  { %v1600_v45 = vsel %vm1344_vm6, %v1102_v31, %v1472_v41  ;;  %1664 = vst [vmem:[%s3322_s3 + $0x118] sm:$0xff] %v1536_v44  ;;  %v1535_v50 = vsel %vm1279_vm7, %v777_v36, %v1407_v42  ;;  %v787_v52 = vadd.f32 %v2800_v9, %v786_v48  ;;  %v1107_v53 = vadd.f32 %v2800_v9, %v1106_v49  ;;  %v2095_v54 = vpop.f32.mrb[38].mxu0  ;;  %v2191_v55 = vpop.f32.mrb[38].mxu1 }
 0x130   :  { %1728 = vst [vmem:[%s3322_s3 + $0x318] sm:$0xff] %v1600_v45  ;;  %v1599_v51 = vsel %vm1343_vm8, %v1097_v37, %v1471_v43  ;;  %1663 = vst [vmem:[%s3322_s3 + $0x110] sm:$0xff] %v1535_v50  ;;  %vm1282_vm9 = vcmp.ge.f32.partialorder %v792_v46, 0.0  ;;  %v1410_v56 = vmul.f32 0.2, %v792_v46  ;;  %vm1346_vm10 = vcmp.ge.f32.partialorder %v1112_v47, 0.0 }
 0x131   :  { %1727 = vst [vmem:[%s3322_s3 + $0x310] sm:$0xff] %v1599_v51  ;;  %v1474_v57 = vmul.f32 0.2, %v1112_v47  ;;  %vm1281_vm11 = vcmp.ge.f32.partialorder %v787_v52, 0.0  ;;  %v1409_v58 = vmul.f32 0.2, %v787_v52  ;;  %v802_v62 = vadd.f32 %v2095_v54, %v2800_v9 }
 0x132   :  { %vm1345_vm12 = vcmp.ge.f32.partialorder %v1107_v53, 0.0  ;;  %v1473_v59 = vmul.f32 0.2, %v1107_v53  ;;  %v1538_v60 = vsel %vm1282_vm9, %v792_v46, %v1410_v56  ;;  %v1122_v63 = vadd.f32 %v2191_v55, %v2800_v9  ;;  %v796_v0 = vpop.f32.mrb[39].mxu0  ;;  %v1116_v1 = vpop.f32.mrb[39].mxu1 }
 0x133   :  { %v1602_v61 = vsel %vm1346_vm10, %v1112_v47, %v1474_v57  ;;  %1666 = vst [vmem:[%s3322_s3 + $0x128] sm:$0xff] %v1538_v60  ;;  %v1537_v2 = vsel %vm1281_vm11, %v787_v52, %v1409_v58  ;;  %v797_v4 = vadd.f32 %v2800_v9, %v796_v0  ;;  %v1117_v5 = vadd.f32 %v2800_v9, %v1116_v1  ;;  %v2098_v6 = vpop.f32.mrb[40].mxu0  ;;  %v2194_v7 = vpop.f32.mrb[40].mxu1  ;;  %v3145_v46 = vld [vmem:[%s3321_s2] ss:$0 sm:$0xff] }
 0x134   :  { %1730 = vst [vmem:[%s3322_s3 + $0x328] sm:$0xff] %v1602_v61  ;;  %v1601_v3 = vsel %vm1345_vm12, %v1107_v53, %v1473_v59  ;;  %1665 = vst [vmem:[%s3322_s3 + $0x120] sm:$0xff] %v1537_v2  ;;  %vm1284_vm13 = vcmp.ge.f32.partialorder %v802_v62, 0.0  ;;  %v1412_v8 = vmul.f32 0.2, %v802_v62  ;;  %vm1348_vm14 = vcmp.ge.f32.partialorder %v1122_v63, 0.0 }
 0x135   :  { %1729 = vst [vmem:[%s3322_s3 + $0x320] sm:$0xff] %v1601_v3  ;;  %v1476_v10 = vmul.f32 0.2, %v1122_v63  ;;  %vm1283_vm15 = vcmp.ge.f32.partialorder %v797_v4, 0.0  ;;  %v1411_v11 = vmul.f32 0.2, %v797_v4  ;;  %v812_v15 = vadd.f32 %v2098_v6, %v2800_v9 }
 0x136   :  { %vm1347_vm0 = vcmp.ge.f32.partialorder %v1117_v5, 0.0  ;;  %v1475_v12 = vmul.f32 0.2, %v1117_v5  ;;  %v1540_v13 = vsel %vm1284_vm13, %v802_v62, %v1412_v8  ;;  %v1132_v16 = vadd.f32 %v2194_v7, %v2800_v9  ;;  %v806_v17 = vpop.f32.mrb[41].mxu0  ;;  %v1126_v18 = vpop.f32.mrb[41].mxu1 }
 0x137   :  { %v1604_v14 = vsel %vm1348_vm14, %v1122_v63, %v1476_v10  ;;  %1668 = vst [vmem:[%s3322_s3 + $0x138] sm:$0xff] %v1540_v13  ;;  %v1539_v19 = vsel %vm1283_vm15, %v797_v4, %v1411_v11  ;;  %v807_v21 = vadd.f32 %v2800_v9, %v806_v17  ;;  %v1127_v22 = vadd.f32 %v2800_v9, %v1126_v18  ;;  %v2101_v23 = vpop.f32.mrb[42].mxu0  ;;  %v2197_v24 = vpop.f32.mrb[42].mxu1 }
 0x138   :  { %1732 = vst [vmem:[%s3322_s3 + $0x338] sm:$0xff] %v1604_v14  ;;  %v1603_v20 = vsel %vm1347_vm0, %v1117_v5, %v1475_v12  ;;  %1667 = vst [vmem:[%s3322_s3 + $0x130] sm:$0xff] %v1539_v19  ;;  %vm1286_vm1 = vcmp.ge.f32.partialorder %v812_v15, 0.0  ;;  %v1414_v25 = vmul.f32 0.2, %v812_v15  ;;  %vm1350_vm2 = vcmp.ge.f32.partialorder %v1132_v16, 0.0 }
 0x139   :  { %1731 = vst [vmem:[%s3322_s3 + $0x330] sm:$0xff] %v1603_v20  ;;  %v1478_v26 = vmul.f32 0.2, %v1132_v16  ;;  %vm1285_vm3 = vcmp.ge.f32.partialorder %v807_v21, 0.0  ;;  %v1413_v27 = vmul.f32 0.2, %v807_v21  ;;  %v822_v31 = vadd.f32 %v2101_v23, %v2800_v9 }
 0x13a   :  { %vm1349_vm4 = vcmp.ge.f32.partialorder %v1127_v22, 0.0  ;;  %v1477_v28 = vmul.f32 0.2, %v1127_v22  ;;  %v1542_v29 = vsel %vm1286_vm1, %v812_v15, %v1414_v25  ;;  %v1142_v32 = vadd.f32 %v2197_v24, %v2800_v9  ;;  %v816_v33 = vpop.f32.mrb[43].mxu0  ;;  %v1136_v34 = vpop.f32.mrb[43].mxu1 }
 0x13b   :  { %v1606_v30 = vsel %vm1350_vm2, %v1132_v16, %v1478_v26  ;;  %1670 = vst [vmem:[%s3322_s3 + $0x148] sm:$0xff] %v1542_v29  ;;  %v1541_v35 = vsel %vm1285_vm3, %v807_v21, %v1413_v27  ;;  %v817_v37 = vadd.f32 %v2800_v9, %v816_v33  ;;  %v1137_v38 = vadd.f32 %v2800_v9, %v1136_v34  ;;  %v2104_v39 = vpop.f32.mrb[44].mxu0  ;;  %v2200_v40 = vpop.f32.mrb[44].mxu1 }
 0x13c   :  { %1734 = vst [vmem:[%s3322_s3 + $0x348] sm:$0xff] %v1606_v30  ;;  %v1605_v36 = vsel %vm1349_vm4, %v1127_v22, %v1477_v28  ;;  %1669 = vst [vmem:[%s3322_s3 + $0x140] sm:$0xff] %v1541_v35  ;;  %vm1288_vm5 = vcmp.ge.f32.partialorder %v822_v31, 0.0  ;;  %v1416_v41 = vmul.f32 0.2, %v822_v31  ;;  %vm1352_vm6 = vcmp.ge.f32.partialorder %v1142_v32, 0.0 }
 0x13d   :  { %1733 = vst [vmem:[%s3322_s3 + $0x340] sm:$0xff] %v1605_v36  ;;  %v1480_v42 = vmul.f32 0.2, %v1142_v32  ;;  %vm1287_vm7 = vcmp.ge.f32.partialorder %v817_v37, 0.0  ;;  %v1415_v43 = vmul.f32 0.2, %v817_v37  ;;  %v832_v47 = vadd.f32 %v3145_v46, %v2104_v39 }
 0x13e   :  { %vm1351_vm8 = vcmp.ge.f32.partialorder %v1137_v38, 0.0  ;;  %v1479_v44 = vmul.f32 0.2, %v1137_v38  ;;  %v1544_v45 = vsel %vm1288_vm5, %v822_v31, %v1416_v41  ;;  %v1152_v48 = vadd.f32 %v3145_v46, %v2200_v40  ;;  %v826_v49 = vpop.f32.mrb[45].mxu0  ;;  %v1146_v50 = vpop.f32.mrb[45].mxu1 }
 0x13f   :  { %v1608_v9 = vsel %vm1352_vm6, %v1142_v32, %v1480_v42  ;;  %1672 = vst [vmem:[%s3322_s3 + $0x158] sm:$0xff] %v1544_v45  ;;  %v1543_v51 = vsel %vm1287_vm7, %v817_v37, %v1415_v43  ;;  %v827_v53 = vadd.f32 %v3145_v46, %v826_v49  ;;  %v1147_v54 = vadd.f32 %v3145_v46, %v1146_v50  ;;  %v2107_v55 = vpop.f32.mrb[46].mxu0  ;;  %v2203_v56 = vpop.f32.mrb[46].mxu1 }
 0x140   :  { %1736 = vst [vmem:[%s3322_s3 + $0x358] sm:$0xff] %v1608_v9  ;;  %v1607_v52 = vsel %vm1351_vm8, %v1137_v38, %v1479_v44  ;;  %1671 = vst [vmem:[%s3322_s3 + $0x150] sm:$0xff] %v1543_v51  ;;  %vm1290_vm9 = vcmp.ge.f32.partialorder %v832_v47, 0.0  ;;  %v1418_v57 = vmul.f32 0.2, %v832_v47  ;;  %vm1354_vm10 = vcmp.ge.f32.partialorder %v1152_v48, 0.0 }
 0x141   :  { %1735 = vst [vmem:[%s3322_s3 + $0x350] sm:$0xff] %v1607_v52  ;;  %v1482_v58 = vmul.f32 0.2, %v1152_v48  ;;  %vm1289_vm11 = vcmp.ge.f32.partialorder %v827_v53, 0.0  ;;  %v1417_v59 = vmul.f32 0.2, %v827_v53  ;;  %v842_v63 = vadd.f32 %v3145_v46, %v2107_v55 }
 0x142   :  { %vm1353_vm12 = vcmp.ge.f32.partialorder %v1147_v54, 0.0  ;;  %v1481_v60 = vmul.f32 0.2, %v1147_v54  ;;  %v1546_v61 = vsel %vm1290_vm9, %v832_v47, %v1418_v57  ;;  %v1162_v0 = vadd.f32 %v3145_v46, %v2203_v56  ;;  %v836_v1 = vpop.f32.mrb[47].mxu0  ;;  %v1156_v2 = vpop.f32.mrb[47].mxu1 }
 0x143   :  { %v1610_v62 = vsel %vm1354_vm10, %v1152_v48, %v1482_v58  ;;  %1674 = vst [vmem:[%s3322_s3 + $0x168] sm:$0xff] %v1546_v61  ;;  %v1545_v3 = vsel %vm1289_vm11, %v827_v53, %v1417_v59  ;;  %v837_v5 = vadd.f32 %v3145_v46, %v836_v1  ;;  %v1157_v6 = vadd.f32 %v3145_v46, %v1156_v2  ;;  %v2110_v7 = vpop.f32.mrb[48].mxu0  ;;  %v2206_v8 = vpop.f32.mrb[48].mxu1 }
 0x144   :  { %1738 = vst [vmem:[%s3322_s3 + $0x368] sm:$0xff] %v1610_v62  ;;  %v1609_v4 = vsel %vm1353_vm12, %v1147_v54, %v1481_v60  ;;  %1673 = vst [vmem:[%s3322_s3 + $0x160] sm:$0xff] %v1545_v3  ;;  %vm1292_vm13 = vcmp.ge.f32.partialorder %v842_v63, 0.0  ;;  %v1420_v10 = vmul.f32 0.2, %v842_v63  ;;  %vm1356_vm14 = vcmp.ge.f32.partialorder %v1162_v0, 0.0 }
 0x145   :  { %1737 = vst [vmem:[%s3322_s3 + $0x360] sm:$0xff] %v1609_v4  ;;  %v1484_v11 = vmul.f32 0.2, %v1162_v0  ;;  %vm1291_vm15 = vcmp.ge.f32.partialorder %v837_v5, 0.0  ;;  %v1419_v12 = vmul.f32 0.2, %v837_v5  ;;  %v852_v16 = vadd.f32 %v3145_v46, %v2110_v7 }
 0x146   :  { %vm1355_vm0 = vcmp.ge.f32.partialorder %v1157_v6, 0.0  ;;  %v1483_v13 = vmul.f32 0.2, %v1157_v6  ;;  %v1548_v14 = vsel %vm1292_vm13, %v842_v63, %v1420_v10  ;;  %v1172_v17 = vadd.f32 %v3145_v46, %v2206_v8  ;;  %v846_v18 = vpop.f32.mrb[49].mxu0  ;;  %v1166_v19 = vpop.f32.mrb[49].mxu1 }
 0x147   :  { %v1612_v15 = vsel %vm1356_vm14, %v1162_v0, %v1484_v11  ;;  %1676 = vst [vmem:[%s3322_s3 + $0x178] sm:$0xff] %v1548_v14  ;;  %v1547_v20 = vsel %vm1291_vm15, %v837_v5, %v1419_v12  ;;  %v847_v22 = vadd.f32 %v3145_v46, %v846_v18  ;;  %v1167_v23 = vadd.f32 %v3145_v46, %v1166_v19  ;;  %v2113_v24 = vpop.f32.mrb[50].mxu0  ;;  %v2209_v25 = vpop.f32.mrb[50].mxu1 }
 0x148   :  { %1740 = vst [vmem:[%s3322_s3 + $0x378] sm:$0xff] %v1612_v15  ;;  %v1611_v21 = vsel %vm1355_vm0, %v1157_v6, %v1483_v13  ;;  %1675 = vst [vmem:[%s3322_s3 + $0x170] sm:$0xff] %v1547_v20  ;;  %vm1294_vm1 = vcmp.ge.f32.partialorder %v852_v16, 0.0  ;;  %v1422_v26 = vmul.f32 0.2, %v852_v16  ;;  %vm1358_vm2 = vcmp.ge.f32.partialorder %v1172_v17, 0.0 }
 0x149   :  { %1739 = vst [vmem:[%s3322_s3 + $0x370] sm:$0xff] %v1611_v21  ;;  %v1486_v27 = vmul.f32 0.2, %v1172_v17  ;;  %vm1293_vm3 = vcmp.ge.f32.partialorder %v847_v22, 0.0  ;;  %v1421_v28 = vmul.f32 0.2, %v847_v22  ;;  %v862_v32 = vadd.f32 %v3145_v46, %v2113_v24 }
 0x14a   :  { %vm1357_vm4 = vcmp.ge.f32.partialorder %v1167_v23, 0.0  ;;  %v1485_v29 = vmul.f32 0.2, %v1167_v23  ;;  %v1550_v30 = vsel %vm1294_vm1, %v852_v16, %v1422_v26  ;;  %v1182_v33 = vadd.f32 %v3145_v46, %v2209_v25  ;;  %v856_v34 = vpop.f32.mrb[51].mxu0  ;;  %v1176_v35 = vpop.f32.mrb[51].mxu1 }
 0x14b   :  { %v1614_v31 = vsel %vm1358_vm2, %v1172_v17, %v1486_v27  ;;  %1678 = vst [vmem:[%s3322_s3 + $0x188] sm:$0xff] %v1550_v30  ;;  %v1549_v36 = vsel %vm1293_vm3, %v847_v22, %v1421_v28  ;;  %v857_v38 = vadd.f32 %v3145_v46, %v856_v34  ;;  %v1177_v39 = vadd.f32 %v3145_v46, %v1176_v35  ;;  %v2116_v40 = vpop.f32.mrb[52].mxu0  ;;  %v2212_v41 = vpop.f32.mrb[52].mxu1 }
 0x14c   :  { %1742 = vst [vmem:[%s3322_s3 + $0x388] sm:$0xff] %v1614_v31  ;;  %v1613_v37 = vsel %vm1357_vm4, %v1167_v23, %v1485_v29  ;;  %1677 = vst [vmem:[%s3322_s3 + $0x180] sm:$0xff] %v1549_v36  ;;  %vm1296_vm5 = vcmp.ge.f32.partialorder %v862_v32, 0.0  ;;  %v1424_v42 = vmul.f32 0.2, %v862_v32  ;;  %vm1360_vm6 = vcmp.ge.f32.partialorder %v1182_v33, 0.0 }
 0x14d   :  { %1741 = vst [vmem:[%s3322_s3 + $0x380] sm:$0xff] %v1613_v37  ;;  %v1488_v43 = vmul.f32 0.2, %v1182_v33  ;;  %vm1295_vm7 = vcmp.ge.f32.partialorder %v857_v38, 0.0  ;;  %v1423_v44 = vmul.f32 0.2, %v857_v38  ;;  %v872_v48 = vadd.f32 %v3145_v46, %v2116_v40 }
 0x14e   :  { %vm1359_vm8 = vcmp.ge.f32.partialorder %v1177_v39, 0.0  ;;  %v1487_v45 = vmul.f32 0.2, %v1177_v39  ;;  %v1552_v9 = vsel %vm1296_vm5, %v862_v32, %v1424_v42  ;;  %v1192_v49 = vadd.f32 %v3145_v46, %v2212_v41  ;;  %v866_v50 = vpop.f32.mrb[53].mxu0  ;;  %v1186_v51 = vpop.f32.mrb[53].mxu1 }
 0x14f   :  { %v1616_v47 = vsel %vm1360_vm6, %v1182_v33, %v1488_v43  ;;  %1680 = vst [vmem:[%s3322_s3 + $0x198] sm:$0xff] %v1552_v9  ;;  %v1551_v52 = vsel %vm1295_vm7, %v857_v38, %v1423_v44  ;;  %v867_v54 = vadd.f32 %v3145_v46, %v866_v50  ;;  %v1187_v55 = vadd.f32 %v3145_v46, %v1186_v51  ;;  %v2119_v56 = vpop.f32.mrb[54].mxu0  ;;  %v2215_v57 = vpop.f32.mrb[54].mxu1 }
 0x150   :  { %1744 = vst [vmem:[%s3322_s3 + $0x398] sm:$0xff] %v1616_v47  ;;  %v1615_v53 = vsel %vm1359_vm8, %v1177_v39, %v1487_v45  ;;  %1679 = vst [vmem:[%s3322_s3 + $0x190] sm:$0xff] %v1551_v52  ;;  %vm1298_vm9 = vcmp.ge.f32.partialorder %v872_v48, 0.0  ;;  %v1426_v58 = vmul.f32 0.2, %v872_v48  ;;  %vm1362_vm10 = vcmp.ge.f32.partialorder %v1192_v49, 0.0 }
 0x151   :  { %1743 = vst [vmem:[%s3322_s3 + $0x390] sm:$0xff] %v1615_v53  ;;  %v1490_v59 = vmul.f32 0.2, %v1192_v49  ;;  %vm1297_vm11 = vcmp.ge.f32.partialorder %v867_v54, 0.0  ;;  %v1425_v60 = vmul.f32 0.2, %v867_v54  ;;  %v882_v0 = vadd.f32 %v3145_v46, %v2119_v56 }
 0x152   :  { %vm1361_vm12 = vcmp.ge.f32.partialorder %v1187_v55, 0.0  ;;  %v1489_v61 = vmul.f32 0.2, %v1187_v55  ;;  %v1554_v62 = vsel %vm1298_vm9, %v872_v48, %v1426_v58  ;;  %v1202_v1 = vadd.f32 %v3145_v46, %v2215_v57  ;;  %v876_v2 = vpop.f32.mrb[55].mxu0  ;;  %v1196_v3 = vpop.f32.mrb[55].mxu1 }
 0x153   :  { %v1618_v63 = vsel %vm1362_vm10, %v1192_v49, %v1490_v59  ;;  %1682 = vst [vmem:[%s3322_s3 + $0x1a8] sm:$0xff] %v1554_v62  ;;  %v1553_v4 = vsel %vm1297_vm11, %v867_v54, %v1425_v60  ;;  %v877_v6 = vadd.f32 %v3145_v46, %v876_v2  ;;  %v1197_v7 = vadd.f32 %v3145_v46, %v1196_v3  ;;  %v2122_v8 = vpop.f32.mrb[56].mxu0  ;;  %v2218_v10 = vpop.f32.mrb[56].mxu1 }
 0x154   :  { %1746 = vst [vmem:[%s3322_s3 + $0x3a8] sm:$0xff] %v1618_v63  ;;  %v1617_v5 = vsel %vm1361_vm12, %v1187_v55, %v1489_v61  ;;  %1681 = vst [vmem:[%s3322_s3 + $0x1a0] sm:$0xff] %v1553_v4  ;;  %vm1300_vm13 = vcmp.ge.f32.partialorder %v882_v0, 0.0  ;;  %v1428_v11 = vmul.f32 0.2, %v882_v0  ;;  %vm1364_vm14 = vcmp.ge.f32.partialorder %v1202_v1, 0.0 }
 0x155   :  { %1745 = vst [vmem:[%s3322_s3 + $0x3a0] sm:$0xff] %v1617_v5  ;;  %v1492_v12 = vmul.f32 0.2, %v1202_v1  ;;  %vm1299_vm15 = vcmp.ge.f32.partialorder %v877_v6, 0.0  ;;  %v1427_v13 = vmul.f32 0.2, %v877_v6  ;;  %v892_v17 = vadd.f32 %v3145_v46, %v2122_v8 }
 0x156   :  { %vm1363_vm0 = vcmp.ge.f32.partialorder %v1197_v7, 0.0  ;;  %v1491_v14 = vmul.f32 0.2, %v1197_v7  ;;  %v1556_v15 = vsel %vm1300_vm13, %v882_v0, %v1428_v11  ;;  %v1212_v18 = vadd.f32 %v3145_v46, %v2218_v10  ;;  %v886_v19 = vpop.f32.mrb[57].mxu0  ;;  %v1206_v20 = vpop.f32.mrb[57].mxu1 }
 0x157   :  { %v1620_v16 = vsel %vm1364_vm14, %v1202_v1, %v1492_v12  ;;  %1684 = vst [vmem:[%s3322_s3 + $0x1b8] sm:$0xff] %v1556_v15  ;;  %v1555_v21 = vsel %vm1299_vm15, %v877_v6, %v1427_v13  ;;  %v887_v23 = vadd.f32 %v3145_v46, %v886_v19  ;;  %v1207_v24 = vadd.f32 %v3145_v46, %v1206_v20  ;;  %v2125_v25 = vpop.f32.mrb[58].mxu0  ;;  %v2221_v26 = vpop.f32.mrb[58].mxu1 }
 0x158   :  { %1748 = vst [vmem:[%s3322_s3 + $0x3b8] sm:$0xff] %v1620_v16  ;;  %v1619_v22 = vsel %vm1363_vm0, %v1197_v7, %v1491_v14  ;;  %1683 = vst [vmem:[%s3322_s3 + $0x1b0] sm:$0xff] %v1555_v21  ;;  %vm1302_vm1 = vcmp.ge.f32.partialorder %v892_v17, 0.0  ;;  %v1430_v27 = vmul.f32 0.2, %v892_v17  ;;  %vm1366_vm2 = vcmp.ge.f32.partialorder %v1212_v18, 0.0 }
 0x159   :  { %1747 = vst [vmem:[%s3322_s3 + $0x3b0] sm:$0xff] %v1619_v22  ;;  %v1494_v28 = vmul.f32 0.2, %v1212_v18  ;;  %vm1301_vm3 = vcmp.ge.f32.partialorder %v887_v23, 0.0  ;;  %v1429_v29 = vmul.f32 0.2, %v887_v23  ;;  %v902_v33 = vadd.f32 %v3145_v46, %v2125_v25 }
 0x15a   :  { %vm1365_vm4 = vcmp.ge.f32.partialorder %v1207_v24, 0.0  ;;  %v1493_v30 = vmul.f32 0.2, %v1207_v24  ;;  %v1558_v31 = vsel %vm1302_vm1, %v892_v17, %v1430_v27  ;;  %v1222_v34 = vadd.f32 %v3145_v46, %v2221_v26  ;;  %v896_v35 = vpop.f32.mrb[59].mxu0  ;;  %v1216_v36 = vpop.f32.mrb[59].mxu1 }
 0x15b   :  { %v1622_v32 = vsel %vm1366_vm2, %v1212_v18, %v1494_v28  ;;  %1686 = vst [vmem:[%s3322_s3 + $0x1c8] sm:$0xff] %v1558_v31  ;;  %v1557_v37 = vsel %vm1301_vm3, %v887_v23, %v1429_v29  ;;  %v897_v39 = vadd.f32 %v3145_v46, %v896_v35  ;;  %v1217_v40 = vadd.f32 %v3145_v46, %v1216_v36  ;;  %v2128_v41 = vpop.f32.mrb[60].mxu0  ;;  %v2224_v42 = vpop.f32.mrb[60].mxu1 }
 0x15c   :  { %1750 = vst [vmem:[%s3322_s3 + $0x3c8] sm:$0xff] %v1622_v32  ;;  %v1621_v38 = vsel %vm1365_vm4, %v1207_v24, %v1493_v30  ;;  %1685 = vst [vmem:[%s3322_s3 + $0x1c0] sm:$0xff] %v1557_v37  ;;  %vm1304_vm5 = vcmp.ge.f32.partialorder %v902_v33, 0.0  ;;  %v1432_v43 = vmul.f32 0.2, %v902_v33  ;;  %vm1368_vm6 = vcmp.ge.f32.partialorder %v1222_v34, 0.0 }
 0x15d   :  { %1749 = vst [vmem:[%s3322_s3 + $0x3c0] sm:$0xff] %v1621_v38  ;;  %v1496_v44 = vmul.f32 0.2, %v1222_v34  ;;  %vm1303_vm7 = vcmp.ge.f32.partialorder %v897_v39, 0.0  ;;  %v1431_v45 = vmul.f32 0.2, %v897_v39  ;;  %v912_v49 = vadd.f32 %v3145_v46, %v2128_v41 }
 0x15e   :  { %vm1367_vm8 = vcmp.ge.f32.partialorder %v1217_v40, 0.0  ;;  %v1495_v9 = vmul.f32 0.2, %v1217_v40  ;;  %v1560_v47 = vsel %vm1304_vm5, %v902_v33, %v1432_v43  ;;  %v1232_v50 = vadd.f32 %v3145_v46, %v2224_v42  ;;  %v906_v51 = vpop.f32.mrb[61].mxu0  ;;  %v1226_v52 = vpop.f32.mrb[61].mxu1 }
 0x15f   :  { %v1624_v48 = vsel %vm1368_vm6, %v1222_v34, %v1496_v44  ;;  %1688 = vst [vmem:[%s3322_s3 + $0x1d8] sm:$0xff] %v1560_v47  ;;  %v1559_v53 = vsel %vm1303_vm7, %v897_v39, %v1431_v45  ;;  %v907_v55 = vadd.f32 %v3145_v46, %v906_v51  ;;  %v1227_v56 = vadd.f32 %v3145_v46, %v1226_v52  ;;  %v2131_v57 = vpop.f32.mrb[62].mxu0  ;;  %v2227_v58 = vpop.f32.mrb[62].mxu1 }
 0x160   :  { %1752 = vst [vmem:[%s3322_s3 + $0x3d8] sm:$0xff] %v1624_v48  ;;  %v1623_v54 = vsel %vm1367_vm8, %v1217_v40, %v1495_v9  ;;  %1687 = vst [vmem:[%s3322_s3 + $0x1d0] sm:$0xff] %v1559_v53  ;;  %vm1306_vm9 = vcmp.ge.f32.partialorder %v912_v49, 0.0  ;;  %v1434_v59 = vmul.f32 0.2, %v912_v49  ;;  %vm1370_vm10 = vcmp.ge.f32.partialorder %v1232_v50, 0.0 }
 0x161   :  { %1751 = vst [vmem:[%s3322_s3 + $0x3d0] sm:$0xff] %v1623_v54  ;;  %v1498_v60 = vmul.f32 0.2, %v1232_v50  ;;  %vm1305_vm11 = vcmp.ge.f32.partialorder %v907_v55, 0.0  ;;  %v1433_v61 = vmul.f32 0.2, %v907_v55  ;;  %v922_v1 = vadd.f32 %v3145_v46, %v2131_v57 }
 0x162   :  { %vm1369_vm12 = vcmp.ge.f32.partialorder %v1227_v56, 0.0  ;;  %v1497_v62 = vmul.f32 0.2, %v1227_v56  ;;  %v1562_v63 = vsel %vm1306_vm9, %v912_v49, %v1434_v59  ;;  %v1242_v2 = vadd.f32 %v3145_v46, %v2227_v58  ;;  %v916_v3 = vpop.f32.mrb[63].mxu0  ;;  %v1236_v4 = vpop.f32.mrb[63].mxu1 }
 0x163   :  { %v1626_v0 = vsel %vm1370_vm10, %v1232_v50, %v1498_v60  ;;  %1690 = vst [vmem:[%s3322_s3 + $0x1e8] sm:$0xff] %v1562_v63  ;;  %v1561_v5 = vsel %vm1305_vm11, %v907_v55, %v1433_v61  ;;  %v917_v7 = vadd.f32 %v3145_v46, %v916_v3  ;;  %v1237_v8 = vadd.f32 %v3145_v46, %v1236_v4 }
 0x164   :  { %1754 = vst [vmem:[%s3322_s3 + $0x3e8] sm:$0xff] %v1626_v0  ;;  %v1625_v6 = vsel %vm1369_vm12, %v1227_v56, %v1497_v62  ;;  %1689 = vst [vmem:[%s3322_s3 + $0x1e0] sm:$0xff] %v1561_v5  ;;  %vm1308_vm13 = vcmp.ge.f32.partialorder %v922_v1, 0.0  ;;  %v1436_v10 = vmul.f32 0.2, %v922_v1  ;;  %vm1372_vm14 = vcmp.ge.f32.partialorder %v1242_v2, 0.0 }
 0x165   :  { %1753 = vst [vmem:[%s3322_s3 + $0x3e0] sm:$0xff] %v1625_v6  ;;  %v1500_v11 = vmul.f32 0.2, %v1242_v2  ;;  %vm1307_vm15 = vcmp.ge.f32.partialorder %v917_v7, 0.0  ;;  %v1435_v12 = vmul.f32 0.2, %v917_v7 }
 0x166   :  { %vm1371_vm0 = vcmp.ge.f32.partialorder %v1237_v8, 0.0  ;;  %v1499_v13 = vmul.f32 0.2, %v1237_v8  ;;  %v1564_v14 = vsel %vm1308_vm13, %v922_v1, %v1436_v10 }
 0x167   :  { %v1628_v15 = vsel %vm1372_vm14, %v1242_v2, %v1500_v11  ;;  %1692 = vst [vmem:[%s3322_s3 + $0x1f8] sm:$0xff] %v1564_v14  ;;  %v1563_v46 = vsel %vm1307_vm15, %v917_v7, %v1435_v12 }
 0x168   :  { %1756 = vst [vmem:[%s3322_s3 + $0x3f8] sm:$0xff] %v1628_v15  ;;  %v1627_v16 = vsel %vm1371_vm0, %v1237_v8, %v1499_v13  ;;  %1691 = vst [vmem:[%s3322_s3 + $0x1f0] sm:$0xff] %v1563_v46 }
 0x169   :  { %1755 = vst [vmem:[%s3322_s3 + $0x3f0] sm:$0xff] %v1627_v16 }

// kernel: _lambda_.6
= control target key start
LH: loop header
LB: loop body
LE: loop exit
PB: predicated region body
PF: predicated region fallthrough
CT: control target
= control target key end

     0   :  { %s1511_s1 = inlined_call_operand.vmem [shape: f32[128,128], index: 1, kind: input, shape index: {}]   ;;  %s1512_s0 = inlined_call_operand.vmem [shape: f32[256,128], index: 0, kind: input, shape index: {}]   ;;  %s1513_s2 = inlined_call_operand.vmem [shape: f32[1,128], index: 2, kind: input, shape index: {}]   ;;  %s1514_s3 = inlined_call_operand.vmem [shape: f32[1,128], index: 3, kind: input, shape index: {}]   ;;  %s1515_s4 = inlined_call_operand.vmem [shape: f32[256,128], index: 4, kind: output, shape index: {}]  }
   0x1   :  { %v49_v0 = vld [vmem:[%s1511_s1] sm:$0xff]  ;;  %v50_v1 = vld [vmem:[%s1511_s1 + $0x8] sm:$0xff]  ;;  %v51_v2 = vld [vmem:[%s1511_s1 + $0x10] sm:$0xff] }
   0x2   :  { %v771_v3 = vpack.c.bf16 %v50_v1, %v49_v0  ;;  %v52_v4 = vld [vmem:[%s1511_s1 + $0x18] sm:$0xff]  ;;  %v53_v6 = vld [vmem:[%s1511_s1 + $0x20] sm:$0xff]  ;;  %v54_v7 = vld [vmem:[%s1511_s1 + $0x28] sm:$0xff] }
   0x3   :  { %v775_v5 = vpack.c.bf16 %v52_v4, %v51_v2  ;;  %v779_v8 = vpack.c.bf16 %v54_v7, %v53_v6  ;;  %v17_v9 = vld [vmem:[%s1512_s0] sm:$0xff]  ;;  %v55_v10 = vld [vmem:[%s1511_s1 + $0x30] sm:$0xff]  ;;  %v56_v11 = vld [vmem:[%s1511_s1 + $0x38] sm:$0xff] }
   0x4   :  { %772 = vmatprep.subr.bf16.mxu0 %v771_v3  ;;  %803 = vmatprep.subr.bf16.mxu1 %v771_v3  ;;  %v783_v12 = vpack.c.bf16 %v56_v11, %v55_v10  ;;  %v57_v13 = vld [vmem:[%s1511_s1 + $0x40] sm:$0xff]  ;;  %v58_v14 = vld [vmem:[%s1511_s1 + $0x48] sm:$0xff]  ;;  %v59_v17 = vld [vmem:[%s1511_s1 + $0x50] sm:$0xff] }
   0x5   :  { %774 = vmatpush3.bf16.msra.mxu0 %v771_v3  ;;  %811 = vmatpush3.bf16.msra.mxu1 %v771_v3  ;;  %v33_v15 = vld [vmem:[%s1512_s0 + $0x80] sm:$0xff]  ;;  %v787_v16 = vpack.c.bf16 %v58_v14, %v57_v13  ;;  %v60_v18 = vld [vmem:[%s1511_s1 + $0x58] sm:$0xff]  ;;  %v62_v21 = vld [vmem:[%s1511_s1 + $0x68] sm:$0xff] }
   0x6   :  { %776 = vmatprep.subr.bf16.mxu0 %v775_v5  ;;  %804 = vmatprep.subr.bf16.mxu1 %v775_v5  ;;  %v791_v19 = vpack.c.bf16 %v60_v18, %v59_v17  ;;  %v61_v20 = vld [vmem:[%s1511_s1 + $0x60] sm:$0xff]  ;;  %v63_v23 = vld [vmem:[%s1511_s1 + $0x70] sm:$0xff]  ;;  %v64_v24 = vld [vmem:[%s1511_s1 + $0x78] sm:$0xff] }
   0x7   :  { %723 = vmatprep.mubr.f32.mxu0 %v17_v9  ;;  %747 = vmatprep.mubr.f32.mxu1 %v33_v15  ;;  %v795_v22 = vpack.c.bf16 %v62_v21, %v61_v20  ;;  %v799_v25 = vpack.c.bf16 %v64_v24, %v63_v23  ;;  %v18_v26 = vld [vmem:[%s1512_s0 + $0x8] sm:$0xff]  ;;  %v19_v28 = vld [vmem:[%s1512_s0 + $0x10] sm:$0xff]  ;;  %v20_v30 = vld [vmem:[%s1512_s0 + $0x18] sm:$0xff] }
   0x8   :  { %v34_v27 = vld [vmem:[%s1512_s0 + $0x88] sm:$0xff]  ;;  %v35_v29 = vld [vmem:[%s1512_s0 + $0x90] sm:$0xff]  ;;  %v36_v31 = vld [vmem:[%s1512_s0 + $0x98] sm:$0xff] }
   0x9   :  { %778 = vmatpush3.bf16.msra.mxu0 %v775_v5  ;;  %812 = vmatpush3.bf16.msra.mxu1 %v775_v5  ;;  %v21_v32 = vld [vmem:[%s1512_s0 + $0x20] sm:$0xff]  ;;  %v22_v34 = vld [vmem:[%s1512_s0 + $0x28] sm:$0xff]  ;;  %v23_v36 = vld [vmem:[%s1512_s0 + $0x30] sm:$0xff] }
   0xa   :  { %780 = vmatprep.subr.bf16.mxu0 %v779_v8  ;;  %805 = vmatprep.subr.bf16.mxu1 %v779_v8  ;;  %v37_v33 = vld [vmem:[%s1512_s0 + $0xa0] sm:$0xff]  ;;  %v38_v35 = vld [vmem:[%s1512_s0 + $0xa8] sm:$0xff]  ;;  %v39_v37 = vld [vmem:[%s1512_s0 + $0xb0] sm:$0xff] }
   0xb   :  { %v24_v38 = vld [vmem:[%s1512_s0 + $0x38] sm:$0xff]  ;;  %v25_v40 = vld [vmem:[%s1512_s0 + $0x40] sm:$0xff]  ;;  %v26_v42 = vld [vmem:[%s1512_s0 + $0x48] sm:$0xff] }
   0xc   :  { %v40_v39 = vld [vmem:[%s1512_s0 + $0xb8] sm:$0xff]  ;;  %v41_v41 = vld [vmem:[%s1512_s0 + $0xc0] sm:$0xff]  ;;  %v42_v43 = vld [vmem:[%s1512_s0 + $0xc8] sm:$0xff] }
   0xd   :  { %782 = vmatpush3.bf16.msra.mxu0 %v779_v8  ;;  %813 = vmatpush3.bf16.msra.mxu1 %v779_v8  ;;  %v27_v44 = vld [vmem:[%s1512_s0 + $0x50] sm:$0xff]  ;;  %v28_v46 = vld [vmem:[%s1512_s0 + $0x58] sm:$0xff]  ;;  %v29_v48 = vld [vmem:[%s1512_s0 + $0x60] sm:$0xff] }
   0xe   :  { %784 = vmatprep.subr.bf16.mxu0 %v783_v12  ;;  %806 = vmatprep.subr.bf16.mxu1 %v783_v12  ;;  %v43_v45 = vld [vmem:[%s1512_s0 + $0xd0] sm:$0xff]  ;;  %v44_v47 = vld [vmem:[%s1512_s0 + $0xd8] sm:$0xff]  ;;  %v45_v49 = vld [vmem:[%s1512_s0 + $0xe0] sm:$0xff] }
   0xf   :  { %v30_v50 = vld [vmem:[%s1512_s0 + $0x68] sm:$0xff]  ;;  %v31_v52 = vld [vmem:[%s1512_s0 + $0x70] sm:$0xff]  ;;  %v32_v54 = vld [vmem:[%s1512_s0 + $0x78] sm:$0xff] }
  0x10   :  { %v46_v51 = vld [vmem:[%s1512_s0 + $0xe8] sm:$0xff]  ;;  %v47_v53 = vld [vmem:[%s1512_s0 + $0xf0] sm:$0xff]  ;;  %v48_v55 = vld [vmem:[%s1512_s0 + $0xf8] sm:$0xff] }
  0x11   :  { %786 = vmatpush3.bf16.msra.mxu0 %v783_v12  ;;  %814 = vmatpush3.bf16.msra.mxu1 %v783_v12 }
  0x12   :  { %788 = vmatprep.subr.bf16.mxu0 %v787_v16  ;;  %807 = vmatprep.subr.bf16.mxu1 %v787_v16 }
  0x15   :  { %790 = vmatpush3.bf16.msra.mxu0 %v787_v16  ;;  %815 = vmatpush3.bf16.msra.mxu1 %v787_v16 }
  0x16   :  { %792 = vmatprep.subr.bf16.mxu0 %v791_v19  ;;  %808 = vmatprep.subr.bf16.mxu1 %v791_v19 }
  0x19   :  { %794 = vmatpush3.bf16.msra.mxu0 %v791_v19  ;;  %816 = vmatpush3.bf16.msra.mxu1 %v791_v19 }
  0x1a   :  { %796 = vmatprep.subr.bf16.mxu0 %v795_v22  ;;  %809 = vmatprep.subr.bf16.mxu1 %v795_v22 }
  0x1d   :  { %798 = vmatpush3.bf16.msra.mxu0 %v795_v22  ;;  %817 = vmatpush3.bf16.msra.mxu1 %v795_v22 }
  0x1e   :  { %800 = vmatprep.subr.bf16.mxu0 %v799_v25  ;;  %810 = vmatprep.subr.bf16.mxu1 %v799_v25 }
  0x21   :  { %802 = vmatpush3.bf16.msra.mxu0 %v799_v25  ;;  %818 = vmatpush3.bf16.msra.mxu1 %v799_v25 }
  0x24   :  { %724 = vmatmul.mubr.f32.vlgmr.msra.gmra.mrb[0].mxu0 %v18_v26  ;;  %748 = vmatmul.mubr.f32.vlgmr.msra.gmra.mrb[0].mxu1 %v34_v27 }
  0x25   :  { %726 = vmatprep.mubr.f32.mxu0 %v19_v28  ;;  %750 = vmatprep.mubr.f32.mxu1 %v35_v29 }
  0x28   :  { %727 = vmatmul.mubr.f32.gmra.mrb[2].mxu0 %v20_v30  ;;  %751 = vmatmul.mubr.f32.gmra.mrb[2].mxu1 %v36_v31 }
  0x29   :  { %729 = vmatprep.mubr.f32.mxu0 %v21_v32  ;;  %753 = vmatprep.mubr.f32.mxu1 %v37_v33 }
  0x2c   :  { %730 = vmatmul.mubr.f32.gmra.mrb[4].mxu0 %v22_v34  ;;  %754 = vmatmul.mubr.f32.gmra.mrb[4].mxu1 %v38_v35 }
  0x2d   :  { %732 = vmatprep.mubr.f32.mxu0 %v23_v36  ;;  %756 = vmatprep.mubr.f32.mxu1 %v39_v37 }
  0x30   :  { %733 = vmatmul.mubr.f32.gmra.mrb[6].mxu0 %v24_v38  ;;  %757 = vmatmul.mubr.f32.gmra.mrb[6].mxu1 %v40_v39 }
  0x31   :  { %735 = vmatprep.mubr.f32.mxu0 %v25_v40  ;;  %759 = vmatprep.mubr.f32.mxu1 %v41_v41 }
  0x34   :  { %736 = vmatmul.mubr.f32.gmra.mrb[8].mxu0 %v26_v42  ;;  %760 = vmatmul.mubr.f32.gmra.mrb[8].mxu1 %v42_v43 }
  0x35   :  { %738 = vmatprep.mubr.f32.mxu0 %v27_v44  ;;  %762 = vmatprep.mubr.f32.mxu1 %v43_v45 }
  0x38   :  { %739 = vmatmul.mubr.f32.gmra.mrb[10].mxu0 %v28_v46  ;;  %763 = vmatmul.mubr.f32.gmra.mrb[10].mxu1 %v44_v47 }
  0x39   :  { %741 = vmatprep.mubr.f32.mxu0 %v29_v48  ;;  %765 = vmatprep.mubr.f32.mxu1 %v45_v49 }
  0x3c   :  { %742 = vmatmul.mubr.f32.gmra.mrb[12].mxu0 %v30_v50  ;;  %766 = vmatmul.mubr.f32.gmra.mrb[12].mxu1 %v46_v51 }
  0x3d   :  { %744 = vmatprep.mubr.f32.mxu0 %v31_v52  ;;  %768 = vmatprep.mubr.f32.mxu1 %v47_v53 }
  0x40   :  { %745 = vmatmul.mubr.f32.gmra.mrb[14].mxu0 %v32_v54  ;;  %769 = vmatmul.mubr.f32.gmra.mrb[14].mxu1 %v48_v55 }
  0xf7   :  { %v990_v56 = vpop.f32.mrb[0].mxu0  ;;  %v992_v57 = vpop.f32.mrb[0].mxu1 }
  0xf8   :  { %v994_v58 = vpop.f32.mrb[1].mxu0  ;;  %v996_v59 = vpop.f32.mrb[1].mxu1 }
  0xf9   :  { %v290_v60 = vadd.f32 %v990_v56, %v994_v58 }
  0xfb   :  { %v1000_v61 = vpop.f32.mrb[2].mxu0  ;;  %v1002_v62 = vpop.f32.mrb[2].mxu1 }
  0xfc   :  { %v1004_v63 = vpop.f32.mrb[3].mxu0  ;;  %v1006_v0 = vpop.f32.mrb[3].mxu1 }
  0xfd   :  { %v291_v1 = vadd.f32 %v290_v60, %v1004_v63 }
  0xff   :  { %v1009_v2 = vpop.f32.mrb[4].mxu0  ;;  %v292_v3 = vadd.f32 %v1000_v61, %v291_v1  ;;  %v1012_v4 = vpop.f32.mrb[4].mxu1 }
 0x100   :  { %v1014_v5 = vpop.f32.mrb[5].mxu0  ;;  %v1016_v6 = vpop.f32.mrb[5].mxu1 }
 0x101   :  { %v293_v7 = vadd.f32 %v292_v3, %v1014_v5 }
 0x103   :  { %v1019_v8 = vpop.f32.mrb[6].mxu0  ;;  %v294_v9 = vadd.f32 %v1009_v2, %v293_v7  ;;  %v1022_v10 = vpop.f32.mrb[6].mxu1 }
 0x104   :  { %v1024_v11 = vpop.f32.mrb[7].mxu0  ;;  %v1026_v12 = vpop.f32.mrb[7].mxu1 }
 0x105   :  { %v295_v13 = vadd.f32 %v294_v9, %v1024_v11 }
 0x107   :  { %v1029_v14 = vpop.f32.mrb[8].mxu0  ;;  %v296_v15 = vadd.f32 %v1019_v8, %v295_v13  ;;  %v1032_v16 = vpop.f32.mrb[8].mxu1 }
 0x108   :  { %v1034_v17 = vpop.f32.mrb[9].mxu0  ;;  %v1036_v18 = vpop.f32.mrb[9].mxu1 }
 0x109   :  { %v297_v19 = vadd.f32 %v296_v15, %v1034_v17 }
 0x10b   :  { %v1039_v20 = vpop.f32.mrb[10].mxu0  ;;  %v298_v21 = vadd.f32 %v1029_v14, %v297_v19  ;;  %v1042_v22 = vpop.f32.mrb[10].mxu1 }
 0x10c   :  { %v1044_v23 = vpop.f32.mrb[11].mxu0  ;;  %v1046_v24 = vpop.f32.mrb[11].mxu1 }
 0x10d   :  { %v299_v25 = vadd.f32 %v298_v21, %v1044_v23 }
 0x10f   :  { %v1049_v26 = vpop.f32.mrb[12].mxu0  ;;  %v300_v27 = vadd.f32 %v1039_v20, %v299_v25  ;;  %v1052_v28 = vpop.f32.mrb[12].mxu1 }
 0x110   :  { %v1054_v29 = vpop.f32.mrb[13].mxu0  ;;  %v1056_v30 = vpop.f32.mrb[13].mxu1 }
 0x111   :  { %v301_v31 = vadd.f32 %v300_v27, %v1054_v29 }
 0x113   :  { %v1059_v32 = vpop.f32.mrb[14].mxu0  ;;  %v302_v33 = vadd.f32 %v1049_v26, %v301_v31  ;;  %v1062_v34 = vpop.f32.mrb[14].mxu1 }
 0x114   :  { %v1064_v35 = vpop.f32.mrb[15].mxu0  ;;  %v1066_v36 = vpop.f32.mrb[15].mxu1 }
 0x115   :  { %v303_v37 = vadd.f32 %v302_v33, %v1064_v35 }
 0x117   :  { %v304_v38 = vadd.f32 %v1059_v32, %v303_v37 }
 0x119   :  { %v305_v39 = vadd.f32 %v304_v38, %v996_v59 }
 0x11b   :  { %v306_v40 = vadd.f32 %v992_v57, %v305_v39 }
 0x11d   :  { %v307_v41 = vadd.f32 %v306_v40, %v1006_v0 }
 0x11f   :  { %v308_v42 = vadd.f32 %v1002_v62, %v307_v41 }
 0x121   :  { %v309_v43 = vadd.f32 %v308_v42, %v1016_v6 }
 0x123   :  { %v310_v44 = vadd.f32 %v1012_v4, %v309_v43 }
 0x125   :  { %v311_v45 = vadd.f32 %v310_v44, %v1026_v12 }
 0x127   :  { %v312_v46 = vadd.f32 %v1022_v10, %v311_v45 }
 0x129   :  { %v313_v47 = vadd.f32 %v312_v46, %v1036_v18 }
 0x12b   :  { %v314_v48 = vadd.f32 %v1032_v16, %v313_v47 }
 0x12d   :  { %v315_v49 = vadd.f32 %v314_v48, %v1046_v24 }
 0x12f   :  { %v316_v50 = vadd.f32 %v1042_v22, %v315_v49 }
 0x131   :  { %v317_v51 = vadd.f32 %v316_v50, %v1056_v30 }
 0x133   :  { %v318_v52 = vadd.f32 %v1052_v28, %v317_v51 }
 0x135   :  { %v319_v53 = vadd.f32 %v318_v52, %v1066_v36 }
 0x137   :  { %v320_v54 = vadd.f32 %v1062_v34, %v319_v53 }
 0x139   :  { %v321_v55 = vrot.slane %v320_v54, 4 }
 0x13b   :  { %v322_v60 = vadd.f32 %v321_v55, %v320_v54 }
 0x13d   :  { %v323_v1 = vrot.slane %v322_v60, 2 }
 0x13f   :  { %v324_v3 = vadd.f32 %v323_v1, %v322_v60 }
 0x141   :  { %v325_v7 = vrot.slane %v324_v3, 1 }
 0x143   :  { %v326_v9 = vadd.f32 %v325_v7, %v324_v3 }
 0x145   :  { %v1086_v13 = vmul.f32 0.00390625, %v326_v9 }
 0x147   :  { %v328_v15 = vsub.f32 %v994_v58, %v1086_v13  ;;  %v329_v19 = vsub.f32 %v990_v56, %v1086_v13  ;;  %v330_v21 = vsub.f32 %v1004_v63, %v1086_v13  ;;  %v331_v31 = vsub.f32 %v1000_v61, %v1086_v13 }
 0x148   :  { %v332_v33 = vsub.f32 %v1014_v5, %v1086_v13  ;;  %v333_v39 = vsub.f32 %v1009_v2, %v1086_v13  ;;  %v334_v42 = vsub.f32 %v1024_v11, %v1086_v13  ;;  %v335_v45 = vsub.f32 %v1019_v8, %v1086_v13 }
 0x149   :  { %v360_v25 = vmul.f32 %v328_v15, %v328_v15  ;;  %v361_v27 = vmul.f32 %v329_v19, %v329_v19  ;;  %v362_v37 = vmul.f32 %v330_v21, %v330_v21  ;;  %v363_v40 = vmul.f32 %v331_v31, %v331_v31 }
 0x14a   :  { %v364_v43 = vmul.f32 %v332_v33, %v332_v33  ;;  %v365_v46 = vmul.f32 %v333_v39, %v333_v39  ;;  %v336_v48 = vsub.f32 %v1034_v17, %v1086_v13  ;;  %v366_v49 = vmul.f32 %v334_v42, %v334_v42 }
 0x14b   :  { %v392_v38 = vadd.f32 %v361_v27, %v360_v25  ;;  %v337_v51 = vsub.f32 %v1029_v14, %v1086_v13  ;;  %v367_v52 = vmul.f32 %v335_v45, %v335_v45  ;;  %v338_v54 = vsub.f32 %v1044_v23, %v1086_v13 }
 0x14c   :  { %v368_v55 = vmul.f32 %v336_v48, %v336_v48  ;;  %v339_v1 = vsub.f32 %v1039_v20, %v1086_v13  ;;  %v340_v9 = vsub.f32 %v1054_v29, %v1086_v13  ;;  %v341_v21 = vsub.f32 %v1049_v26, %v1086_v13 }
 0x14d   :  { %v393_v41 = vadd.f32 %v392_v38, %v362_v37  ;;  %v369_v3 = vmul.f32 %v337_v51, %v337_v51  ;;  %v370_v15 = vmul.f32 %v338_v54, %v338_v54  ;;  %v342_v31 = vsub.f32 %v1064_v35, %v1086_v13 }
 0x14e   :  { %v371_v25 = vmul.f32 %v339_v1, %v339_v1  ;;  %v372_v33 = vmul.f32 %v340_v9, %v340_v9  ;;  %v343_v38 = vsub.f32 %v1059_v32, %v1086_v13  ;;  %v373_v39 = vmul.f32 %v341_v21, %v341_v21 }
 0x14f   :  { %v394_v44 = vadd.f32 %v393_v41, %v363_v40  ;;  %v344_v41 = vsub.f32 %v996_v59, %v1086_v13  ;;  %v374_v42 = vmul.f32 %v342_v31, %v342_v31 }
 0x150   :  { %v375_v45 = vmul.f32 %v343_v38, %v343_v38 }
 0x151   :  { %v395_v47 = vadd.f32 %v394_v44, %v364_v43  ;;  %v345_v44 = vsub.f32 %v992_v57, %v1086_v13  ;;  %v376_v48 = vmul.f32 %v344_v41, %v344_v41 }
 0x153   :  { %v396_v50 = vadd.f32 %v395_v47, %v365_v46  ;;  %v346_v47 = vsub.f32 %v1006_v0, %v1086_v13  ;;  %v377_v51 = vmul.f32 %v345_v44, %v345_v44 }
 0x155   :  { %v397_v53 = vadd.f32 %v396_v50, %v366_v49  ;;  %v347_v50 = vsub.f32 %v1002_v62, %v1086_v13  ;;  %v378_v54 = vmul.f32 %v346_v47, %v346_v47 }
 0x157   :  { %v398_v60 = vadd.f32 %v397_v53, %v367_v52  ;;  %v348_v53 = vsub.f32 %v1016_v6, %v1086_v13  ;;  %v379_v1 = vmul.f32 %v347_v50, %v347_v50 }
 0x159   :  { %v399_v7 = vadd.f32 %v398_v60, %v368_v55  ;;  %v349_v60 = vsub.f32 %v1012_v4, %v1086_v13  ;;  %v380_v9 = vmul.f32 %v348_v53, %v348_v53 }
 0x15b   :  { %v400_v19 = vadd.f32 %v399_v7, %v369_v3  ;;  %v350_v7 = vsub.f32 %v1026_v12, %v1086_v13  ;;  %v381_v21 = vmul.f32 %v349_v60, %v349_v60 }
 0x15d   :  { %v401_v27 = vadd.f32 %v400_v19, %v370_v15  ;;  %v351_v19 = vsub.f32 %v1022_v10, %v1086_v13  ;;  %v382_v31 = vmul.f32 %v350_v7, %v350_v7 }
 0x15f   :  { %v402_v37 = vadd.f32 %v401_v27, %v371_v25  ;;  %v352_v27 = vsub.f32 %v1036_v18, %v1086_v13  ;;  %v383_v38 = vmul.f32 %v351_v19, %v351_v19 }
 0x161   :  { %v403_v40 = vadd.f32 %v402_v37, %v372_v33  ;;  %v353_v37 = vsub.f32 %v1032_v16, %v1086_v13  ;;  %v384_v41 = vmul.f32 %v352_v27, %v352_v27 }
 0x163   :  { %v404_v43 = vadd.f32 %v403_v40, %v373_v39  ;;  %v354_v40 = vsub.f32 %v1046_v24, %v1086_v13  ;;  %v385_v44 = vmul.f32 %v353_v37, %v353_v37 }
 0x165   :  { %v405_v46 = vadd.f32 %v404_v43, %v374_v42  ;;  %v355_v43 = vsub.f32 %v1042_v22, %v1086_v13  ;;  %v386_v47 = vmul.f32 %v354_v40, %v354_v40  ;;  %v437_v40 = vlaneseq }
 0x167   :  { %v406_v49 = vadd.f32 %v405_v46, %v375_v45  ;;  %v356_v46 = vsub.f32 %v1056_v30, %v1086_v13  ;;  %v387_v50 = vmul.f32 %v355_v43, %v355_v43 }
 0x169   :  { %v407_v52 = vadd.f32 %v406_v49, %v376_v48  ;;  %v357_v49 = vsub.f32 %v1052_v28, %v1086_v13  ;;  %v388_v53 = vmul.f32 %v356_v46, %v356_v46  ;;  %v434_v46 = vld [vmem:[%s1514_s3] sm:$0x1] }
 0x16b   :  { %v408_v55 = vadd.f32 %v407_v52, %v377_v51  ;;  %v358_v52 = vsub.f32 %v1066_v36, %v1086_v13  ;;  %v389_v60 = vmul.f32 %v357_v49, %v357_v49 }
 0x16d   :  { %v409_v3 = vadd.f32 %v408_v55, %v378_v54  ;;  %v359_v55 = vsub.f32 %v1062_v34, %v1086_v13 }
 0x16f   :  { %v410_v15 = vadd.f32 %v409_v3, %v379_v1  ;;  %v390_v3 = vmul.f32 %v358_v52, %v358_v52 }
 0x171   :  { %v411_v25 = vadd.f32 %v410_v15, %v380_v9  ;;  %v391_v9 = vmul.f32 %v359_v55, %v359_v55 }
 0x173   :  { %v412_v33 = vadd.f32 %v411_v25, %v381_v21 }
 0x175   :  { %v413_v39 = vadd.f32 %v412_v33, %v382_v31 }
 0x177   :  { %v414_v42 = vadd.f32 %v413_v39, %v383_v38 }
 0x179   :  { %v415_v45 = vadd.f32 %v414_v42, %v384_v41  ;;  %v438_v41 = vshrl.u32 %v437_v40, 7  ;;  %v432_v42 = vld [vmem:[%s1513_s2] sm:$0x1] }
 0x17b   :  { %v416_v48 = vadd.f32 %v415_v45, %v385_v44  ;;  %v439_v43 = vsub.s32 0, %v438_v41 }
 0x17d   :  { %v417_v51 = vadd.f32 %v416_v48, %v386_v47 }
 0x17f   :  { %v418_v54 = vadd.f32 %v417_v51, %v387_v50 }
 0x181   :  { %v419_v1 = vadd.f32 %v418_v54, %v388_v53 }
 0x183   :  { %v420_v7 = vadd.f32 %v419_v1, %v389_v60 }
 0x185   :  { %v421_v15 = vadd.f32 %v420_v7, %v390_v3 }
 0x187   :  { %v422_v19 = vadd.f32 %v421_v15, %v391_v9 }
 0x189   :  { %v423_v21 = vrot.slane %v422_v19, 4 }
 0x18b   :  { %v424_v25 = vadd.f32 %v423_v21, %v422_v19 }
 0x18d   :  { %v425_v27 = vrot.slane %v424_v25, 2 }
 0x18f   :  { %v426_v31 = vadd.f32 %v425_v27, %v424_v25 }
 0x191   :  { %v427_v33 = vrot.slane %v426_v31, 1 }
 0x193   :  { %v428_v37 = vadd.f32 %v427_v33, %v426_v31 }
 0x195   :  { %v429_v38 = vmul.f32 0.00390625, %v428_v37 }
 0x197   :  { %v430_v39 = vadd.f32 1e-05, %v429_v38 }
 0x199   :  { %819 = vrsqrt.f32 %v430_v39 }
 0x1a3   :  { %v820_v44 = vpop.eup %819 }
 0x1a4   :  { %v433_v45 = vmul.f32 %v820_v44, %v432_v42 }
 0x1a6   :  { %v435_v47 = vmul.f32 %v433_v45, %v1086_v13  ;;  %v440_v48 = vrot.slane %v433_v45, %v439_v43 }
 0x1a8   :  { %v436_v49 = vsub.f32 %v434_v46, %v435_v47  ;;  %v441_v50 = vmul.f32 %v440_v48, %v994_v58  ;;  %v442_v51 = vmul.f32 %v990_v56, %v440_v48  ;;  %v443_v52 = vmul.f32 %v440_v48, %v1004_v63 }
 0x1a9   :  { %v444_v53 = vmul.f32 %v1000_v61, %v440_v48  ;;  %v445_v54 = vmul.f32 %v440_v48, %v1014_v5  ;;  %v446_v55 = vmul.f32 %v1009_v2, %v440_v48  ;;  %v447_v60 = vmul.f32 %v440_v48, %v1024_v11 }
 0x1aa   :  { %v448_v1 = vmul.f32 %v1019_v8, %v440_v48  ;;  %v449_v13 = vmul.f32 %v440_v48, %v1034_v17  ;;  %v450_v3 = vmul.f32 %v1029_v14, %v440_v48  ;;  %v451_v58 = vmul.f32 %v440_v48, %v1044_v23 }
 0x1ab   :  { %v452_v56 = vmul.f32 %v1039_v20, %v440_v48  ;;  %v453_v63 = vmul.f32 %v440_v48, %v1054_v29  ;;  %v454_v61 = vmul.f32 %v1049_v26, %v440_v48  ;;  %v455_v5 = vmul.f32 %v440_v48, %v1064_v35 }
 0x1ac   :  { %v456_v2 = vmul.f32 %v1059_v32, %v440_v48  ;;  %v457_v11 = vmul.f32 %v440_v48, %v996_v59  ;;  %v458_v8 = vmul.f32 %v992_v57, %v440_v48  ;;  %v459_v17 = vmul.f32 %v440_v48, %v1006_v0 }
 0x1ad   :  { %v460_v14 = vmul.f32 %v1002_v62, %v440_v48  ;;  %v461_v23 = vmul.f32 %v440_v48, %v1016_v6  ;;  %v462_v20 = vmul.f32 %v1012_v4, %v440_v48  ;;  %v463_v29 = vmul.f32 %v440_v48, %v1026_v12 }
 0x1ae   :  { %v464_v26 = vmul.f32 %v1022_v10, %v440_v48  ;;  %v465_v35 = vmul.f32 %v440_v48, %v1036_v18  ;;  %v466_v32 = vmul.f32 %v1032_v16, %v440_v48  ;;  %v467_v59 = vmul.f32 %v440_v48, %v1046_v24 }
 0x1af   :  { %v468_v57 = vmul.f32 %v1042_v22, %v440_v48  ;;  %v469_v0 = vmul.f32 %v440_v48, %v1056_v30  ;;  %v470_v62 = vmul.f32 %v1052_v28, %v440_v48  ;;  %v471_v6 = vmul.f32 %v440_v48, %v1066_v36 }
 0x1b0   :  { %v472_v4 = vmul.f32 %v1062_v34, %v440_v48  ;;  %v477_v7 = vrot.slane %v436_v49, %v439_v43 }
 0x1b2   :  { %v1191_v12 = vadd.f32 %v477_v7, %v441_v50  ;;  %v1193_v10 = vadd.f32 %v477_v7, %v442_v51  ;;  %v1195_v18 = vadd.f32 %v477_v7, %v443_v52  ;;  %v1197_v16 = vadd.f32 %v477_v7, %v444_v53 }
 0x1b3   :  { %v1199_v24 = vadd.f32 %v477_v7, %v445_v54  ;;  %v1201_v22 = vadd.f32 %v477_v7, %v446_v55  ;;  %v1203_v30 = vadd.f32 %v477_v7, %v447_v60  ;;  %v1205_v28 = vadd.f32 %v477_v7, %v448_v1 }
 0x1b4   :  { %v1207_v36 = vadd.f32 %v477_v7, %v449_v13  ;;  %v1209_v34 = vadd.f32 %v477_v7, %v450_v3  ;;  %v1211_v9 = vadd.f32 %v477_v7, %v451_v58  ;;  %v1213_v15 = vadd.f32 %v477_v7, %v452_v56 }
 0x1b5   :  { %v1215_v19 = vadd.f32 %v477_v7, %v453_v63  ;;  %v1217_v21 = vadd.f32 %v477_v7, %v454_v61  ;;  %v1219_v25 = vadd.f32 %v477_v7, %v455_v5  ;;  %v1221_v27 = vadd.f32 %v477_v7, %v456_v2 }
 0x1b6   :  { %v1223_v31 = vadd.f32 %v477_v7, %v457_v11  ;;  %v1225_v33 = vadd.f32 %v477_v7, %v458_v8  ;;  %v1227_v37 = vadd.f32 %v477_v7, %v459_v17  ;;  %v1229_v38 = vadd.f32 %v477_v7, %v460_v14 }
 0x1b7   :  { %v1231_v39 = vadd.f32 %v477_v7, %v461_v23  ;;  %v1233_v40 = vadd.f32 %v477_v7, %v462_v20  ;;  %v1235_v41 = vadd.f32 %v477_v7, %v463_v29  ;;  %v1237_v42 = vadd.f32 %v477_v7, %v464_v26 }
 0x1b8   :  { %v1239_v43 = vadd.f32 %v477_v7, %v465_v35  ;;  %v1241_v44 = vadd.f32 %v477_v7, %v466_v32  ;;  %v1243_v45 = vadd.f32 %v477_v7, %v467_v59  ;;  %v1245_v46 = vadd.f32 %v477_v7, %v468_v57 }
 0x1b9   :  { %v1247_v47 = vadd.f32 %v477_v7, %v469_v0  ;;  %v1249_v48 = vadd.f32 %v477_v7, %v470_v62  ;;  %v1251_v49 = vadd.f32 %v477_v7, %v471_v6  ;;  %v1253_v50 = vadd.f32 %v477_v7, %v472_v4 }
 0x1ba   :  { %vm511_vm0 = vcmp.ge.f32.partialorder %v1191_v12, 0.0  ;;  %vm512_vm1 = vcmp.ge.f32.partialorder %v1193_v10, 0.0  ;;  %vm513_vm2 = vcmp.ge.f32.partialorder %v1195_v18, 0.0  ;;  %vm514_vm3 = vcmp.ge.f32.partialorder %v1197_v16, 0.0 }
 0x1bb   :  { %vm515_vm4 = vcmp.ge.f32.partialorder %v1199_v24, 0.0  ;;  %vm516_vm5 = vcmp.ge.f32.partialorder %v1201_v22, 0.0  ;;  %vm517_vm6 = vcmp.ge.f32.partialorder %v1203_v30, 0.0  ;;  %vm518_vm7 = vcmp.ge.f32.partialorder %v1205_v28, 0.0 }
 0x1bc   :  { %vm519_vm8 = vcmp.ge.f32.partialorder %v1207_v36, 0.0  ;;  %v543_v51 = vmul.f32 0.2, %v1191_v12  ;;  %v544_v52 = vmul.f32 0.2, %v1193_v10  ;;  %vm526_vm15 = vcmp.ge.f32.partialorder %v1221_v27, 0.0 }
 0x1bd   :  { %v545_v53 = vmul.f32 0.2, %v1195_v18  ;;  %vm527_vm9 = vcmp.ge.f32.partialorder %v1223_v31, 0.0  ;;  %v546_v54 = vmul.f32 0.2, %v1197_v16  ;;  %vm532_vm14 = vcmp.ge.f32.partialorder %v1233_v40, 0.0 }
 0x1be   :  { %v547_v55 = vmul.f32 0.2, %v1199_v24  ;;  %v548_v60 = vmul.f32 0.2, %v1201_v22  ;;  %v549_v1 = vmul.f32 0.2, %v1203_v30  ;;  %v575_v58 = vsel %vm511_vm0, %v1191_v12, %v543_v51 }
 0x1bf   :  { %v550_v13 = vmul.f32 0.2, %v1205_v28  ;;  %v551_v3 = vmul.f32 0.2, %v1207_v36  ;;  %vm533_vm10 = vcmp.ge.f32.partialorder %v1235_v41, 0.0  ;;  %v576_v5 = vsel %vm512_vm1, %v1193_v10, %v544_v52  ;;  %607 = vst [vmem:[%s1515_s4] sm:$0xff] %v575_v58 }
 0x1c0   :  { %v552_v56 = vmul.f32 0.2, %v1209_v34  ;;  %v553_v63 = vmul.f32 0.2, %v1211_v9  ;;  %v554_v61 = vmul.f32 0.2, %v1213_v15  ;;  %v577_v17 = vsel %vm513_vm2, %v1195_v18, %v545_v53 }
 0x1c1   :  { %vm537_vm0 = vcmp.ge.f32.partialorder %v1243_v45, 0.0  ;;  %vm538_vm12 = vcmp.ge.f32.partialorder %v1245_v46, 0.0  ;;  %vm540_vm13 = vcmp.ge.f32.partialorder %v1249_v48, 0.0  ;;  %v555_v2 = vmul.f32 0.2, %v1215_v19  ;;  %608 = vst [vmem:[%s1515_s4 + $0x8] sm:$0xff] %v576_v5 }
 0x1c2   :  { %v556_v11 = vmul.f32 0.2, %v1217_v21  ;;  %v557_v8 = vmul.f32 0.2, %v1219_v25  ;;  %vm541_vm1 = vcmp.ge.f32.partialorder %v1251_v49, 0.0  ;;  %vm542_vm11 = vcmp.ge.f32.partialorder %v1253_v50, 0.0 }
 0x1c3   :  { %v558_v14 = vmul.f32 0.2, %v1221_v27  ;;  %v559_v23 = vmul.f32 0.2, %v1223_v31  ;;  %v560_v20 = vmul.f32 0.2, %v1225_v33  ;;  %v578_v29 = vsel %vm514_vm3, %v1197_v16, %v546_v54 }
 0x1c4   :  { %609 = vst [vmem:[%s1515_s4 + $0x10] sm:$0xff] %v577_v17  ;;  %v561_v26 = vmul.f32 0.2, %v1227_v37  ;;  %v562_v35 = vmul.f32 0.2, %v1229_v38  ;;  %v579_v59 = vsel %vm515_vm4, %v1199_v24, %v547_v55  ;;  %610 = vst [vmem:[%s1515_s4 + $0x18] sm:$0xff] %v578_v29  ;;  %v580_v6 = vsel %vm516_vm5, %v1201_v22, %v548_v60 }
 0x1c5   :  { %v563_v32 = vmul.f32 0.2, %v1231_v39  ;;  %v564_v57 = vmul.f32 0.2, %v1233_v40  ;;  %v565_v0 = vmul.f32 0.2, %v1235_v41  ;;  %v581_v10 = vsel %vm517_vm6, %v1203_v30, %v549_v1 }
 0x1c6   :  { %v566_v62 = vmul.f32 0.2, %v1237_v42  ;;  %611 = vst [vmem:[%s1515_s4 + $0x20] sm:$0xff] %v579_v59  ;;  %v567_v4 = vmul.f32 0.2, %v1239_v43  ;;  %612 = vst [vmem:[%s1515_s4 + $0x28] sm:$0xff] %v580_v6  ;;  %v582_v22 = vsel %vm518_vm7, %v1205_v28, %v550_v13  ;;  %v583_v52 = vsel %vm519_vm8, %v1207_v36, %v551_v3 }
 0x1c7   :  { %v568_v7 = vmul.f32 0.2, %v1241_v44  ;;  %v569_v12 = vmul.f32 0.2, %v1243_v45  ;;  %v570_v18 = vmul.f32 0.2, %v1245_v46 }
 0x1c8   :  { %v571_v16 = vmul.f32 0.2, %v1247_v47  ;;  %v572_v24 = vmul.f32 0.2, %v1249_v48  ;;  %613 = vst [vmem:[%s1515_s4 + $0x30] sm:$0xff] %v581_v10  ;;  %vm1516_vm2 = vcmp.ge.f32.partialorder %v1209_v34, 0.0 }
 0x1c9   :  { %v573_v30 = vmul.f32 0.2, %v1251_v49  ;;  %v574_v51 = vmul.f32 0.2, %v1253_v50  ;;  %v584_v53 = vsel %vm1516_vm2, %v1209_v34, %v552_v56  ;;  %614 = vst [vmem:[%s1515_s4 + $0x38] sm:$0xff] %v582_v22  ;;  %vm1517_vm3 = vcmp.ge.f32.partialorder %v1211_v9, 0.0 }
 0x1ca   :  { %v585_v28 = vsel %vm1517_vm3, %v1211_v9, %v553_v63  ;;  %vm1518_vm4 = vcmp.ge.f32.partialorder %v1213_v15, 0.0  ;;  %vm1519_vm5 = vcmp.ge.f32.partialorder %v1215_v19, 0.0  ;;  %vm1520_vm6 = vcmp.ge.f32.partialorder %v1217_v21, 0.0  ;;  %615 = vst [vmem:[%s1515_s4 + $0x40] sm:$0xff] %v583_v52  ;;  %616 = vst [vmem:[%s1515_s4 + $0x48] sm:$0xff] %v584_v53 }
 0x1cb   :  { %v586_v54 = vsel %vm1518_vm4, %v1213_v15, %v554_v61  ;;  %v587_v36 = vsel %vm1519_vm5, %v1215_v19, %v555_v2  ;;  %v588_v34 = vsel %vm1520_vm6, %v1217_v21, %v556_v11  ;;  %vm1521_vm7 = vcmp.ge.f32.partialorder %v1219_v25, 0.0  ;;  %617 = vst [vmem:[%s1515_s4 + $0x50] sm:$0xff] %v585_v28 }
 0x1cc   :  { %v589_v9 = vsel %vm1521_vm7, %v1219_v25, %v557_v8  ;;  %v590_v15 = vsel %vm526_vm15, %v1221_v27, %v558_v14  ;;  %v591_v19 = vsel %vm527_vm9, %v1223_v31, %v559_v23  ;;  %vm1522_vm8 = vcmp.ge.f32.partialorder %v1225_v33, 0.0  ;;  %618 = vst [vmem:[%s1515_s4 + $0x58] sm:$0xff] %v586_v54  ;;  %619 = vst [vmem:[%s1515_s4 + $0x60] sm:$0xff] %v587_v36 }
 0x1cd   :  { %v592_v21 = vsel %vm1522_vm8, %v1225_v33, %v560_v20  ;;  %620 = vst [vmem:[%s1515_s4 + $0x68] sm:$0xff] %v588_v34  ;;  %vm1523_vm9 = vcmp.ge.f32.partialorder %v1227_v37, 0.0  ;;  %vm1524_vm15 = vcmp.ge.f32.partialorder %v1229_v38, 0.0  ;;  %vm1525_vm2 = vcmp.ge.f32.partialorder %v1231_v39, 0.0  ;;  %621 = vst [vmem:[%s1515_s4 + $0x70] sm:$0xff] %v589_v9 }
 0x1ce   :  { %v593_v25 = vsel %vm1523_vm9, %v1227_v37, %v561_v26  ;;  %v594_v27 = vsel %vm1524_vm15, %v1229_v38, %v562_v35  ;;  %v595_v31 = vsel %vm1525_vm2, %v1231_v39, %v563_v32  ;;  %v596_v33 = vsel %vm532_vm14, %v1233_v40, %v564_v57  ;;  %622 = vst [vmem:[%s1515_s4 + $0x78] sm:$0xff] %v590_v15 }
 0x1cf   :  { %623 = vst [vmem:[%s1515_s4 + $0x80] sm:$0xff] %v591_v19  ;;  %624 = vst [vmem:[%s1515_s4 + $0x88] sm:$0xff] %v592_v21  ;;  %v597_v37 = vsel %vm533_vm10, %v1235_v41, %v565_v0  ;;  %vm1526_vm14 = vcmp.ge.f32.partialorder %v1237_v42, 0.0  ;;  %vm1527_vm3 = vcmp.ge.f32.partialorder %v1239_v43, 0.0  ;;  %vm1528_vm4 = vcmp.ge.f32.partialorder %v1241_v44, 0.0 }
 0x1d0   :  { %v598_v38 = vsel %vm1526_vm14, %v1237_v42, %v566_v62  ;;  %v599_v39 = vsel %vm1527_vm3, %v1239_v43, %v567_v4  ;;  %v600_v40 = vsel %vm1528_vm4, %v1241_v44, %v568_v7  ;;  %625 = vst [vmem:[%s1515_s4 + $0x90] sm:$0xff] %v593_v25  ;;  %626 = vst [vmem:[%s1515_s4 + $0x98] sm:$0xff] %v594_v27  ;;  %vm1529_vm10 = vcmp.ge.f32.partialorder %v1247_v47, 0.0 }
 0x1d1   :  { %627 = vst [vmem:[%s1515_s4 + $0xa0] sm:$0xff] %v595_v31  ;;  %628 = vst [vmem:[%s1515_s4 + $0xa8] sm:$0xff] %v596_v33  ;;  %v601_v41 = vsel %vm537_vm0, %v1243_v45, %v569_v12  ;;  %v602_v42 = vsel %vm538_vm12, %v1245_v46, %v570_v18  ;;  %v603_v43 = vsel %vm1529_vm10, %v1247_v47, %v571_v16 }
 0x1d2   :  { %v604_v44 = vsel %vm540_vm13, %v1249_v48, %v572_v24  ;;  %629 = vst [vmem:[%s1515_s4 + $0xb0] sm:$0xff] %v597_v37  ;;  %630 = vst [vmem:[%s1515_s4 + $0xb8] sm:$0xff] %v598_v38  ;;  %v605_v45 = vsel %vm541_vm1, %v1251_v49, %v573_v30  ;;  %v606_v46 = vsel %vm542_vm11, %v1253_v50, %v574_v51 }
 0x1d3   :  { %631 = vst [vmem:[%s1515_s4 + $0xc0] sm:$0xff] %v599_v39  ;;  %632 = vst [vmem:[%s1515_s4 + $0xc8] sm:$0xff] %v600_v40 }
 0x1d4   :  { %633 = vst [vmem:[%s1515_s4 + $0xd0] sm:$0xff] %v601_v41  ;;  %634 = vst [vmem:[%s1515_s4 + $0xd8] sm:$0xff] %v602_v42 }
 0x1d5   :  { %635 = vst [vmem:[%s1515_s4 + $0xe0] sm:$0xff] %v603_v43  ;;  %636 = vst [vmem:[%s1515_s4 + $0xe8] sm:$0xff] %v604_v44 }
 0x1d6   :  { %637 = vst [vmem:[%s1515_s4 + $0xf0] sm:$0xff] %v605_v45  ;;  %638 = vst [vmem:[%s1515_s4 + $0xf8] sm:$0xff] %v606_v46 }

// kernel: _lambda_.7
= control target key start
LH: loop header
LB: loop body
LE: loop exit
PB: predicated region body
PF: predicated region fallthrough
CT: control target
= control target key end

     0   :  { %s631_s1 = inlined_call_operand.vmem [shape: f32[256,128], index: 1, kind: input, shape index: {}]   ;;  %s632_s0 = inlined_call_operand.vmem [shape: f32[64,256], index: 0, kind: input, shape index: {}]   ;;  %s633_s2 = inlined_call_operand.vmem [shape: f32[1,128], index: 2, kind: input, shape index: {}]   ;;  %s634_s3 = inlined_call_operand.vmem [shape: f32[1,128], index: 3, kind: input, shape index: {}]   ;;  %s635_s4 = inlined_call_operand.vmem [shape: f32[64,128], index: 4, kind: output, shape index: {}]  }
   0x1   :  { %v49_v0 = vld [vmem:[%s631_s1 + $0x80] sm:$0xff]  ;;  %v50_v1 = vld [vmem:[%s631_s1 + $0x88] sm:$0xff]  ;;  %v51_v5 = vld [vmem:[%s631_s1 + $0x90] sm:$0xff] }
   0x2   :  { %v33_v2 = vld [vmem:[%s631_s1] sm:$0xff]  ;;  %v339_v3 = vpack.c.bf16 %v50_v1, %v49_v0  ;;  %v34_v4 = vld [vmem:[%s631_s1 + $0x8] sm:$0xff]  ;;  %v52_v6 = vld [vmem:[%s631_s1 + $0x98] sm:$0xff] }
   0x3   :  { %v341_v7 = vpack.c.bf16 %v34_v4, %v33_v2  ;;  %v343_v8 = vpack.c.bf16 %v52_v6, %v51_v5  ;;  %v35_v9 = vld [vmem:[%s631_s1 + $0x10] sm:$0xff]  ;;  %v36_v10 = vld [vmem:[%s631_s1 + $0x18] sm:$0xff]  ;;  %v53_v11 = vld [vmem:[%s631_s1 + $0xa0] sm:$0xff] }
   0x4   :  { %340 = vmatprep.subr.bf16.mxu0 %v339_v3  ;;  %371 = vmatprep.subr.bf16.mxu1 %v339_v3  ;;  %v54_v12 = vld [vmem:[%s631_s1 + $0xa8] sm:$0xff]  ;;  %v345_v13 = vpack.c.bf16 %v36_v10, %v35_v9  ;;  %v37_v15 = vld [vmem:[%s631_s1 + $0x20] sm:$0xff]  ;;  %v55_v17 = vld [vmem:[%s631_s1 + $0xb0] sm:$0xff] }
   0x5   :  { %342 = vmatpush3.bf16.msra.mxu0 %v341_v7  ;;  %379 = vmatpush3.bf16.msra.mxu1 %v341_v7  ;;  %v347_v14 = vpack.c.bf16 %v54_v12, %v53_v11  ;;  %v38_v16 = vld [vmem:[%s631_s1 + $0x28] sm:$0xff]  ;;  %v56_v18 = vld [vmem:[%s631_s1 + $0xb8] sm:$0xff]  ;;  %v39_v21 = vld [vmem:[%s631_s1 + $0x30] sm:$0xff] }
   0x6   :  { %344 = vmatprep.subr.bf16.mxu0 %v343_v8  ;;  %372 = vmatprep.subr.bf16.mxu1 %v343_v8  ;;  %v349_v19 = vpack.c.bf16 %v38_v16, %v37_v15  ;;  %v351_v20 = vpack.c.bf16 %v56_v18, %v55_v17  ;;  %v40_v22 = vld [vmem:[%s631_s1 + $0x38] sm:$0xff]  ;;  %v57_v23 = vld [vmem:[%s631_s1 + $0xc0] sm:$0xff]  ;;  %v58_v24 = vld [vmem:[%s631_s1 + $0xc8] sm:$0xff] }
   0x7   :  { %v18_v25 = vld [vmem:[%s632_s0 + $0x8] sm:$0xff]  ;;  %v353_v26 = vpack.c.bf16 %v40_v22, %v39_v21  ;;  %v355_v28 = vpack.c.bf16 %v58_v24, %v57_v23  ;;  %v41_v29 = vld [vmem:[%s631_s1 + $0x40] sm:$0xff]  ;;  %v59_v31 = vld [vmem:[%s631_s1 + $0xd0] sm:$0xff] }
   0x8   :  { %129 = vmatprep.mubr.f32.mxu0 %v18_v25  ;;  %v26_v27 = vld [vmem:[%s632_s0 + $0x48] sm:$0xff]  ;;  %v60_v32 = vld [vmem:[%s631_s1 + $0xd8] sm:$0xff]  ;;  %v43_v35 = vld [vmem:[%s631_s1 + $0x50] sm:$0xff] }
   0x9   :  { %346 = vmatpush3.bf16.msra.mxu0 %v345_v13  ;;  %380 = vmatpush3.bf16.msra.mxu1 %v345_v13  ;;  %v42_v30 = vld [vmem:[%s631_s1 + $0x48] sm:$0xff]  ;;  %v359_v34 = vpack.c.bf16 %v60_v32, %v59_v31  ;;  %v44_v36 = vld [vmem:[%s631_s1 + $0x58] sm:$0xff]  ;;  %v61_v37 = vld [vmem:[%s631_s1 + $0xe0] sm:$0xff] }
   0xa   :  { %348 = vmatprep.subr.bf16.mxu0 %v347_v14  ;;  %373 = vmatprep.subr.bf16.mxu1 %v347_v14  ;;  %v357_v33 = vpack.c.bf16 %v42_v30, %v41_v29  ;;  %v62_v38 = vld [vmem:[%s631_s1 + $0xe8] sm:$0xff]  ;;  %v361_v39 = vpack.c.bf16 %v44_v36, %v43_v35  ;;  %v45_v41 = vld [vmem:[%s631_s1 + $0x60] sm:$0xff]  ;;  %v63_v43 = vld [vmem:[%s631_s1 + $0xf0] sm:$0xff] }
   0xb   :  { %149 = vmatprep.mubr.f32.mxu1 %v26_v27  ;;  %v363_v40 = vpack.c.bf16 %v62_v38, %v61_v37  ;;  %v46_v42 = vld [vmem:[%s631_s1 + $0x68] sm:$0xff]  ;;  %v64_v44 = vld [vmem:[%s631_s1 + $0xf8] sm:$0xff]  ;;  %v47_v47 = vld [vmem:[%s631_s1 + $0x70] sm:$0xff] }
   0xc   :  { %v365_v45 = vpack.c.bf16 %v46_v42, %v45_v41  ;;  %v367_v46 = vpack.c.bf16 %v64_v44, %v63_v43  ;;  %v48_v48 = vld [vmem:[%s631_s1 + $0x78] sm:$0xff]  ;;  %v17_v50 = vld [vmem:[%s632_s0] sm:$0xff]  ;;  %v19_v54 = vld [vmem:[%s632_s0 + $0x10] sm:$0xff] }
   0xd   :  { %350 = vmatpush3.bf16.msra.mxu0 %v349_v19  ;;  %381 = vmatpush3.bf16.msra.mxu1 %v349_v19  ;;  %v369_v49 = vpack.c.bf16 %v48_v48, %v47_v47  ;;  %v25_v51 = vld [vmem:[%s632_s0 + $0x40] sm:$0xff]  ;;  %v20_v52 = vld [vmem:[%s632_s0 + $0x18] sm:$0xff]  ;;  %v27_v55 = vld [vmem:[%s632_s0 + $0x50] sm:$0xff] }
   0xe   :  { %352 = vmatprep.subr.bf16.mxu0 %v351_v20  ;;  %374 = vmatprep.subr.bf16.mxu1 %v351_v20  ;;  %v28_v53 = vld [vmem:[%s632_s0 + $0x58] sm:$0xff]  ;;  %v22_v56 = vld [vmem:[%s632_s0 + $0x28] sm:$0xff]  ;;  %v21_v58 = vld [vmem:[%s632_s0 + $0x20] sm:$0xff] }
   0xf   :  { %v30_v57 = vld [vmem:[%s632_s0 + $0x68] sm:$0xff]  ;;  %v29_v59 = vld [vmem:[%s632_s0 + $0x60] sm:$0xff]  ;;  %v24_v60 = vld [vmem:[%s632_s0 + $0x38] sm:$0xff] }
  0x10   :  { %v32_v61 = vld [vmem:[%s632_s0 + $0x78] sm:$0xff]  ;;  %v23_v62 = vld [vmem:[%s632_s0 + $0x30] sm:$0xff] }
  0x11   :  { %354 = vmatpush3.bf16.msra.mxu0 %v353_v26  ;;  %382 = vmatpush3.bf16.msra.mxu1 %v353_v26  ;;  %v31_v63 = vld [vmem:[%s632_s0 + $0x70] sm:$0xff] }
  0x12   :  { %356 = vmatprep.subr.bf16.mxu0 %v355_v28  ;;  %375 = vmatprep.subr.bf16.mxu1 %v355_v28 }
  0x15   :  { %358 = vmatpush3.bf16.msra.mxu0 %v357_v33  ;;  %383 = vmatpush3.bf16.msra.mxu1 %v357_v33 }
  0x16   :  { %360 = vmatprep.subr.bf16.mxu0 %v359_v34  ;;  %376 = vmatprep.subr.bf16.mxu1 %v359_v34 }
  0x19   :  { %362 = vmatpush3.bf16.msra.mxu0 %v361_v39  ;;  %384 = vmatpush3.bf16.msra.mxu1 %v361_v39 }
  0x1a   :  { %364 = vmatprep.subr.bf16.mxu0 %v363_v40  ;;  %377 = vmatprep.subr.bf16.mxu1 %v363_v40 }
  0x1d   :  { %366 = vmatpush3.bf16.msra.mxu0 %v365_v45  ;;  %385 = vmatpush3.bf16.msra.mxu1 %v365_v45 }
  0x1e   :  { %368 = vmatprep.subr.bf16.mxu0 %v367_v46  ;;  %378 = vmatprep.subr.bf16.mxu1 %v367_v46 }
  0x21   :  { %370 = vmatpush3.bf16.msra.mxu0 %v369_v49  ;;  %386 = vmatpush3.bf16.msra.mxu1 %v369_v49 }
  0x24   :  { %130 = vmatmul.mubr.f32.vlgmr.msra.gmra.mrb[0].mxu0 %v17_v50  ;;  %150 = vmatmul.mubr.f32.vlgmr.msra.gmra.mrb[0].mxu1 %v25_v51 }
  0x25   :  { %134 = vmatprep.mubr.f32.mxu0 %v20_v52  ;;  %154 = vmatprep.mubr.f32.mxu1 %v28_v53 }
  0x28   :  { %135 = vmatmul.mubr.f32.gmra.mrb[2].mxu0 %v19_v54  ;;  %155 = vmatmul.mubr.f32.gmra.mrb[2].mxu1 %v27_v55 }
  0x29   :  { %139 = vmatprep.mubr.f32.mxu0 %v22_v56  ;;  %159 = vmatprep.mubr.f32.mxu1 %v30_v57 }
  0x2c   :  { %140 = vmatmul.mubr.f32.gmra.mrb[4].mxu0 %v21_v58  ;;  %160 = vmatmul.mubr.f32.gmra.mrb[4].mxu1 %v29_v59 }
  0x2d   :  { %144 = vmatprep.mubr.f32.mxu0 %v24_v60  ;;  %164 = vmatprep.mubr.f32.mxu1 %v32_v61 }
  0x30   :  { %145 = vmatmul.mubr.f32.gmra.mrb[6].mxu0 %v23_v62  ;;  %165 = vmatmul.mubr.f32.gmra.mrb[6].mxu1 %v31_v63 }
  0xf7   :  { %v315_v0 = vpop.f32.mrb[0].mxu0  ;;  %v327_v1 = vpop.f32.mrb[0].mxu1 }
  0xf8   :  { %v316_v2 = vpop.f32.mrb[1].mxu0  ;;  %v328_v3 = vpop.f32.mrb[1].mxu1 }
  0xf9   :  { %v558_v4 = vadd.f32 %v316_v2, %v315_v0  ;;  %v560_v5 = vadd.f32 %v328_v3, %v327_v1 }
  0xfb   :  { %v318_v6 = vpop.f32.mrb[2].mxu0  ;;  %v330_v7 = vpop.f32.mrb[2].mxu1 }
  0xfc   :  { %v319_v8 = vpop.f32.mrb[3].mxu0  ;;  %v331_v9 = vpop.f32.mrb[3].mxu1 }
  0xfd   :  { %v562_v10 = vadd.f32 %v319_v8, %v318_v6  ;;  %v564_v11 = vadd.f32 %v331_v9, %v330_v7  ;;  %v221_v7 = vlaneseq  ;;  %v216_v9 = vld [vmem:[%s633_s2] sm:$0x1] }
  0xff   :  { %v321_v12 = vpop.f32.mrb[4].mxu0  ;;  %v333_v13 = vpop.f32.mrb[4].mxu1  ;;  %v170_v18 = vadd.f32 %v562_v10, %v558_v4  ;;  %v222_v8 = vshrl.u32 %v221_v7, 7 }
 0x100   :  { %v322_v14 = vpop.f32.mrb[5].mxu0  ;;  %v334_v15 = vpop.f32.mrb[5].mxu1 }
 0x101   :  { %v566_v16 = vadd.f32 %v322_v14, %v321_v12  ;;  %v568_v17 = vadd.f32 %v334_v15, %v333_v13  ;;  %v223_v12 = vsub.s32 0, %v222_v8  ;;  %v218_v15 = vld [vmem:[%s634_s3] sm:$0x1] }
 0x103   :  { %v324_v19 = vpop.f32.mrb[6].mxu0  ;;  %v336_v20 = vpop.f32.mrb[6].mxu1  ;;  %v171_v23 = vadd.f32 %v566_v16, %v170_v18 }
 0x104   :  { %v325_v21 = vpop.f32.mrb[7].mxu0  ;;  %v337_v22 = vpop.f32.mrb[7].mxu1 }
 0x105   :  { %v326_v24 = vadd.f32 %v325_v21, %v324_v19  ;;  %v573_v25 = vadd.f32 %v337_v22, %v336_v20 }
 0x107   :  { %v172_v26 = vadd.f32 %v326_v24, %v171_v23 }
 0x109   :  { %v173_v27 = vadd.f32 %v560_v5, %v172_v26 }
 0x10b   :  { %v174_v28 = vadd.f32 %v564_v11, %v173_v27 }
 0x10d   :  { %v175_v29 = vadd.f32 %v568_v17, %v174_v28 }
 0x10f   :  { %v176_v30 = vadd.f32 %v573_v25, %v175_v29 }
 0x111   :  { %v177_v31 = vrot.slane %v176_v30, 4 }
 0x113   :  { %v178_v32 = vadd.f32 %v177_v31, %v176_v30 }
 0x115   :  { %v179_v33 = vrot.slane %v178_v32, 2 }
 0x117   :  { %v180_v34 = vadd.f32 %v179_v33, %v178_v32 }
 0x119   :  { %v181_v35 = vrot.slane %v180_v34, 1 }
 0x11b   :  { %v182_v36 = vadd.f32 %v181_v35, %v180_v34 }
 0x11d   :  { %v183_v37 = vmul.f32 0.015625, %v182_v36 }
 0x11f   :  { %v184_v38 = vsub.f32 %v558_v4, %v183_v37  ;;  %v185_v39 = vsub.f32 %v562_v10, %v183_v37  ;;  %v186_v40 = vsub.f32 %v566_v16, %v183_v37  ;;  %v187_v41 = vsub.f32 %v326_v24, %v183_v37 }
 0x120   :  { %v188_v44 = vsub.f32 %v560_v5, %v183_v37  ;;  %v189_v47 = vsub.f32 %v564_v11, %v183_v37  ;;  %v190_v50 = vsub.f32 %v568_v17, %v183_v37  ;;  %v191_v53 = vsub.f32 %v573_v25, %v183_v37 }
 0x121   :  { %v192_v42 = vmul.f32 %v184_v38, %v184_v38  ;;  %v193_v43 = vmul.f32 %v185_v39, %v185_v39  ;;  %v194_v45 = vmul.f32 %v186_v40, %v186_v40  ;;  %v195_v48 = vmul.f32 %v187_v41, %v187_v41 }
 0x122   :  { %v196_v51 = vmul.f32 %v188_v44, %v188_v44  ;;  %v197_v54 = vmul.f32 %v189_v47, %v189_v47  ;;  %v198_v56 = vmul.f32 %v190_v50, %v190_v50  ;;  %v199_v58 = vmul.f32 %v191_v53, %v191_v53 }
 0x123   :  { %v200_v46 = vadd.f32 %v193_v43, %v192_v42 }
 0x125   :  { %v201_v49 = vadd.f32 %v200_v46, %v194_v45 }
 0x127   :  { %v202_v52 = vadd.f32 %v201_v49, %v195_v48 }
 0x129   :  { %v203_v55 = vadd.f32 %v202_v52, %v196_v51 }
 0x12b   :  { %v204_v57 = vadd.f32 %v203_v55, %v197_v54 }
 0x12d   :  { %v205_v59 = vadd.f32 %v204_v57, %v198_v56 }
 0x12f   :  { %v206_v60 = vadd.f32 %v205_v59, %v199_v58 }
 0x131   :  { %v207_v61 = vrot.slane %v206_v60, 4 }
 0x133   :  { %v208_v62 = vadd.f32 %v207_v61, %v206_v60 }
 0x135   :  { %v209_v63 = vrot.slane %v208_v62, 2 }
 0x137   :  { %v210_v0 = vadd.f32 %v209_v63, %v208_v62 }
 0x139   :  { %v211_v1 = vrot.slane %v210_v0, 1 }
 0x13b   :  { %v212_v2 = vadd.f32 %v211_v1, %v210_v0 }
 0x13d   :  { %v213_v3 = vmul.f32 0.015625, %v212_v2 }
 0x13f   :  { %v214_v6 = vadd.f32 1e-05, %v213_v3 }
 0x141   :  { %387 = vrsqrt.f32 %v214_v6 }
 0x14b   :  { %v388_v13 = vpop.eup %387 }
 0x14c   :  { %v217_v14 = vmul.f32 %v388_v13, %v216_v9 }
 0x14e   :  { %v219_v18 = vmul.f32 %v217_v14, %v183_v37  ;;  %v224_v19 = vrot.slane %v217_v14, %v223_v12 }
 0x150   :  { %v220_v20 = vsub.f32 %v218_v15, %v219_v18  ;;  %v225_v21 = vmul.f32 %v558_v4, %v224_v19  ;;  %v226_v22 = vmul.f32 %v562_v10, %v224_v19  ;;  %v227_v23 = vmul.f32 %v566_v16, %v224_v19 }
 0x151   :  { %v228_v26 = vmul.f32 %v326_v24, %v224_v19  ;;  %v229_v28 = vmul.f32 %v560_v5, %v224_v19  ;;  %v230_v29 = vmul.f32 %v564_v11, %v224_v19  ;;  %v231_v30 = vmul.f32 %v568_v17, %v224_v19 }
 0x152   :  { %v237_v27 = vrot.slane %v220_v20, %v223_v12  ;;  %v232_v31 = vmul.f32 %v573_v25, %v224_v19 }
 0x154   :  { %v239_v32 = vadd.f32 %v237_v27, %v225_v21  ;;  %v240_v33 = vadd.f32 %v237_v27, %v226_v22  ;;  %v241_v34 = vadd.f32 %v237_v27, %v227_v23  ;;  %v242_v35 = vadd.f32 %v237_v27, %v228_v26 }
 0x155   :  { %v243_v36 = vadd.f32 %v237_v27, %v229_v28  ;;  %v244_v4 = vadd.f32 %v237_v27, %v230_v29  ;;  %v245_v37 = vadd.f32 %v237_v27, %v231_v30  ;;  %v246_v10 = vadd.f32 %v237_v27, %v232_v31 }
 0x156   :  { %vm247_vm0 = vcmp.ge.f32.partialorder %v239_v32, 0.0  ;;  %vm248_vm1 = vcmp.ge.f32.partialorder %v240_v33, 0.0  ;;  %vm249_vm2 = vcmp.ge.f32.partialorder %v241_v34, 0.0  ;;  %vm250_vm3 = vcmp.ge.f32.partialorder %v242_v35, 0.0 }
 0x157   :  { %vm251_vm4 = vcmp.ge.f32.partialorder %v243_v36, 0.0  ;;  %vm252_vm5 = vcmp.ge.f32.partialorder %v244_v4, 0.0  ;;  %vm253_vm6 = vcmp.ge.f32.partialorder %v245_v37, 0.0  ;;  %vm254_vm7 = vcmp.ge.f32.partialorder %v246_v10, 0.0 }
 0x158   :  { %v255_v5 = vmul.f32 0.2, %v239_v32  ;;  %v256_v11 = vmul.f32 0.2, %v240_v33  ;;  %v257_v16 = vmul.f32 0.2, %v241_v34 }
 0x159   :  { %v258_v17 = vmul.f32 0.2, %v242_v35  ;;  %v259_v24 = vmul.f32 0.2, %v243_v36  ;;  %v260_v25 = vmul.f32 0.2, %v244_v4 }
 0x15a   :  { %v261_v38 = vmul.f32 0.2, %v245_v37  ;;  %v262_v39 = vmul.f32 0.2, %v246_v10  ;;  %v263_v40 = vsel %vm247_vm0, %v239_v32, %v255_v5  ;;  %v264_v41 = vsel %vm248_vm1, %v240_v33, %v256_v11 }
 0x15b   :  { %v265_v42 = vsel %vm249_vm2, %v241_v34, %v257_v16  ;;  %v266_v43 = vsel %vm250_vm3, %v242_v35, %v258_v17  ;;  %v267_v44 = vsel %vm251_vm4, %v243_v36, %v259_v24  ;;  %v268_v45 = vsel %vm252_vm5, %v244_v4, %v260_v25  ;;  %271 = vst [vmem:[%s635_s4] sm:$0xff] %v263_v40 }
 0x15c   :  { %272 = vst [vmem:[%s635_s4 + $0x8] sm:$0xff] %v264_v41  ;;  %v269_v46 = vsel %vm253_vm6, %v245_v37, %v261_v38  ;;  %v270_v47 = vsel %vm254_vm7, %v246_v10, %v262_v39  ;;  %273 = vst [vmem:[%s635_s4 + $0x10] sm:$0xff] %v265_v42 }
 0x15d   :  { %274 = vst [vmem:[%s635_s4 + $0x18] sm:$0xff] %v266_v43  ;;  %275 = vst [vmem:[%s635_s4 + $0x20] sm:$0xff] %v267_v44 }
 0x15e   :  { %276 = vst [vmem:[%s635_s4 + $0x28] sm:$0xff] %v268_v45  ;;  %277 = vst [vmem:[%s635_s4 + $0x30] sm:$0xff] %v269_v46 }
 0x15f   :  { %278 = vst [vmem:[%s635_s4 + $0x38] sm:$0xff] %v270_v47 }

// kernel: _lambda_.8
= control target key start
LH: loop header
LB: loop body
LE: loop exit
PB: predicated region body
PF: predicated region fallthrough
CT: control target
= control target key end

     0   :  { %vm299_vm0 = vcmask 1041408   ;;  %s897_s1 = inlined_call_operand.vmem [shape: f32[512,128], index: 1, kind: input, shape index: {}]   ;;  %s898_s0 = inlined_call_operand.vmem [shape: f32[42,512], index: 0, kind: input, shape index: {}]   ;;  %s899_s2 = inlined_call_operand.vmem [shape: f32[1,128], index: 2, kind: input, shape index: {}]   ;;  %s900_s3 = inlined_call_operand.vmem [shape: f32[1,128], index: 3, kind: input, shape index: {}]   ;;  %s901_s4 = inlined_call_operand.vmem [shape: f32[42,128], index: 4, kind: output, shape index: {}]  }
   0x1   :  { %v57_v0 = vld [vmem:[%s897_s1 + $0x80] sm:$0xff]  ;;  %v58_v1 = vld [vmem:[%s897_s1 + $0x88] sm:$0xff]  ;;  %v59_v11 = vld [vmem:[%s897_s1 + $0x90] sm:$0xff] }
   0x2   :  { %v89_v2 = vld [vmem:[%s897_s1 + $0x180] sm:$0xff]  ;;  %v491_v3 = vpack.c.bf16 %v58_v1, %v57_v0  ;;  %v90_v4 = vld [vmem:[%s897_s1 + $0x188] sm:$0xff]  ;;  %v60_v13 = vld [vmem:[%s897_s1 + $0x98] sm:$0xff] }
   0x3   :  { %v41_v5 = vld [vmem:[%s897_s1] sm:$0xff]  ;;  %v42_v6 = vld [vmem:[%s897_s1 + $0x8] sm:$0xff]  ;;  %v523_v7 = vpack.c.bf16 %v90_v4, %v89_v2  ;;  %v91_v14 = vld [vmem:[%s897_s1 + $0x190] sm:$0xff]  ;;  %v495_v16 = vpack.c.bf16 %v60_v13, %v59_v11 }
   0x4   :  { %v493_v8 = vpack.c.bf16 %v42_v6, %v41_v5  ;;  %v73_v9 = vld [vmem:[%s897_s1 + $0x100] sm:$0xff]  ;;  %v74_v10 = vld [vmem:[%s897_s1 + $0x108] sm:$0xff]  ;;  %492 = vmatprep.subr.bf16.mxu0 %v491_v3  ;;  %v92_v15 = vld [vmem:[%s897_s1 + $0x198] sm:$0xff] }
   0x5   :  { %v525_v12 = vpack.c.bf16 %v74_v10, %v73_v9  ;;  %524 = vmatprep.subr.bf16.mxu1 %v523_v7  ;;  %v527_v17 = vpack.c.bf16 %v92_v15, %v91_v14  ;;  %v43_v18 = vld [vmem:[%s897_s1 + $0x10] sm:$0xff]  ;;  %v44_v19 = vld [vmem:[%s897_s1 + $0x18] sm:$0xff]  ;;  %v61_v23 = vld [vmem:[%s897_s1 + $0xa0] sm:$0xff] }
   0x6   :  { %494 = vmatpush3.bf16.msra.mxu0 %v493_v8  ;;  %v75_v20 = vld [vmem:[%s897_s1 + $0x110] sm:$0xff]  ;;  %v497_v21 = vpack.c.bf16 %v44_v19, %v43_v18  ;;  %v76_v22 = vld [vmem:[%s897_s1 + $0x118] sm:$0xff]  ;;  %v62_v24 = vld [vmem:[%s897_s1 + $0xa8] sm:$0xff] }
   0x7   :  { %526 = vmatpush3.bf16.msra.mxu1 %v525_v12  ;;  %496 = vmatprep.subr.bf16.mxu0 %v495_v16  ;;  %v529_v25 = vpack.c.bf16 %v76_v22, %v75_v20  ;;  %v499_v26 = vpack.c.bf16 %v62_v24, %v61_v23  ;;  %v93_v27 = vld [vmem:[%s897_s1 + $0x1a0] sm:$0xff]  ;;  %v94_v28 = vld [vmem:[%s897_s1 + $0x1a8] sm:$0xff]  ;;  %v63_v35 = vld [vmem:[%s897_s1 + $0xb0] sm:$0xff] }
   0x8   :  { %528 = vmatprep.subr.bf16.mxu1 %v527_v17  ;;  %v45_v29 = vld [vmem:[%s897_s1 + $0x20] sm:$0xff]  ;;  %v531_v30 = vpack.c.bf16 %v94_v28, %v93_v27  ;;  %v46_v31 = vld [vmem:[%s897_s1 + $0x28] sm:$0xff]  ;;  %v64_v36 = vld [vmem:[%s897_s1 + $0xb8] sm:$0xff] }
   0x9   :  { %v77_v32 = vld [vmem:[%s897_s1 + $0x120] sm:$0xff]  ;;  %v78_v33 = vld [vmem:[%s897_s1 + $0x128] sm:$0xff]  ;;  %v501_v34 = vpack.c.bf16 %v46_v31, %v45_v29  ;;  %v95_v37 = vld [vmem:[%s897_s1 + $0x1b0] sm:$0xff]  ;;  %v503_v39 = vpack.c.bf16 %v64_v36, %v63_v35 }
   0xa   :  { %498 = vmatpush3.bf16.msra.mxu0 %v497_v21  ;;  %v533_v38 = vpack.c.bf16 %v78_v33, %v77_v32  ;;  %v96_v40 = vld [vmem:[%s897_s1 + $0x1b8] sm:$0xff]  ;;  %v47_v41 = vld [vmem:[%s897_s1 + $0x30] sm:$0xff]  ;;  %v65_v46 = vld [vmem:[%s897_s1 + $0xc0] sm:$0xff] }
   0xb   :  { %530 = vmatpush3.bf16.msra.mxu1 %v529_v25  ;;  %500 = vmatprep.subr.bf16.mxu0 %v499_v26  ;;  %v48_v42 = vld [vmem:[%s897_s1 + $0x38] sm:$0xff]  ;;  %v535_v43 = vpack.c.bf16 %v96_v40, %v95_v37  ;;  %v79_v44 = vld [vmem:[%s897_s1 + $0x130] sm:$0xff]  ;;  %v66_v47 = vld [vmem:[%s897_s1 + $0xc8] sm:$0xff] }
   0xc   :  { %532 = vmatprep.subr.bf16.mxu1 %v531_v30  ;;  %v80_v45 = vld [vmem:[%s897_s1 + $0x138] sm:$0xff]  ;;  %v97_v48 = vld [vmem:[%s897_s1 + $0x1c0] sm:$0xff]  ;;  %v98_v49 = vld [vmem:[%s897_s1 + $0x1c8] sm:$0xff]  ;;  %v505_v50 = vpack.c.bf16 %v48_v42, %v47_v41  ;;  %v507_v52 = vpack.c.bf16 %v66_v47, %v65_v46 }
   0xd   :  { %v537_v51 = vpack.c.bf16 %v80_v45, %v79_v44  ;;  %v49_v53 = vld [vmem:[%s897_s1 + $0x40] sm:$0xff]  ;;  %v50_v54 = vld [vmem:[%s897_s1 + $0x48] sm:$0xff]  ;;  %v539_v56 = vpack.c.bf16 %v98_v49, %v97_v48  ;;  %v67_v58 = vld [vmem:[%s897_s1 + $0xd0] sm:$0xff] }
   0xe   :  { %502 = vmatpush3.bf16.msra.mxu0 %v501_v34  ;;  %v81_v55 = vld [vmem:[%s897_s1 + $0x140] sm:$0xff]  ;;  %v82_v57 = vld [vmem:[%s897_s1 + $0x148] sm:$0xff]  ;;  %v68_v59 = vld [vmem:[%s897_s1 + $0xd8] sm:$0xff]  ;;  %v509_v62 = vpack.c.bf16 %v50_v54, %v49_v53 }
   0xf   :  { %534 = vmatpush3.bf16.msra.mxu1 %v533_v38  ;;  %504 = vmatprep.subr.bf16.mxu0 %v503_v39  ;;  %v99_v60 = vld [vmem:[%s897_s1 + $0x1d0] sm:$0xff]  ;;  %v100_v61 = vld [vmem:[%s897_s1 + $0x1d8] sm:$0xff]  ;;  %v541_v63 = vpack.c.bf16 %v82_v57, %v81_v55  ;;  %v511_v0 = vpack.c.bf16 %v68_v59, %v67_v58  ;;  %v69_v6 = vld [vmem:[%s897_s1 + $0xe0] sm:$0xff] }
  0x10   :  { %536 = vmatprep.subr.bf16.mxu1 %v535_v43  ;;  %v51_v1 = vld [vmem:[%s897_s1 + $0x50] sm:$0xff]  ;;  %v52_v2 = vld [vmem:[%s897_s1 + $0x58] sm:$0xff]  ;;  %v543_v4 = vpack.c.bf16 %v100_v61, %v99_v60  ;;  %v70_v7 = vld [vmem:[%s897_s1 + $0xe8] sm:$0xff] }
  0x11   :  { %v83_v3 = vld [vmem:[%s897_s1 + $0x150] sm:$0xff]  ;;  %v84_v5 = vld [vmem:[%s897_s1 + $0x158] sm:$0xff]  ;;  %v101_v8 = vld [vmem:[%s897_s1 + $0x1e0] sm:$0xff]  ;;  %v513_v10 = vpack.c.bf16 %v52_v2, %v51_v1  ;;  %v515_v14 = vpack.c.bf16 %v70_v7, %v69_v6 }
  0x12   :  { %506 = vmatpush3.bf16.msra.mxu0 %v505_v50  ;;  %v102_v9 = vld [vmem:[%s897_s1 + $0x1e8] sm:$0xff]  ;;  %v53_v11 = vld [vmem:[%s897_s1 + $0x60] sm:$0xff]  ;;  %v545_v13 = vpack.c.bf16 %v84_v5, %v83_v3  ;;  %v20_v17 = vld [vmem:[%s898_s0 + $0x18] sm:$0xff] }
  0x13   :  { %538 = vmatpush3.bf16.msra.mxu1 %v537_v51  ;;  %508 = vmatprep.subr.bf16.mxu0 %v507_v52  ;;  %v54_v12 = vld [vmem:[%s897_s1 + $0x68] sm:$0xff]  ;;  %v85_v15 = vld [vmem:[%s897_s1 + $0x160] sm:$0xff]  ;;  %v547_v18 = vpack.c.bf16 %v102_v9, %v101_v8  ;;  %v71_v20 = vld [vmem:[%s897_s1 + $0xf0] sm:$0xff] }
  0x14   :  { %540 = vmatprep.subr.bf16.mxu1 %v539_v56  ;;  %v18_v16 = vld [vmem:[%s898_s0 + $0x8] sm:$0xff]  ;;  %v72_v21 = vld [vmem:[%s897_s1 + $0xf8] sm:$0xff]  ;;  %v103_v22 = vld [vmem:[%s897_s1 + $0x1f0] sm:$0xff]  ;;  %264 = vmatprep.mubr.f32.mxu1 %v20_v17  ;;  %v517_v24 = vpack.c.bf16 %v54_v12, %v53_v11 }
  0x15   :  { %v86_v19 = vld [vmem:[%s897_s1 + $0x168] sm:$0xff]  ;;  %169 = vmatprep.mubr.f32.mxu0 %v18_v16  ;;  %v104_v23 = vld [vmem:[%s897_s1 + $0x1f8] sm:$0xff]  ;;  %v519_v26 = vpack.c.bf16 %v72_v21, %v71_v20  ;;  %v55_v27 = vld [vmem:[%s897_s1 + $0x70] sm:$0xff] }
  0x16   :  { %510 = vmatpush3.bf16.msra.mxu0 %v509_v62  ;;  %v549_v25 = vpack.c.bf16 %v86_v19, %v85_v15  ;;  %v56_v28 = vld [vmem:[%s897_s1 + $0x78] sm:$0xff]  ;;  %v551_v29 = vpack.c.bf16 %v104_v23, %v103_v22  ;;  %v87_v30 = vld [vmem:[%s897_s1 + $0x170] sm:$0xff]  ;;  %v17_v34 = vld [vmem:[%s898_s0] sm:$0xff] }
  0x17   :  { %542 = vmatpush3.bf16.msra.mxu1 %v541_v63  ;;  %512 = vmatprep.subr.bf16.mxu0 %v511_v0  ;;  %v88_v31 = vld [vmem:[%s897_s1 + $0x178] sm:$0xff]  ;;  %v521_v32 = vpack.c.bf16 %v56_v28, %v55_v27  ;;  %v19_v35 = vld [vmem:[%s898_s0 + $0x10] sm:$0xff]  ;;  %v22_v36 = vld [vmem:[%s898_s0 + $0x28] sm:$0xff] }
  0x18   :  { %544 = vmatprep.subr.bf16.mxu1 %v543_v4  ;;  %v553_v33 = vpack.c.bf16 %v88_v31, %v87_v30  ;;  %v24_v37 = vld [vmem:[%s898_s0 + $0x38] sm:$0xff]  ;;  %v21_v38 = vld [vmem:[%s898_s0 + $0x20] sm:$0xff]  ;;  %v23_v39 = vld [vmem:[%s898_s0 + $0x30] sm:$0xff] }
  0x19   :  { %v26_v40 = vld [vmem:[%s898_s0 + $0x48] sm:$0xff]  ;;  %v28_v41 = vld [vmem:[%s898_s0 + $0x58] sm:$0xff]  ;;  %v25_v42 = vld [vmem:[%s898_s0 + $0x40] sm:$0xff] }
  0x1a   :  { %514 = vmatpush3.bf16.msra.mxu0 %v513_v10  ;;  %v27_v43 = vld [vmem:[%s898_s0 + $0x50] sm:$0xff]  ;;  %v30_v44 = vld [vmem:[%s898_s0 + $0x68] sm:$0xff]  ;;  %v32_v45 = vld [vmem:[%s898_s0 + $0x78] sm:$0xff] }
  0x1b   :  { %546 = vmatpush3.bf16.msra.mxu1 %v545_v13  ;;  %516 = vmatprep.subr.bf16.mxu0 %v515_v14  ;;  %v29_v46 = vld [vmem:[%s898_s0 + $0x60] sm:$0xff]  ;;  %v31_v47 = vld [vmem:[%s898_s0 + $0x70] sm:$0xff]  ;;  %v34_v48 = vld [vmem:[%s898_s0 + $0x88] sm:$0xff] }
  0x1c   :  { %548 = vmatprep.subr.bf16.mxu1 %v547_v18  ;;  %v36_v49 = vld [vmem:[%s898_s0 + $0x98] sm:$0xff]  ;;  %v33_v50 = vld [vmem:[%s898_s0 + $0x80] sm:$0xff]  ;;  %v35_v51 = vld [vmem:[%s898_s0 + $0x90] sm:$0xff] }
  0x1d   :  { %v38_v52 = vld [vmem:[%s898_s0 + $0xa8] sm:$0x3]  ;;  %v40_v53 = vld [vmem:[%s898_s0 + $0xb8] sm:$0x3]  ;;  %v37_v54 = vld [vmem:[%s898_s0 + $0xa0] sm:$0x3] }
  0x1e   :  { %518 = vmatpush3.bf16.msra.mxu0 %v517_v24  ;;  %v39_v55 = vld [vmem:[%s898_s0 + $0xb0] sm:$0x3] }
  0x1f   :  { %550 = vmatpush3.bf16.msra.mxu1 %v549_v25  ;;  %520 = vmatprep.subr.bf16.mxu0 %v519_v26 }
  0x20   :  { %552 = vmatprep.subr.bf16.mxu1 %v551_v29 }
  0x22   :  { %522 = vmatpush3.bf16.msra.mxu0 %v521_v32 }
  0x23   :  { %554 = vmatpush3.bf16.msra.mxu1 %v553_v33 }
  0x25   :  { %170 = vmatmul.mubr.f32.vlgmr.msra.gmra.mrb[0].mxu0 %v17_v34 }
  0x26   :  { %265 = vmatmul.mubr.f32.vlgmr.msra.gmra.mrb[0].mxu1 %v19_v35  ;;  %174 = vmatprep.mubr.f32.mxu0 %v22_v36 }
  0x27   :  { %269 = vmatprep.mubr.f32.mxu1 %v24_v37 }
  0x29   :  { %175 = vmatmul.mubr.f32.gmra.mrb[2].mxu0 %v21_v38 }
  0x2a   :  { %270 = vmatmul.mubr.f32.gmra.mrb[2].mxu1 %v23_v39  ;;  %179 = vmatprep.mubr.f32.mxu0 %v26_v40 }
  0x2b   :  { %274 = vmatprep.mubr.f32.mxu1 %v28_v41 }
  0x2d   :  { %180 = vmatmul.mubr.f32.gmra.mrb[4].mxu0 %v25_v42 }
  0x2e   :  { %275 = vmatmul.mubr.f32.gmra.mrb[4].mxu1 %v27_v43  ;;  %184 = vmatprep.mubr.f32.mxu0 %v30_v44 }
  0x2f   :  { %279 = vmatprep.mubr.f32.mxu1 %v32_v45 }
  0x31   :  { %185 = vmatmul.mubr.f32.gmra.mrb[6].mxu0 %v29_v46 }
  0x32   :  { %280 = vmatmul.mubr.f32.gmra.mrb[6].mxu1 %v31_v47  ;;  %189 = vmatprep.mubr.f32.mxu0 %v34_v48 }
  0x33   :  { %284 = vmatprep.mubr.f32.mxu1 %v36_v49 }
  0x35   :  { %190 = vmatmul.mubr.f32.gmra.mrb[8].mxu0 %v33_v50 }
  0x36   :  { %285 = vmatmul.mubr.f32.gmra.mrb[8].mxu1 %v35_v51  ;;  %194 = vmatprep.mubr.f32.mxu0 %v38_v52 }
  0x37   :  { %289 = vmatprep.mubr.f32.mxu1 %v40_v53 }
  0x39   :  { %195 = vmatmul.mubr.f32.gmra.mrb[10].mxu0 %v37_v54 }
  0x3a   :  { %290 = vmatmul.mubr.f32.gmra.mrb[10].mxu1 %v39_v55 }
  0xf8   :  { %v423_v56 = vpop.f32.mrb[0].mxu0 }
  0xf9   :  { %v473_v57 = vpop.f32.mrb[0].mxu1  ;;  %v424_v58 = vpop.f32.mrb[1].mxu0 }
  0xfa   :  { %v425_v59 = vadd.f32 %v424_v58, %v423_v56  ;;  %v474_v60 = vpop.f32.mrb[1].mxu1 }
  0xfb   :  { %v475_v61 = vadd.f32 %v474_v60, %v473_v57 }
  0xfc   :  { %v426_v62 = vpop.f32.mrb[2].mxu0 }
  0xfd   :  { %v846_v63 = vadd.f32 %v475_v61, %v425_v59  ;;  %v476_v0 = vpop.f32.mrb[2].mxu1  ;;  %v427_v1 = vpop.f32.mrb[3].mxu0 }
  0xfe   :  { %v428_v2 = vadd.f32 %v427_v1, %v426_v62  ;;  %v477_v3 = vpop.f32.mrb[3].mxu1 }
  0xff   :  { %v478_v4 = vadd.f32 %v477_v3, %v476_v0 }
 0x100   :  { %v429_v5 = vpop.f32.mrb[4].mxu0 }
 0x101   :  { %v848_v6 = vadd.f32 %v478_v4, %v428_v2  ;;  %v479_v7 = vpop.f32.mrb[4].mxu1  ;;  %v430_v8 = vpop.f32.mrb[5].mxu0 }
 0x102   :  { %v431_v9 = vadd.f32 %v430_v8, %v429_v5  ;;  %v480_v10 = vpop.f32.mrb[5].mxu1 }
 0x103   :  { %v481_v11 = vadd.f32 %v480_v10, %v479_v7  ;;  %v295_v26 = vadd.f32 %v848_v6, %v846_v63 }
 0x104   :  { %v432_v12 = vpop.f32.mrb[6].mxu0 }
 0x105   :  { %v850_v13 = vadd.f32 %v481_v11, %v431_v9  ;;  %v482_v14 = vpop.f32.mrb[6].mxu1  ;;  %v433_v15 = vpop.f32.mrb[7].mxu0  ;;  %v341_v11 = vlaneseq }
 0x106   :  { %v434_v16 = vadd.f32 %v433_v15, %v432_v12  ;;  %v483_v17 = vpop.f32.mrb[7].mxu1 }
 0x107   :  { %v484_v18 = vadd.f32 %v483_v17, %v482_v14  ;;  %v296_v31 = vadd.f32 %v295_v26, %v850_v13  ;;  %v342_v12 = vshrl.u32 %v341_v11, 7  ;;  %v336_v14 = vld [vmem:[%s899_s2] sm:$0x1] }
 0x108   :  { %v435_v19 = vpop.f32.mrb[8].mxu0 }
 0x109   :  { %v852_v20 = vadd.f32 %v484_v18, %v434_v16  ;;  %v485_v21 = vpop.f32.mrb[8].mxu1  ;;  %v436_v22 = vpop.f32.mrb[9].mxu0  ;;  %v343_v15 = vsub.s32 0, %v342_v12  ;;  %v338_v18 = vld [vmem:[%s900_s3] sm:$0x1] }
 0x10a   :  { %v437_v23 = vadd.f32 %v436_v22, %v435_v19  ;;  %v486_v24 = vpop.f32.mrb[9].mxu1 }
 0x10b   :  { %v487_v25 = vadd.f32 %v486_v24, %v485_v21  ;;  %v297_v35 = vadd.f32 %v296_v31, %v852_v20 }
 0x10c   :  { %v438_v27 = vpop.f32.mrb[10].mxu0 }
 0x10d   :  { %v856_v28 = vadd.f32 %v487_v25, %v437_v23  ;;  %v488_v29 = vpop.f32.mrb[10].mxu1  ;;  %v439_v30 = vpop.f32.mrb[11].mxu0 }
 0x10e   :  { %v440_v32 = vadd.f32 %v439_v30, %v438_v27  ;;  %v489_v33 = vpop.f32.mrb[11].mxu1 }
 0x10f   :  { %v490_v34 = vadd.f32 %v489_v33, %v488_v29  ;;  %v298_v37 = vadd.f32 %v297_v35, %v856_v28 }
 0x111   :  { %v292_v36 = vadd.f32 %v490_v34, %v440_v32 }
 0x113   :  { %v300_v38 = vsel %vm299_vm0, %v292_v36, 0.0 }
 0x114   :  { %v301_v39 = vadd.f32 %v300_v38, %v298_v37 }
 0x116   :  { %v302_v40 = vrot.slane %v301_v39, 4 }
 0x118   :  { %v303_v41 = vadd.f32 %v302_v40, %v301_v39 }
 0x11a   :  { %v304_v42 = vrot.slane %v303_v41, 2 }
 0x11c   :  { %v305_v43 = vadd.f32 %v304_v42, %v303_v41 }
 0x11e   :  { %v306_v44 = vrot.slane %v305_v43, 1 }
 0x120   :  { %v307_v45 = vadd.f32 %v306_v44, %v305_v43 }
 0x122   :  { %v308_v46 = vmul.f32 0.023809524, %v307_v45 }
 0x124   :  { %v309_v47 = vsub.f32 %v846_v63, %v308_v46  ;;  %v310_v48 = vsub.f32 %v848_v6, %v308_v46  ;;  %v311_v49 = vsub.f32 %v850_v13, %v308_v46  ;;  %v312_v50 = vsub.f32 %v852_v20, %v308_v46 }
 0x125   :  { %v314_v53 = vsub.f32 %v292_v36, %v308_v46  ;;  %v313_v54 = vsub.f32 %v856_v28, %v308_v46 }
 0x126   :  { %v315_v51 = vmul.f32 %v309_v47, %v309_v47  ;;  %v316_v52 = vmul.f32 %v310_v48, %v310_v48  ;;  %v317_v55 = vmul.f32 %v311_v49, %v311_v49  ;;  %v318_v57 = vmul.f32 %v312_v50, %v312_v50 }
 0x127   :  { %v320_v59 = vmul.f32 %v314_v53, %v314_v53  ;;  %v319_v60 = vmul.f32 %v313_v54, %v313_v54 }
 0x128   :  { %v321_v56 = vadd.f32 %v316_v52, %v315_v51 }
 0x129   :  { %v325_v0 = vsel %vm299_vm0, %v320_v59, 0.0 }
 0x12a   :  { %v322_v58 = vadd.f32 %v321_v56, %v317_v55 }
 0x12c   :  { %v323_v61 = vadd.f32 %v322_v58, %v318_v57 }
 0x12e   :  { %v324_v62 = vadd.f32 %v323_v61, %v319_v60 }
 0x130   :  { %v326_v1 = vadd.f32 %v325_v0, %v324_v62 }
 0x132   :  { %v327_v2 = vrot.slane %v326_v1, 4 }
 0x134   :  { %v328_v3 = vadd.f32 %v327_v2, %v326_v1 }
 0x136   :  { %v329_v4 = vrot.slane %v328_v3, 2 }
 0x138   :  { %v330_v5 = vadd.f32 %v329_v4, %v328_v3 }
 0x13a   :  { %v331_v7 = vrot.slane %v330_v5, 1 }
 0x13c   :  { %v332_v8 = vadd.f32 %v331_v7, %v330_v5 }
 0x13e   :  { %v333_v9 = vmul.f32 0.023809524, %v332_v8 }
 0x140   :  { %v334_v10 = vadd.f32 1e-05, %v333_v9 }
 0x142   :  { %555 = vrsqrt.f32 %v334_v10 }
 0x14c   :  { %v556_v16 = vpop.eup %555 }
 0x14d   :  { %v337_v17 = vmul.f32 %v556_v16, %v336_v14 }
 0x14f   :  { %v339_v19 = vmul.f32 %v337_v17, %v308_v46  ;;  %v344_v21 = vrot.slane %v337_v17, %v343_v15 }
 0x151   :  { %v340_v22 = vsub.f32 %v338_v18, %v339_v19  ;;  %v345_v23 = vmul.f32 %v344_v21, %v846_v63  ;;  %v346_v24 = vmul.f32 %v344_v21, %v848_v6  ;;  %v347_v25 = vmul.f32 %v344_v21, %v850_v13 }
 0x152   :  { %v348_v26 = vmul.f32 %v344_v21, %v852_v20  ;;  %v349_v29 = vmul.f32 %v344_v21, %v856_v28  ;;  %v350_v30 = vmul.f32 %v344_v21, %v292_v36 }
 0x153   :  { %v355_v27 = vrot.slane %v340_v22, %v343_v15 }
 0x155   :  { %v357_v31 = vadd.f32 %v355_v27, %v345_v23  ;;  %v358_v32 = vadd.f32 %v355_v27, %v346_v24  ;;  %v359_v33 = vadd.f32 %v355_v27, %v347_v25  ;;  %v360_v34 = vadd.f32 %v355_v27, %v348_v26 }
 0x156   :  { %v361_v35 = vadd.f32 %v355_v27, %v349_v29  ;;  %v362_v37 = vadd.f32 %v355_v27, %v350_v30 }
 0x157   :  { %vm363_vm1 = vcmp.ge.f32.partialorder %v357_v31, 0.0  ;;  %vm364_vm2 = vcmp.ge.f32.partialorder %v358_v32, 0.0  ;;  %vm365_vm3 = vcmp.ge.f32.partialorder %v359_v33, 0.0  ;;  %vm366_vm4 = vcmp.ge.f32.partialorder %v360_v34, 0.0 }
 0x158   :  { %vm367_vm5 = vcmp.ge.f32.partialorder %v361_v35, 0.0  ;;  %vm368_vm6 = vcmp.ge.f32.partialorder %v362_v37, 0.0  ;;  %v369_v63 = vmul.f32 0.2, %v357_v31  ;;  %v370_v6 = vmul.f32 0.2, %v358_v32 }
 0x159   :  { %v371_v13 = vmul.f32 0.2, %v359_v33  ;;  %v372_v20 = vmul.f32 0.2, %v360_v34  ;;  %v373_v38 = vmul.f32 0.2, %v361_v35 }
 0x15a   :  { %v374_v39 = vmul.f32 0.2, %v362_v37  ;;  %v375_v28 = vsel %vm363_vm1, %v357_v31, %v369_v63  ;;  %v376_v36 = vsel %vm364_vm2, %v358_v32, %v370_v6 }
 0x15b   :  { %v377_v40 = vsel %vm365_vm3, %v359_v33, %v371_v13  ;;  %v378_v41 = vsel %vm366_vm4, %v360_v34, %v372_v20  ;;  %v379_v42 = vsel %vm367_vm5, %v361_v35, %v373_v38  ;;  %381 = vst [vmem:[%s901_s4] sm:$0xff] %v375_v28  ;;  %382 = vst [vmem:[%s901_s4 + $0x8] sm:$0xff] %v376_v36 }
 0x15c   :  { %v380_v43 = vsel %vm368_vm6, %v362_v37, %v374_v39  ;;  %383 = vst [vmem:[%s901_s4 + $0x10] sm:$0xff] %v377_v40  ;;  %384 = vst [vmem:[%s901_s4 + $0x18] sm:$0xff] %v378_v41 }
 0x15d   :  { %385 = vst [vmem:[%s901_s4 + $0x20] sm:$0xff] %v379_v42  ;;  %386 = vst [vmem:[%s901_s4 + $0x28] sm:$0x3] %v380_v43 }

// kernel: _lambda_.9
= control target key start
LH: loop header
LB: loop body
LE: loop exit
PB: predicated region body
PF: predicated region fallthrough
CT: control target
= control target key end

     0   :  { %s1281_s1 = inlined_call_operand.vmem [shape: f32[1024,128], index: 1, kind: input, shape index: {}]   ;;  %s1282_s0 = inlined_call_operand.vmem [shape: f32[24,1024], index: 0, kind: input, shape index: {}]   ;;  %s1283_s2 = inlined_call_operand.vmem [shape: f32[1,128], index: 2, kind: input, shape index: {}]   ;;  %s1284_s3 = inlined_call_operand.vmem [shape: f32[24,128], index: 3, kind: output, shape index: {}]  }
   0x1   :  { %v54_v0 = vld [vmem:[%s1281_s1 + $0x80] sm:$0xff]  ;;  %v55_v1 = vld [vmem:[%s1281_s1 + $0x88] sm:$0xff]  ;;  %v56_v11 = vld [vmem:[%s1281_s1 + $0x90] sm:$0xff] }
   0x2   :  { %v38_v2 = vld [vmem:[%s1281_s1] sm:$0xff]  ;;  %v665_v3 = vpack.c.bf16 %v55_v1, %v54_v0  ;;  %v39_v4 = vld [vmem:[%s1281_s1 + $0x8] sm:$0xff]  ;;  %v57_v13 = vld [vmem:[%s1281_s1 + $0x98] sm:$0xff] }
   0x3   :  { %v86_v5 = vld [vmem:[%s1281_s1 + $0x180] sm:$0xff]  ;;  %v87_v6 = vld [vmem:[%s1281_s1 + $0x188] sm:$0xff]  ;;  %v667_v7 = vpack.c.bf16 %v39_v4, %v38_v2  ;;  %v40_v14 = vld [vmem:[%s1281_s1 + $0x10] sm:$0xff]  ;;  %v669_v16 = vpack.c.bf16 %v57_v13, %v56_v11 }
   0x4   :  { %v697_v8 = vpack.c.bf16 %v87_v6, %v86_v5  ;;  %v70_v9 = vld [vmem:[%s1281_s1 + $0x100] sm:$0xff]  ;;  %v71_v10 = vld [vmem:[%s1281_s1 + $0x108] sm:$0xff]  ;;  %666 = vmatprep.subr.bf16.mxu0 %v665_v3  ;;  %v41_v15 = vld [vmem:[%s1281_s1 + $0x18] sm:$0xff] }
   0x5   :  { %v699_v12 = vpack.c.bf16 %v71_v10, %v70_v9  ;;  %668 = vmatpush3.bf16.msra.mxu0 %v667_v7  ;;  %v671_v17 = vpack.c.bf16 %v41_v15, %v40_v14  ;;  %v88_v18 = vld [vmem:[%s1281_s1 + $0x190] sm:$0xff]  ;;  %v89_v19 = vld [vmem:[%s1281_s1 + $0x198] sm:$0xff]  ;;  %v58_v23 = vld [vmem:[%s1281_s1 + $0xa0] sm:$0xff] }
   0x6   :  { %698 = vmatprep.subr.bf16.mxu1 %v697_v8  ;;  %v72_v20 = vld [vmem:[%s1281_s1 + $0x110] sm:$0xff]  ;;  %v701_v21 = vpack.c.bf16 %v89_v19, %v88_v18  ;;  %v73_v22 = vld [vmem:[%s1281_s1 + $0x118] sm:$0xff]  ;;  %v59_v24 = vld [vmem:[%s1281_s1 + $0xa8] sm:$0xff]  ;;  %670 = vmatprep.subr.bf16.mxu0 %v669_v16 }
   0x7   :  { %700 = vmatpush3.bf16.msra.mxu1 %v699_v12  ;;  %v703_v25 = vpack.c.bf16 %v73_v22, %v72_v20  ;;  %v673_v26 = vpack.c.bf16 %v59_v24, %v58_v23  ;;  %v42_v27 = vld [vmem:[%s1281_s1 + $0x20] sm:$0xff]  ;;  %v43_v28 = vld [vmem:[%s1281_s1 + $0x28] sm:$0xff]  ;;  %v60_v35 = vld [vmem:[%s1281_s1 + $0xb0] sm:$0xff] }
   0x8   :  { %v90_v29 = vld [vmem:[%s1281_s1 + $0x1a0] sm:$0xff]  ;;  %702 = vmatprep.subr.bf16.mxu1 %v701_v21  ;;  %v91_v30 = vld [vmem:[%s1281_s1 + $0x1a8] sm:$0xff]  ;;  %v675_v33 = vpack.c.bf16 %v43_v28, %v42_v27  ;;  %v61_v36 = vld [vmem:[%s1281_s1 + $0xb8] sm:$0xff] }
   0x9   :  { %v74_v31 = vld [vmem:[%s1281_s1 + $0x120] sm:$0xff]  ;;  %v75_v32 = vld [vmem:[%s1281_s1 + $0x128] sm:$0xff]  ;;  %672 = vmatpush3.bf16.msra.mxu0 %v671_v17  ;;  %v705_v34 = vpack.c.bf16 %v91_v30, %v90_v29  ;;  %v44_v37 = vld [vmem:[%s1281_s1 + $0x30] sm:$0xff]  ;;  %v677_v39 = vpack.c.bf16 %v61_v36, %v60_v35 }
   0xa   :  { %674 = vmatprep.subr.bf16.mxu0 %v673_v26  ;;  %v707_v38 = vpack.c.bf16 %v75_v32, %v74_v31  ;;  %v45_v40 = vld [vmem:[%s1281_s1 + $0x38] sm:$0xff]  ;;  %v92_v41 = vld [vmem:[%s1281_s1 + $0x1b0] sm:$0xff]  ;;  %v62_v46 = vld [vmem:[%s1281_s1 + $0xc0] sm:$0xff] }
   0xb   :  { %704 = vmatpush3.bf16.msra.mxu1 %v703_v25  ;;  %v93_v42 = vld [vmem:[%s1281_s1 + $0x1b8] sm:$0xff]  ;;  %v76_v44 = vld [vmem:[%s1281_s1 + $0x130] sm:$0xff]  ;;  %v63_v47 = vld [vmem:[%s1281_s1 + $0xc8] sm:$0xff]  ;;  %v679_v48 = vpack.c.bf16 %v45_v40, %v44_v37 }
   0xc   :  { %706 = vmatprep.subr.bf16.mxu1 %v705_v34  ;;  %v709_v43 = vpack.c.bf16 %v93_v42, %v92_v41  ;;  %v77_v45 = vld [vmem:[%s1281_s1 + $0x138] sm:$0xff]  ;;  %v94_v49 = vld [vmem:[%s1281_s1 + $0x1c0] sm:$0xff]  ;;  %v95_v50 = vld [vmem:[%s1281_s1 + $0x1c8] sm:$0xff]  ;;  %v681_v52 = vpack.c.bf16 %v63_v47, %v62_v46 }
   0xd   :  { %676 = vmatpush3.bf16.msra.mxu0 %v675_v33  ;;  %v711_v51 = vpack.c.bf16 %v77_v45, %v76_v44  ;;  %v46_v53 = vld [vmem:[%s1281_s1 + $0x40] sm:$0xff]  ;;  %v47_v54 = vld [vmem:[%s1281_s1 + $0x48] sm:$0xff]  ;;  %v713_v56 = vpack.c.bf16 %v95_v50, %v94_v49  ;;  %v64_v58 = vld [vmem:[%s1281_s1 + $0xd0] sm:$0xff] }
   0xe   :  { %678 = vmatprep.subr.bf16.mxu0 %v677_v39  ;;  %v78_v55 = vld [vmem:[%s1281_s1 + $0x140] sm:$0xff]  ;;  %v79_v57 = vld [vmem:[%s1281_s1 + $0x148] sm:$0xff]  ;;  %v65_v59 = vld [vmem:[%s1281_s1 + $0xd8] sm:$0xff]  ;;  %v683_v62 = vpack.c.bf16 %v47_v54, %v46_v53 }
   0xf   :  { %708 = vmatpush3.bf16.msra.mxu1 %v707_v38  ;;  %v96_v60 = vld [vmem:[%s1281_s1 + $0x1d0] sm:$0xff]  ;;  %v97_v61 = vld [vmem:[%s1281_s1 + $0x1d8] sm:$0xff]  ;;  %v715_v63 = vpack.c.bf16 %v79_v57, %v78_v55  ;;  %v685_v0 = vpack.c.bf16 %v65_v59, %v64_v58  ;;  %v66_v6 = vld [vmem:[%s1281_s1 + $0xe0] sm:$0xff] }
  0x10   :  { %710 = vmatprep.subr.bf16.mxu1 %v709_v43  ;;  %v48_v1 = vld [vmem:[%s1281_s1 + $0x50] sm:$0xff]  ;;  %v49_v2 = vld [vmem:[%s1281_s1 + $0x58] sm:$0xff]  ;;  %v717_v4 = vpack.c.bf16 %v97_v61, %v96_v60  ;;  %v67_v7 = vld [vmem:[%s1281_s1 + $0xe8] sm:$0xff] }
  0x11   :  { %680 = vmatpush3.bf16.msra.mxu0 %v679_v48  ;;  %v80_v3 = vld [vmem:[%s1281_s1 + $0x150] sm:$0xff]  ;;  %v81_v5 = vld [vmem:[%s1281_s1 + $0x158] sm:$0xff]  ;;  %v98_v8 = vld [vmem:[%s1281_s1 + $0x1e0] sm:$0xff]  ;;  %v687_v10 = vpack.c.bf16 %v49_v2, %v48_v1  ;;  %v689_v14 = vpack.c.bf16 %v67_v7, %v66_v6 }
  0x12   :  { %682 = vmatprep.subr.bf16.mxu0 %v681_v52  ;;  %v99_v9 = vld [vmem:[%s1281_s1 + $0x1e8] sm:$0xff]  ;;  %v50_v11 = vld [vmem:[%s1281_s1 + $0x60] sm:$0xff]  ;;  %v719_v13 = vpack.c.bf16 %v81_v5, %v80_v3  ;;  %v68_v19 = vld [vmem:[%s1281_s1 + $0xf0] sm:$0xff] }
  0x13   :  { %712 = vmatpush3.bf16.msra.mxu1 %v711_v51  ;;  %v51_v12 = vld [vmem:[%s1281_s1 + $0x68] sm:$0xff]  ;;  %v82_v15 = vld [vmem:[%s1281_s1 + $0x160] sm:$0xff]  ;;  %v721_v18 = vpack.c.bf16 %v99_v9, %v98_v8  ;;  %v69_v20 = vld [vmem:[%s1281_s1 + $0xf8] sm:$0xff] }
  0x14   :  { %714 = vmatprep.subr.bf16.mxu1 %v713_v56  ;;  %v83_v16 = vld [vmem:[%s1281_s1 + $0x168] sm:$0xff]  ;;  %v17_v21 = vld [vmem:[%s1282_s0 + $0x18] sm:$0xff]  ;;  %v100_v22 = vld [vmem:[%s1281_s1 + $0x1f0] sm:$0xff]  ;;  %v691_v24 = vpack.c.bf16 %v51_v12, %v50_v11  ;;  %v693_v26 = vpack.c.bf16 %v69_v20, %v68_v19 }
  0x15   :  { %684 = vmatpush3.bf16.msra.mxu0 %v683_v62  ;;  %v15_v17 = vld [vmem:[%s1282_s0 + $0x8] sm:$0xff]  ;;  %v101_v23 = vld [vmem:[%s1281_s1 + $0x1f8] sm:$0xff]  ;;  %317 = vmatprep.mubr.f32.mxu1 %v17_v21  ;;  %v723_v25 = vpack.c.bf16 %v83_v16, %v82_v15  ;;  %v52_v27 = vld [vmem:[%s1281_s1 + $0x70] sm:$0xff] }
  0x16   :  { %686 = vmatprep.subr.bf16.mxu0 %v685_v0  ;;  %237 = vmatprep.mubr.f32.mxu0 %v15_v17  ;;  %v53_v28 = vld [vmem:[%s1281_s1 + $0x78] sm:$0xff]  ;;  %v84_v29 = vld [vmem:[%s1281_s1 + $0x170] sm:$0xff]  ;;  %v725_v30 = vpack.c.bf16 %v101_v23, %v100_v22  ;;  %v118_v32 = vld [vmem:[%s1281_s1 + $0x280] sm:$0xff] }
  0x17   :  { %716 = vmatpush3.bf16.msra.mxu1 %v715_v63  ;;  %v85_v31 = vld [vmem:[%s1281_s1 + $0x178] sm:$0xff]  ;;  %v119_v33 = vld [vmem:[%s1281_s1 + $0x288] sm:$0xff]  ;;  %v150_v34 = vld [vmem:[%s1281_s1 + $0x380] sm:$0xff]  ;;  %v695_v36 = vpack.c.bf16 %v53_v28, %v52_v27 }
  0x18   :  { %718 = vmatprep.subr.bf16.mxu1 %v717_v4  ;;  %v151_v35 = vld [vmem:[%s1281_s1 + $0x388] sm:$0xff]  ;;  %v727_v37 = vpack.c.bf16 %v85_v31, %v84_v29  ;;  %v729_v38 = vpack.c.bf16 %v119_v33, %v118_v32  ;;  %v102_v39 = vld [vmem:[%s1281_s1 + $0x200] sm:$0xff]  ;;  %v120_v44 = vld [vmem:[%s1281_s1 + $0x290] sm:$0xff] }
  0x19   :  { %688 = vmatpush3.bf16.msra.mxu0 %v687_v10  ;;  %v103_v40 = vld [vmem:[%s1281_s1 + $0x208] sm:$0xff]  ;;  %v134_v41 = vld [vmem:[%s1281_s1 + $0x300] sm:$0xff]  ;;  %v761_v42 = vpack.c.bf16 %v151_v35, %v150_v34  ;;  %v121_v45 = vld [vmem:[%s1281_s1 + $0x298] sm:$0xff] }
  0x1a   :  { %690 = vmatprep.subr.bf16.mxu0 %v689_v14  ;;  %v135_v43 = vld [vmem:[%s1281_s1 + $0x308] sm:$0xff]  ;;  %v152_v46 = vld [vmem:[%s1281_s1 + $0x390] sm:$0xff]  ;;  %v153_v47 = vld [vmem:[%s1281_s1 + $0x398] sm:$0xff]  ;;  %v731_v49 = vpack.c.bf16 %v103_v40, %v102_v39  ;;  %v733_v52 = vpack.c.bf16 %v121_v45, %v120_v44 }
  0x1b   :  { %720 = vmatpush3.bf16.msra.mxu1 %v719_v13  ;;  %v14_v48 = vld [vmem:[%s1282_s0] sm:$0xff]  ;;  %v16_v50 = vld [vmem:[%s1282_s0 + $0x10] sm:$0xff]  ;;  %v763_v51 = vpack.c.bf16 %v135_v43, %v134_v41  ;;  %v105_v54 = vld [vmem:[%s1281_s1 + $0x218] sm:$0xff]  ;;  %v765_v56 = vpack.c.bf16 %v153_v47, %v152_v46 }
  0x1c   :  { %722 = vmatprep.subr.bf16.mxu1 %v721_v18  ;;  %v104_v53 = vld [vmem:[%s1281_s1 + $0x210] sm:$0xff]  ;;  %v137_v57 = vld [vmem:[%s1281_s1 + $0x318] sm:$0xff]  ;;  %v122_v58 = vld [vmem:[%s1281_s1 + $0x2a0] sm:$0xff] }
  0x1d   :  { %692 = vmatpush3.bf16.msra.mxu0 %v691_v24  ;;  %v136_v55 = vld [vmem:[%s1281_s1 + $0x310] sm:$0xff]  ;;  %v123_v59 = vld [vmem:[%s1281_s1 + $0x2a8] sm:$0xff]  ;;  %v154_v60 = vld [vmem:[%s1281_s1 + $0x3a0] sm:$0xff]  ;;  %v735_v62 = vpack.c.bf16 %v105_v54, %v104_v53 }
  0x1e   :  { %694 = vmatprep.subr.bf16.mxu0 %v693_v26  ;;  %v155_v61 = vld [vmem:[%s1281_s1 + $0x3a8] sm:$0xff]  ;;  %v106_v63 = vld [vmem:[%s1281_s1 + $0x220] sm:$0xff]  ;;  %v767_v1 = vpack.c.bf16 %v137_v57, %v136_v55  ;;  %v737_v2 = vpack.c.bf16 %v123_v59, %v122_v58  ;;  %v124_v5 = vld [vmem:[%s1281_s1 + $0x2b0] sm:$0xff] }
  0x1f   :  { %724 = vmatpush3.bf16.msra.mxu1 %v723_v25  ;;  %v107_v0 = vld [vmem:[%s1281_s1 + $0x228] sm:$0xff]  ;;  %v138_v3 = vld [vmem:[%s1281_s1 + $0x320] sm:$0xff]  ;;  %v769_v6 = vpack.c.bf16 %v155_v61, %v154_v60  ;;  %v125_v7 = vld [vmem:[%s1281_s1 + $0x2b8] sm:$0xff] }
  0x20   :  { %726 = vmatprep.subr.bf16.mxu1 %v725_v30  ;;  %v139_v4 = vld [vmem:[%s1281_s1 + $0x328] sm:$0xff]  ;;  %v156_v8 = vld [vmem:[%s1281_s1 + $0x3b0] sm:$0xff]  ;;  %v157_v10 = vld [vmem:[%s1281_s1 + $0x3b8] sm:$0xff]  ;;  %v739_v13 = vpack.c.bf16 %v107_v0, %v106_v63  ;;  %v741_v18 = vpack.c.bf16 %v125_v7, %v124_v5 }
  0x21   :  { %696 = vmatpush3.bf16.msra.mxu0 %v695_v36  ;;  %v23_v9 = vld [vmem:[%s1282_s0 + $0x48] sm:$0xff]  ;;  %v22_v11 = vld [vmem:[%s1282_s0 + $0x40] sm:$0xff]  ;;  %v25_v12 = vld [vmem:[%s1282_s0 + $0x58] sm:$0xff]  ;;  %v771_v17 = vpack.c.bf16 %v139_v4, %v138_v3  ;;  %v773_v22 = vpack.c.bf16 %v157_v10, %v156_v8 }
  0x22   :  { %730 = vmatprep.subr.bf16.mxu0 %v729_v38  ;;  %v108_v14 = vld [vmem:[%s1281_s1 + $0x230] sm:$0xff]  ;;  %v109_v15 = vld [vmem:[%s1281_s1 + $0x238] sm:$0xff]  ;;  %v126_v21 = vld [vmem:[%s1281_s1 + $0x2c0] sm:$0xff] }
  0x23   :  { %728 = vmatpush3.bf16.msra.mxu1 %v727_v37  ;;  %v24_v16 = vld [vmem:[%s1282_s0 + $0x50] sm:$0xff]  ;;  %v141_v20 = vld [vmem:[%s1281_s1 + $0x338] sm:$0xff]  ;;  %v127_v23 = vld [vmem:[%s1281_s1 + $0x2c8] sm:$0xff]  ;;  %v743_v29 = vpack.c.bf16 %v109_v15, %v108_v14 }
  0x24   :  { %762 = vmatprep.subr.bf16.mxu1 %v761_v42  ;;  %238 = vmatmul.mubr.f32.vlgmr.msra.gmra.mrb[0].mxu0 %v14_v48  ;;  %v140_v19 = vld [vmem:[%s1281_s1 + $0x330] sm:$0xff]  ;;  %v158_v24 = vld [vmem:[%s1281_s1 + $0x3c0] sm:$0xff]  ;;  %v31_v25 = vld [vmem:[%s1282_s0 + $0x88] sm:$0xff]  ;;  %v745_v33 = vpack.c.bf16 %v127_v23, %v126_v21 }
  0x25   :  { %732 = vmatpush3.bf16.msra.mxu0 %v731_v49  ;;  %242 = vmatprep.mubr.f32.mxu0 %v23_v9  ;;  %v159_v26 = vld [vmem:[%s1281_s1 + $0x3c8] sm:$0xff]  ;;  %v30_v27 = vld [vmem:[%s1282_s0 + $0x80] sm:$0xff]  ;;  %v33_v28 = vld [vmem:[%s1282_s0 + $0x98] sm:$0xff]  ;;  %v775_v32 = vpack.c.bf16 %v141_v20, %v140_v19 }
  0x26   :  { %318 = vmatmul.mubr.f32.vlgmr.msra.gmra.mrb[0].mxu1 %v16_v50  ;;  %734 = vmatprep.subr.bf16.mxu0 %v733_v52  ;;  %v110_v30 = vld [vmem:[%s1281_s1 + $0x240] sm:$0xff]  ;;  %v32_v31 = vld [vmem:[%s1282_s0 + $0x90] sm:$0xff]  ;;  %v111_v34 = vld [vmem:[%s1281_s1 + $0x248] sm:$0xff]  ;;  %v777_v37 = vpack.c.bf16 %v159_v26, %v158_v24 }
  0x27   :  { %764 = vmatpush3.bf16.msra.mxu1 %v763_v51  ;;  %322 = vmatprep.mubr.f32.mxu1 %v25_v12  ;;  %v142_v35 = vld [vmem:[%s1281_s1 + $0x340] sm:$0xff]  ;;  %v143_v36 = vld [vmem:[%s1281_s1 + $0x348] sm:$0xff]  ;;  %v128_v38 = vld [vmem:[%s1281_s1 + $0x2d0] sm:$0xff]  ;;  %v747_v44 = vpack.c.bf16 %v111_v34, %v110_v30 }
  0x28   :  { %766 = vmatprep.subr.bf16.mxu1 %v765_v56  ;;  %243 = vmatmul.mubr.f32.gmra.mrb[2].mxu0 %v22_v11  ;;  %v129_v39 = vld [vmem:[%s1281_s1 + $0x2d8] sm:$0xff]  ;;  %v19_v40 = vld [vmem:[%s1282_s0 + $0x28] sm:$0xff]  ;;  %v160_v41 = vld [vmem:[%s1281_s1 + $0x3d0] sm:$0xff]  ;;  %v779_v45 = vpack.c.bf16 %v143_v36, %v142_v35 }
  0x29   :  { %736 = vmatpush3.bf16.msra.mxu0 %v735_v62  ;;  %247 = vmatprep.mubr.f32.mxu0 %v31_v25  ;;  %v161_v42 = vld [vmem:[%s1281_s1 + $0x3d8] sm:$0xff]  ;;  %v749_v46 = vpack.c.bf16 %v129_v39, %v128_v38  ;;  %v112_v47 = vld [vmem:[%s1281_s1 + $0x250] sm:$0xff]  ;;  %v130_v52 = vld [vmem:[%s1281_s1 + $0x2e0] sm:$0xff] }
  0x2a   :  { %738 = vmatprep.subr.bf16.mxu0 %v737_v2  ;;  %323 = vmatmul.mubr.f32.gmra.mrb[2].mxu1 %v24_v16  ;;  %v21_v43 = vld [vmem:[%s1282_s0 + $0x38] sm:$0xff]  ;;  %v144_v49 = vld [vmem:[%s1281_s1 + $0x350] sm:$0xff]  ;;  %v781_v50 = vpack.c.bf16 %v161_v42, %v160_v41  ;;  %v131_v53 = vld [vmem:[%s1281_s1 + $0x2e8] sm:$0xff] }
  0x2b   :  { %768 = vmatpush3.bf16.msra.mxu1 %v767_v1  ;;  %327 = vmatprep.mubr.f32.mxu1 %v33_v28  ;;  %v113_v48 = vld [vmem:[%s1281_s1 + $0x258] sm:$0xff]  ;;  %v162_v54 = vld [vmem:[%s1281_s1 + $0x3e0] sm:$0xff]  ;;  %v163_v55 = vld [vmem:[%s1281_s1 + $0x3e8] sm:$0xff]  ;;  %v753_v58 = vpack.c.bf16 %v131_v53, %v130_v52 }
  0x2c   :  { %770 = vmatprep.subr.bf16.mxu1 %v769_v6  ;;  %248 = vmatmul.mubr.f32.gmra.mrb[4].mxu0 %v30_v27  ;;  %v145_v51 = vld [vmem:[%s1281_s1 + $0x358] sm:$0xff]  ;;  %v751_v56 = vpack.c.bf16 %v113_v48, %v112_v47  ;;  %v114_v59 = vld [vmem:[%s1281_s1 + $0x260] sm:$0xff]  ;;  %v115_v60 = vld [vmem:[%s1281_s1 + $0x268] sm:$0xff]  ;;  %v785_v62 = vpack.c.bf16 %v163_v55, %v162_v54 }
  0x2d   :  { %740 = vmatpush3.bf16.msra.mxu0 %v739_v13  ;;  %397 = vmatprep.mubr.f32.mxu0 %v19_v40  ;;  %v783_v57 = vpack.c.bf16 %v145_v51, %v144_v49  ;;  %v146_v61 = vld [vmem:[%s1281_s1 + $0x360] sm:$0xff]  ;;  %v147_v63 = vld [vmem:[%s1281_s1 + $0x368] sm:$0xff]  ;;  %v132_v0 = vld [vmem:[%s1281_s1 + $0x2f0] sm:$0xff]  ;;  %v755_v4 = vpack.c.bf16 %v115_v60, %v114_v59 }
  0x2e   :  { %742 = vmatprep.subr.bf16.mxu0 %v741_v18  ;;  %328 = vmatmul.mubr.f32.gmra.mrb[4].mxu1 %v32_v31  ;;  %v133_v1 = vld [vmem:[%s1281_s1 + $0x2f8] sm:$0xff]  ;;  %v164_v2 = vld [vmem:[%s1281_s1 + $0x3f0] sm:$0xff]  ;;  %v787_v5 = vpack.c.bf16 %v147_v63, %v146_v61  ;;  %v18_v14 = vld [vmem:[%s1282_s0 + $0x20] sm:$0xff] }
  0x2f   :  { %772 = vmatpush3.bf16.msra.mxu1 %v771_v17  ;;  %477 = vmatprep.mubr.f32.mxu1 %v21_v43  ;;  %v165_v3 = vld [vmem:[%s1281_s1 + $0x3f8] sm:$0xff]  ;;  %v757_v6 = vpack.c.bf16 %v133_v1, %v132_v0  ;;  %v116_v7 = vld [vmem:[%s1281_s1 + $0x270] sm:$0xff]  ;;  %v27_v16 = vld [vmem:[%s1282_s0 + $0x68] sm:$0xff] }
  0x30   :  { %774 = vmatprep.subr.bf16.mxu1 %v773_v22  ;;  %v117_v8 = vld [vmem:[%s1281_s1 + $0x278] sm:$0xff]  ;;  %v789_v9 = vpack.c.bf16 %v165_v3, %v164_v2  ;;  %v148_v10 = vld [vmem:[%s1281_s1 + $0x370] sm:$0xff]  ;;  %v26_v18 = vld [vmem:[%s1282_s0 + $0x60] sm:$0xff] }
  0x31   :  { %744 = vmatpush3.bf16.msra.mxu0 %v743_v29  ;;  %v149_v11 = vld [vmem:[%s1281_s1 + $0x378] sm:$0xff]  ;;  %v759_v12 = vpack.c.bf16 %v117_v8, %v116_v7  ;;  %v20_v15 = vld [vmem:[%s1282_s0 + $0x30] sm:$0xff]  ;;  %v35_v20 = vld [vmem:[%s1282_s0 + $0xa8] sm:$0xff] }
  0x32   :  { %746 = vmatprep.subr.bf16.mxu0 %v745_v33  ;;  %v791_v13 = vpack.c.bf16 %v149_v11, %v148_v10  ;;  %v29_v17 = vld [vmem:[%s1282_s0 + $0x78] sm:$0xff]  ;;  %v28_v19 = vld [vmem:[%s1282_s0 + $0x70] sm:$0xff]  ;;  %v34_v22 = vld [vmem:[%s1282_s0 + $0xa0] sm:$0xff] }
  0x33   :  { %776 = vmatpush3.bf16.msra.mxu1 %v775_v32  ;;  %v37_v21 = vld [vmem:[%s1282_s0 + $0xb8] sm:$0xff]  ;;  %v36_v23 = vld [vmem:[%s1282_s0 + $0xb0] sm:$0xff]  ;;  %v500_v25 = vld [vmem:[%s1283_s2] ss:$0 sm:$0xff] }
  0x34   :  { %778 = vmatprep.subr.bf16.mxu1 %v777_v37 }
  0x35   :  { %748 = vmatpush3.bf16.msra.mxu0 %v747_v44 }
  0x36   :  { %750 = vmatprep.subr.bf16.mxu0 %v749_v46 }
  0x37   :  { %780 = vmatpush3.bf16.msra.mxu1 %v779_v45 }
  0x38   :  { %782 = vmatprep.subr.bf16.mxu1 %v781_v50 }
  0x39   :  { %752 = vmatpush3.bf16.msra.mxu0 %v751_v56 }
  0x3a   :  { %754 = vmatprep.subr.bf16.mxu0 %v753_v58 }
  0x3b   :  { %784 = vmatpush3.bf16.msra.mxu1 %v783_v57 }
  0x3c   :  { %786 = vmatprep.subr.bf16.mxu1 %v785_v62 }
  0x3d   :  { %756 = vmatpush3.bf16.msra.mxu0 %v755_v4 }
  0x3e   :  { %758 = vmatprep.subr.bf16.mxu0 %v757_v6 }
  0x3f   :  { %788 = vmatpush3.bf16.msra.mxu1 %v787_v5 }
  0x40   :  { %790 = vmatprep.subr.bf16.mxu1 %v789_v9 }
  0x41   :  { %760 = vmatpush3.bf16.msra.mxu0 %v759_v12 }
  0x43   :  { %792 = vmatpush3.bf16.msra.mxu1 %v791_v13 }
  0x44   :  { %398 = vmatmul.mubr.f32.vlgmr.msra.gmra.mrb[6].mxu0 %v18_v14 }
  0x45   :  { %402 = vmatprep.mubr.f32.mxu0 %v27_v16 }
  0x46   :  { %478 = vmatmul.mubr.f32.vlgmr.msra.gmra.mrb[6].mxu1 %v20_v15 }
  0x47   :  { %482 = vmatprep.mubr.f32.mxu1 %v29_v17 }
  0x48   :  { %403 = vmatmul.mubr.f32.gmra.mrb[8].mxu0 %v26_v18 }
  0x49   :  { %407 = vmatprep.mubr.f32.mxu0 %v35_v20 }
  0x4a   :  { %483 = vmatmul.mubr.f32.gmra.mrb[8].mxu1 %v28_v19 }
  0x4b   :  { %487 = vmatprep.mubr.f32.mxu1 %v37_v21 }
  0x4c   :  { %408 = vmatmul.mubr.f32.gmra.mrb[10].mxu0 %v34_v22 }
  0x4e   :  { %488 = vmatmul.mubr.f32.gmra.mrb[10].mxu1 %v36_v23 }
  0xf7   :  { %v533_v24 = vpop.f32.mrb[0].mxu0 }
  0xf8   :  { %v534_v26 = vpop.f32.mrb[1].mxu0 }
  0xf9   :  { %v574_v27 = vpop.f32.mrb[0].mxu1  ;;  %v535_v28 = vadd.f32 %v534_v26, %v533_v24 }
  0xfa   :  { %v575_v29 = vpop.f32.mrb[1].mxu1 }
  0xfb   :  { %v576_v30 = vadd.f32 %v575_v29, %v574_v27  ;;  %v240_v31 = vadd.f32 %v535_v28, %v500_v25  ;;  %v536_v33 = vpop.f32.mrb[2].mxu0 }
  0xfc   :  { %v537_v34 = vpop.f32.mrb[3].mxu0 }
  0xfd   :  { %v320_v32 = vadd.f32 %v576_v30, %v240_v31  ;;  %v577_v35 = vpop.f32.mrb[2].mxu1  ;;  %v538_v36 = vadd.f32 %v537_v34, %v536_v33 }
  0xfe   :  { %v578_v37 = vpop.f32.mrb[3].mxu1 }
  0xff   :  { %v579_v38 = vadd.f32 %v578_v37, %v577_v35  ;;  %v245_v39 = vadd.f32 %v538_v36, %v500_v25  ;;  %v539_v40 = vpop.f32.mrb[4].mxu0 }
 0x100   :  { %v540_v41 = vpop.f32.mrb[5].mxu0 }
 0x101   :  { %v580_v42 = vpop.f32.mrb[4].mxu1  ;;  %v325_v43 = vadd.f32 %v579_v38, %v245_v39  ;;  %v541_v44 = vadd.f32 %v540_v41, %v539_v40 }
 0x102   :  { %v581_v45 = vpop.f32.mrb[5].mxu1 }
 0x103   :  { %v582_v46 = vadd.f32 %v581_v45, %v580_v42  ;;  %v250_v47 = vadd.f32 %v541_v44, %v500_v25 }
 0x105   :  { %v330_v48 = vadd.f32 %v582_v46, %v250_v47 }
 0x117   :  { %v615_v49 = vpop.f32.mrb[6].mxu0 }
 0x118   :  { %v616_v50 = vpop.f32.mrb[7].mxu0 }
 0x119   :  { %v656_v51 = vpop.f32.mrb[6].mxu1  ;;  %v617_v52 = vadd.f32 %v616_v50, %v615_v49 }
 0x11a   :  { %v657_v53 = vpop.f32.mrb[7].mxu1 }
 0x11b   :  { %v658_v54 = vadd.f32 %v657_v53, %v656_v51  ;;  %v400_v55 = vadd.f32 %v617_v52, %v320_v32  ;;  %v618_v56 = vpop.f32.mrb[8].mxu0 }
 0x11c   :  { %v619_v57 = vpop.f32.mrb[9].mxu0 }
 0x11d   :  { %v659_v58 = vpop.f32.mrb[8].mxu1  ;;  %v480_v59 = vadd.f32 %v658_v54, %v400_v55  ;;  %v620_v60 = vadd.f32 %v619_v57, %v618_v56 }
 0x11e   :  { %v660_v61 = vpop.f32.mrb[9].mxu1 }
 0x11f   :  { %v661_v62 = vadd.f32 %v660_v61, %v659_v58  ;;  %493 = vst [vmem:[%s1284_s3] sm:$0xff] %v480_v59  ;;  %v405_v63 = vadd.f32 %v620_v60, %v325_v43  ;;  %v621_v0 = vpop.f32.mrb[10].mxu0 }
 0x120   :  { %v622_v1 = vpop.f32.mrb[11].mxu0 }
 0x121   :  { %v662_v2 = vpop.f32.mrb[10].mxu1  ;;  %v485_v3 = vadd.f32 %v661_v62, %v405_v63  ;;  %v623_v4 = vadd.f32 %v622_v1, %v621_v0 }
 0x122   :  { %v663_v5 = vpop.f32.mrb[11].mxu1 }
 0x123   :  { %v664_v6 = vadd.f32 %v663_v5, %v662_v2  ;;  %494 = vst [vmem:[%s1284_s3 + $0x8] sm:$0xff] %v485_v3  ;;  %v410_v7 = vadd.f32 %v623_v4, %v330_v48 }
 0x125   :  { %v490_v8 = vadd.f32 %v664_v6, %v410_v7 }
 0x127   :  { %495 = vst [vmem:[%s1284_s3 + $0x10] sm:$0xff] %v490_v8 }

</bundles_post_ra>
